<compile_context>
chip_gen: v6e
topology: v6e:2x2x1
jax: 0.10.0
libtpu: 0.0.40
codegen_flags: <defaults>
</compile_context>

<pallas_src>
import functools
import math

import jax
import jax.numpy as jnp
from jax.experimental import pallas as pl
from jax.experimental.pallas import tpu as pltpu


# ----------------------------------------------------------------------------
# In-kernel helpers (pure VMEM values)
# ----------------------------------------------------------------------------
def _layernorm(x, g, b, eps=1e-5):
    mean = jnp.mean(x, axis=-1, keepdims=True)
    var = jnp.mean((x - mean) ** 2, axis=-1, keepdims=True)
    return (x - mean) * jax.lax.rsqrt(var + eps) * g + b


# ----------------------------------------------------------------------------
# Fused encoder-layer kernel: one CROSS batch (all n_vars sequences) per step
# ----------------------------------------------------------------------------
def _encoder_layer_kernel(
    x_ref, cross_ref,
    wqkv_s_ref, bqkv_s_ref, wo_s_ref, bo_s_ref, ln1_g_ref, ln1_b_ref,
    wq_c_ref, bq_c_ref, wkv_c_ref, bkv_c_ref, wo_c_ref, bo_c_ref,
    ln2_g_ref, ln2_b_ref,
    w1_ref, b1_ref, w2_ref, b2_ref, ln3_g_ref, ln3_b_ref,
    out_ref, *, n_heads, scale,
):
    f32, bf16 = jnp.float32, jnp.bfloat16
    n_vars, Lx, D = x_ref.shape
    M = n_vars * Lx
    E = D // n_heads

    x = x_ref[...].reshape(M, D)        # (M, D) f32 -- all vars of this cross batch
    cross = cross_ref[0]                # (Lc, D) f32

    # --------------- self-attention + residual + LN1 (batched over vars) ----
    qkv = (jnp.dot(x.astype(bf16), wqkv_s_ref[...],
                   preferred_element_type=f32) + bqkv_s_ref[...])       # (M, 3D)
    qkv3 = qkv.reshape(n_vars, Lx, 3 * D)
    q3 = (qkv3[..., 0:D] * scale).astype(bf16)
    k3 = qkv3[..., D:2 * D].astype(bf16)
    v3 = qkv3[..., 2 * D:3 * D].astype(bf16)

    acc = jnp.zeros((M, D), f32)
    for h in range(n_heads):            # static unroll over heads
        sl = slice(h * E, (h + 1) * E)
        s = jnp.einsum('vqe,vke->vqk', q3[..., sl], k3[..., sl],
                       preferred_element_type=f32)                      # (v, Lx, Lx)
        s = s - jnp.max(s, axis=-1, keepdims=True)
        p = jnp.exp(s)
        p = p / jnp.sum(p, axis=-1, keepdims=True)                      # exact softmax
        oh = jnp.einsum('vqk,vke->vqe', p.astype(bf16), v3[..., sl],
                        preferred_element_type=f32)                     # (v, Lx, E)
        # head-merge fused with out-projection; accumulating matmul (MRB-friendly)
        acc = acc + jnp.dot(oh.reshape(M, E).astype(bf16), wo_s_ref[sl, :],
                            preferred_element_type=f32)
    x1 = _layernorm(x + acc + bo_s_ref[...], ln1_g_ref[...], ln1_b_ref[...])
    x1_3 = x1.reshape(n_vars, Lx, D)

    # -------- cross-attention on each var's global (last) token + LN2 -------
    x_glb = x1_3[:, Lx - 1, :]                                          # (n_vars, D)
    qg = ((jnp.dot(x_glb.astype(bf16), wq_c_ref[...],
                   preferred_element_type=f32) + bq_c_ref[...]) * scale).astype(bf16)
    # K/V projection of `cross`: computed ONCE per cross batch (hoisted).
    kv = (jnp.dot(cross.astype(bf16), wkv_c_ref[...],
                  preferred_element_type=f32) + bkv_c_ref[...])         # (Lc, 2D)
    kc = kv[:, 0:D].astype(bf16)
    vc = kv[:, D:2 * D].astype(bf16)

    acc_c = jnp.zeros((n_vars, D), f32)
    for h in range(n_heads):
        sl = slice(h * E, (h + 1) * E)
        s = jax.lax.dot_general(qg[:, sl], kc[:, sl], (((1,), (1,)), ((), ())),
                                preferred_element_type=f32)             # (n_vars, Lc)
        s = s - jnp.max(s, axis=-1, keepdims=True)
        p = jnp.exp(s)
        p = p / jnp.sum(p, axis=-1, keepdims=True)
        o = jnp.dot(p.astype(bf16), vc[:, sl], preferred_element_type=f32)
        acc_c = acc_c + jnp.dot(o.astype(bf16), wo_c_ref[sl, :],
                                preferred_element_type=f32)
    glb = _layernorm(x_glb + acc_c + bo_c_ref[...], ln2_g_ref[...], ln2_b_ref[...])

    # re-attach the global token (in-VMEM row select, no HBM concat)
    row = jax.lax.broadcasted_iota(jnp.int32, (n_vars, Lx, D), 1)
    glb_b = jnp.broadcast_to(glb[:, None, :], (n_vars, Lx, D))
    x2 = jnp.where(row == Lx - 1, glb_b, x1_3).reshape(M, D)

    # ------------- FFN (two 1x1 convs + relu) + residual + LN3 --------------
    h1 = jnp.maximum(jnp.dot(x2.astype(bf16), w1_ref[...],
                             preferred_element_type=f32) + b1_ref[...], 0.0)
    y = (jnp.dot(h1.astype(bf16), w2_ref[...],
                 preferred_element_type=f32) + b2_ref[...])
    out = _layernorm(x2 + y, ln3_g_ref[...], ln3_b_ref[...])
    out_ref[...] = out.reshape(n_vars, Lx, D).astype(out_ref.dtype)


# ----------------------------------------------------------------------------
# Host-side wrapper
# ----------------------------------------------------------------------------
def encoder_layer_forward(packed, x, cross, n_heads):
    """x: (B*n_vars, Lx, D) with n_vars fastest in the flattened batch
    (TimeXer en_embedding convention); cross: (B, Lc, D)."""
    Bx, Lx, D = x.shape
    Bc, Lc, _ = cross.shape
    assert Bx % Bc == 0, "x batch must be cross batch * n_vars"
    n_vars = Bx // Bc
    E = D // n_heads
    F = packed["w1"].shape[1]
    scale = 1.0 / math.sqrt(E)

    weights = (
        packed["wqkv_s"], packed["bqkv_s"], packed["wo_s"], packed["bo_s"],
        packed["ln1_g"], packed["ln1_b"],
        packed["wq_c"], packed["bq_c"], packed["wkv_c"], packed["bkv_c"],
        packed["wo_c"], packed["bo_c"], packed["ln2_g"], packed["ln2_b"],
        packed["w1"], packed["b1"], packed["w2"], packed["b2"],
        packed["ln3_g"], packed["ln3_b"],
    )
    for w in weights:
        assert w.ndim == 2

    in_specs = [
        # all n_vars sequences of cross batch i in one block
        pl.BlockSpec((n_vars, Lx, D), lambda i: (i, 0, 0)),
        pl.BlockSpec((1, Lc, D), lambda i: (i, 0, 0)),
    ] + [
        # constant block index -> weights stay resident in VMEM across steps
        pl.BlockSpec(w.shape, lambda i: (0, 0)) for w in weights
    ]

    macs = (
        Bx * Lx * D * 3 * D + 2 * Bx * Lx * Lx * D + Bx * Lx * D * D        # self attn
        + Bx * D * D + Bc * Lc * D * 2 * D + 2 * Bx * Lc * D + Bx * D * D   # cross attn
        + 2 * Bx * Lx * D * F                                               # FFN
    )
    transcendentals = Bx * n_heads * (Lx * Lx + Lc) + Bx * (2 * Lx + 1)
    bytes_accessed = 4 * (x.size + cross.size + Bx * Lx * D) + sum(
        int(w.size) * w.dtype.itemsize for w in weights)

    return pl.pallas_call(
        functools.partial(_encoder_layer_kernel, n_heads=n_heads, scale=scale),
        out_shape=jax.ShapeDtypeStruct((Bx, Lx, D), jnp.float32),
        grid=(Bc,),
        in_specs=in_specs,
        out_specs=pl.BlockSpec((n_vars, Lx, D), lambda i: (i, 0, 0)),
        compiler_params=pltpu.CompilerParams(
            dimension_semantics=("parallel",),
            vmem_limit_bytes=48 * 1024 * 1024),
        cost_estimate=pl.CostEstimate(
            flops=2 * macs, transcendentals=transcendentals,
            bytes_accessed=bytes_accessed),
    )(x, cross, *weights)


def pack_encoder_params(params):
    """Fuse QKV / cross-KV weights, store matmul weights in bf16 (native MXU
    precision, half the resident VMEM); biases / LN params stay f32 (1, N)."""
    sa, ca = params["self_attn"], params["cross_attn"]
    row = lambda v: v.reshape(1, -1).astype(jnp.float32)
    w16 = lambda v: v.astype(jnp.bfloat16)
    return {
        "wqkv_s": w16(jnp.concatenate([sa["wq"], sa["wk"], sa["wv"]], axis=1)),
        "bqkv_s": row(jnp.concatenate([sa["bq"], sa["bk"], sa["bv"]])),
        "wo_s": w16(sa["wo"]), "bo_s": row(sa["bo"]),
        "ln1_g": row(params["ln1_g"]), "ln1_b": row(params["ln1_b"]),
        "wq_c": w16(ca["wq"]), "bq_c": row(ca["bq"]),
        "wkv_c": w16(jnp.concatenate([ca["wk"], ca["wv"]], axis=1)),
        "bkv_c": row(jnp.concatenate([ca["bk"], ca["bv"]])),
        "wo_c": w16(ca["wo"]), "bo_c": row(ca["bo"]),
        "ln2_g": row(params["ln2_g"]), "ln2_b": row(params["ln2_b"]),
        "w1": w16(params["w1"]), "b1": row(params["b1"]),
        "w2": w16(params["w2"]), "b2": row(params["b2"]),
        "ln3_g": row(params["ln3_g"]), "ln3_b": row(params["ln3_b"]),
    }


def make_params(key, d_model, d_ff, n_heads):
    ks = jax.random.split(key, 4)
    s = 0.02

    def attn_params(k4):
        k = jax.random.split(k4, 4)
        return {
            "wq": s * jax.random.normal(k[0], (d_model, d_model), jnp.float32),
            "bq": jnp.zeros((d_model,), jnp.float32),
            "wk": s * jax.random.normal(k[1], (d_model, d_model), jnp.float32),
            "bk": jnp.zeros((d_model,), jnp.float32),
            "wv": s * jax.random.normal(k[2], (d_model, d_model), jnp.float32),
            "bv": jnp.zeros((d_model,), jnp.float32),
            "wo": s * jax.random.normal(k[3], (d_model, d_model), jnp.float32),
            "bo": jnp.zeros((d_model,), jnp.float32),
        }

    return {
        "self_attn": attn_params(ks[0]),
        "cross_attn": attn_params(ks[1]),
        # conv1: Conv1d(d_model -> d_ff, k=1) stored as (d_model, d_ff)
        "w1": s * jax.random.normal(ks[2], (d_model, d_ff), jnp.float32),
        "b1": jnp.zeros((d_ff,), jnp.float32),
        # conv2: Conv1d(d_ff -> d_model, k=1) stored as (d_ff, d_model)
        "w2": s * jax.random.normal(ks[3], (d_ff, d_model), jnp.float32),
        "b2": jnp.zeros((d_model,), jnp.float32),
        "ln1_g": jnp.ones((d_model,), jnp.float32),
        "ln1_b": jnp.zeros((d_model,), jnp.float32),
        "ln2_g": jnp.ones((d_model,), jnp.float32),
        "ln2_b": jnp.zeros((d_model,), jnp.float32),
        "ln3_g": jnp.ones((d_model,), jnp.float32),
        "ln3_b": jnp.zeros((d_model,), jnp.float32),
    }


# ----------------------------------------------------------------------------
# Pure-JAX f32 reference (mirrors the PyTorch module, dropout = identity)
# ----------------------------------------------------------------------------
def encoder_layer_reference(params, x, cross, n_heads):
    Bx, Lx, D = x.shape
    Bc, Lc, _ = cross.shape
    n_vars = Bx // Bc
    E = D // n_heads
    scale = 1.0 / math.sqrt(E)

    def mha(q_in, kv_in, p):
        B, Lq, _ = q_in.shape
        Lk = kv_in.shape[1]
        q = (q_in @ p["wq"] + p["bq"]).reshape(B, Lq, n_heads, E)
        k = (kv_in @ p["wk"] + p["bk"]).reshape(B, Lk, n_heads, E)
        v = (kv_in @ p["wv"] + p["bv"]).reshape(B, Lk, n_heads, E)
        s = jnp.einsum('bqhe,bkhe->bhqk', q, k) * scale
        a = jax.nn.softmax(s, axis=-1)
        o = jnp.einsum('bhqk,bkhe->bqhe', a, v).reshape(B, Lq, D)
        return o @ p["wo"] + p["bo"]

    x = x + mha(x, x, params["self_attn"])
    x = _layernorm(x, params["ln1_g"], params["ln1_b"])
    x_glb_ori = x[:, -1:, :]                                   # (Bx, 1, D)
    x_glb_q = x_glb_ori.reshape(Bc, n_vars, D)
    x_glb_attn = mha(x_glb_q, cross, params["cross_attn"]).reshape(Bx, 1, D)
    x_glb = _layernorm(x_glb_ori + x_glb_attn, params["ln2_g"], params["ln2_b"])
    x = jnp.concatenate([x[:, :-1, :], x_glb], axis=1)
    y = jax.nn.relu(x @ params["w1"] + params["b1"])
    y = y @ params["w2"] + params["b2"]
    return _layernorm(x + y, params["ln3_g"], params["ln3_b"])


if __name__ == "__main__":
    d_model = 128     # multiple of 128 -> lane-dense output stores
    d_ff = 256
    n_heads = 4
    B = 2             # outer (cross) batch
    n_vars = 2        # endogenous variables
    Lx = 8            # patch tokens incl. global token
    Lc = 16           # exogenous sequence length

    key = jax.random.PRNGKey(0)
    kx, kc, kp = jax.random.split(key, 3)
    # x flattened as (B, n_vars) with n_vars fastest (TimeXer convention)
    x = jax.random.normal(kx, (B * n_vars, Lx, d_model), jnp.float32)
    cross = jax.random.normal(kc, (B, Lc, d_model), jnp.float32)
    params = make_params(kp, d_model, d_ff, n_heads)
    packed = pack_encoder_params(params)

    fwd = jax.jit(functools.partial(encoder_layer_forward, n_heads=n_heads))
    out = fwd(packed, x, cross)
    jax.block_until_ready(out)

    assert out.shape == (B * n_vars, Lx, d_model)
    assert bool(jnp.all(jnp.isfinite(out)))
    ref = encoder_layer_reference(params, x, cross, n_heads)
    err = float(jnp.max(jnp.abs(out - ref)))
    assert err < 0.1, f"max abs error vs f32 reference too large: {err}"
    print("KERNEL_OK")
</pallas_src>

<mosaic_0001>
module attributes {stable_mosaic.version = 11 : i64} {
  func.func @_encoder_layer_kernel(%arg0: i32, %arg1: memref<2x8x128xf32, #tpu.memory_space<vmem>>, %arg2: memref<1x16x128xf32, #tpu.memory_space<vmem>>, %arg3: memref<128x384xbf16, #tpu.memory_space<vmem>>, %arg4: memref<1x384xf32, #tpu.memory_space<vmem>>, %arg5: memref<128x128xbf16, #tpu.memory_space<vmem>>, %arg6: memref<1x128xf32, #tpu.memory_space<vmem>>, %arg7: memref<1x128xf32, #tpu.memory_space<vmem>>, %arg8: memref<1x128xf32, #tpu.memory_space<vmem>>, %arg9: memref<128x128xbf16, #tpu.memory_space<vmem>>, %arg10: memref<1x128xf32, #tpu.memory_space<vmem>>, %arg11: memref<128x256xbf16, #tpu.memory_space<vmem>>, %arg12: memref<1x256xf32, #tpu.memory_space<vmem>>, %arg13: memref<128x128xbf16, #tpu.memory_space<vmem>>, %arg14: memref<1x128xf32, #tpu.memory_space<vmem>>, %arg15: memref<1x128xf32, #tpu.memory_space<vmem>>, %arg16: memref<1x128xf32, #tpu.memory_space<vmem>>, %arg17: memref<128x256xbf16, #tpu.memory_space<vmem>>, %arg18: memref<1x256xf32, #tpu.memory_space<vmem>>, %arg19: memref<256x128xbf16, #tpu.memory_space<vmem>>, %arg20: memref<1x128xf32, #tpu.memory_space<vmem>>, %arg21: memref<1x128xf32, #tpu.memory_space<vmem>>, %arg22: memref<1x128xf32, #tpu.memory_space<vmem>>, %arg23: memref<2x8x128xf32, #tpu.memory_space<vmem>>) attributes {dimension_semantics = [#tpu.dimension_semantics<parallel>], iteration_bounds = array<i64: 2>, scalar_prefetch = 0 : i64, scratch_operands = 0 : i64, tpu.core_type = #tpu.core_type<tc>, window_params = [{transform_indices = @transform_0, window_bounds = array<i64: 2, 8, 128>}, {transform_indices = @transform_1, window_bounds = array<i64: 1, 16, 128>}, {pipeline_mode = #tpu.pipeline_mode<synchronous>, transform_indices = @transform_2, window_bounds = array<i64: 128, 384>}, {pipeline_mode = #tpu.pipeline_mode<synchronous>, transform_indices = @transform_3, window_bounds = array<i64: 1, 384>}, {pipeline_mode = #tpu.pipeline_mode<synchronous>, transform_indices = @transform_4, window_bounds = array<i64: 128, 128>}, {pipeline_mode = #tpu.pipeline_mode<synchronous>, transform_indices = @transform_5, window_bounds = array<i64: 1, 128>}, {pipeline_mode = #tpu.pipeline_mode<synchronous>, transform_indices = @transform_6, window_bounds = array<i64: 1, 128>}, {pipeline_mode = #tpu.pipeline_mode<synchronous>, transform_indices = @transform_7, window_bounds = array<i64: 1, 128>}, {pipeline_mode = #tpu.pipeline_mode<synchronous>, transform_indices = @transform_8, window_bounds = array<i64: 128, 128>}, {pipeline_mode = #tpu.pipeline_mode<synchronous>, transform_indices = @transform_9, window_bounds = array<i64: 1, 128>}, {pipeline_mode = #tpu.pipeline_mode<synchronous>, transform_indices = @transform_10, window_bounds = array<i64: 128, 256>}, {pipeline_mode = #tpu.pipeline_mode<synchronous>, transform_indices = @transform_11, window_bounds = array<i64: 1, 256>}, {pipeline_mode = #tpu.pipeline_mode<synchronous>, transform_indices = @transform_12, window_bounds = array<i64: 128, 128>}, {pipeline_mode = #tpu.pipeline_mode<synchronous>, transform_indices = @transform_13, window_bounds = array<i64: 1, 128>}, {pipeline_mode = #tpu.pipeline_mode<synchronous>, transform_indices = @transform_14, window_bounds = array<i64: 1, 128>}, {pipeline_mode = #tpu.pipeline_mode<synchronous>, transform_indices = @transform_15, window_bounds = array<i64: 1, 128>}, {pipeline_mode = #tpu.pipeline_mode<synchronous>, transform_indices = @transform_16, window_bounds = array<i64: 128, 256>}, {pipeline_mode = #tpu.pipeline_mode<synchronous>, transform_indices = @transform_17, window_bounds = array<i64: 1, 256>}, {pipeline_mode = #tpu.pipeline_mode<synchronous>, transform_indices = @transform_18, window_bounds = array<i64: 256, 128>}, {pipeline_mode = #tpu.pipeline_mode<synchronous>, transform_indices = @transform_19, window_bounds = array<i64: 1, 128>}, {pipeline_mode = #tpu.pipeline_mode<synchronous>, transform_indices = @transform_20, window_bounds = array<i64: 1, 128>}, {pipeline_mode = #tpu.pipeline_mode<synchronous>, transform_indices = @transform_21, window_bounds = array<i64: 1, 128>}, {transform_indices = @transform_22, window_bounds = array<i64: 2, 8, 128>}]} {
    %c0 = arith.constant 0 : index
    %c0_0 = arith.constant 0 : index
    %c0_1 = arith.constant 0 : index
    %0 = vector.load %arg1[%c0, %c0_0, %c0_1] : memref<2x8x128xf32, #tpu.memory_space<vmem>>, vector<2x8x128xf32>
    %1 = vector.shape_cast %0 : vector<2x8x128xf32> to vector<16x128xf32>
    %c0_2 = arith.constant 0 : index
    %c0_3 = arith.constant 0 : index
    %c0_4 = arith.constant 0 : index
    %2 = vector.load %arg2[%c0_2, %c0_3, %c0_4] : memref<1x16x128xf32, #tpu.memory_space<vmem>>, vector<1x16x128xf32>
    %3 = vector.shape_cast %2 : vector<1x16x128xf32> to vector<16x128xf32>
    %4 = arith.truncf %1 : vector<16x128xf32> to vector<16x128xbf16>
    %c0_5 = arith.constant 0 : index
    %c0_6 = arith.constant 0 : index
    %5 = vector.load %arg3[%c0_5, %c0_6] : memref<128x384xbf16, #tpu.memory_space<vmem>>, vector<128x384xbf16>
    %cst = arith.constant dense<0.000000e+00> : vector<16x384xf32>
    %6 = tpu.matmul %4, %5, %cst {dimension_numbers = #tpu.dot_dimension_numbers<[1], [0], [0], [1], [0, 0, 1, 1], [], []>} : vector<16x128xbf16>, vector<128x384xbf16>, vector<16x384xf32> -> vector<16x384xf32>
    %c0_7 = arith.constant 0 : index
    %c0_8 = arith.constant 0 : index
    %7 = vector.load %arg4[%c0_7, %c0_8] : memref<1x384xf32, #tpu.memory_space<vmem>>, vector<1x384xf32>
    %8 = vector.broadcast %7 : vector<1x384xf32> to vector<16x384xf32>
    %9 = arith.addf %6, %8 : vector<16x384xf32>
    %10 = vector.shape_cast %9 : vector<16x384xf32> to vector<2x8x384xf32>
    %11 = vector.extract_strided_slice %10 {offsets = [0, 0, 0], sizes = [2, 8, 128], strides = [1, 1, 1]} : vector<2x8x384xf32> to vector<2x8x128xf32>
    %cst_9 = arith.constant 0.176776692 : f32
    %12 = vector.broadcast %cst_9 : f32 to vector<2x8x128xf32>
    %13 = arith.mulf %11, %12 : vector<2x8x128xf32>
    %14 = arith.truncf %13 : vector<2x8x128xf32> to vector<2x8x128xbf16>
    %15 = vector.extract_strided_slice %10 {offsets = [0, 0, 128], sizes = [2, 8, 128], strides = [1, 1, 1]} : vector<2x8x384xf32> to vector<2x8x128xf32>
    %16 = arith.truncf %15 : vector<2x8x128xf32> to vector<2x8x128xbf16>
    %17 = vector.extract_strided_slice %10 {offsets = [0, 0, 256], sizes = [2, 8, 128], strides = [1, 1, 1]} : vector<2x8x384xf32> to vector<2x8x128xf32>
    %18 = arith.truncf %17 : vector<2x8x128xf32> to vector<2x8x128xbf16>
    %cst_10 = arith.constant 0.000000e+00 : f32
    %19 = vector.broadcast %cst_10 : f32 to vector<16x128xf32>
    %20 = vector.extract_strided_slice %14 {offsets = [0, 0, 0], sizes = [2, 8, 32], strides = [1, 1, 1]} : vector<2x8x128xbf16> to vector<2x8x32xbf16>
    %21 = vector.extract_strided_slice %16 {offsets = [0, 0, 0], sizes = [2, 8, 32], strides = [1, 1, 1]} : vector<2x8x128xbf16> to vector<2x8x32xbf16>
    "tpu.trace_start"() <{level = 10 : i32, message = "vqe,vke->vqk"}> : () -> ()
    %cst_11 = arith.constant dense<0.000000e+00> : vector<2x8x8xf32>
    %22 = tpu.matmul %20, %21, %cst_11 {dimension_numbers = #tpu.dot_dimension_numbers<[2], [2], [1], [1], [0, 0, 0, 1, 1, 1], [0], [0]>} : vector<2x8x32xbf16>, vector<2x8x32xbf16>, vector<2x8x8xf32> -> vector<2x8x8xf32>
    "tpu.trace_stop"() : () -> ()
    %cst_12 = arith.constant dense<0xFF800000> : vector<2x8xf32>
    %23 = vector.multi_reduction <maximumf>, %22, %cst_12 [2] : vector<2x8x8xf32> to vector<2x8xf32>
    %24 = vector.shape_cast %23 : vector<2x8xf32> to vector<2x8x1xf32>
    %25 = vector.broadcast %24 : vector<2x8x1xf32> to vector<2x8x8xf32>
    %26 = arith.subf %22, %25 : vector<2x8x8xf32>
    %27 = math.exp %26 : vector<2x8x8xf32>
    %cst_13 = arith.constant dense<0.000000e+00> : vector<2x8xf32>
    %28 = vector.multi_reduction <add>, %27, %cst_13 [2] : vector<2x8x8xf32> to vector<2x8xf32>
    %29 = vector.shape_cast %28 : vector<2x8xf32> to vector<2x8x1xf32>
    %30 = vector.broadcast %29 : vector<2x8x1xf32> to vector<2x8x8xf32>
    %31 = arith.divf %27, %30 : vector<2x8x8xf32>
    %32 = arith.truncf %31 : vector<2x8x8xf32> to vector<2x8x8xbf16>
    %33 = vector.extract_strided_slice %18 {offsets = [0, 0, 0], sizes = [2, 8, 32], strides = [1, 1, 1]} : vector<2x8x128xbf16> to vector<2x8x32xbf16>
    "tpu.trace_start"() <{level = 10 : i32, message = "vqk,vke->vqe"}> : () -> ()
    %cst_14 = arith.constant dense<0.000000e+00> : vector<2x8x32xf32>
    %34 = tpu.matmul %32, %33, %cst_14 {dimension_numbers = #tpu.dot_dimension_numbers<[2], [1], [1], [2], [0, 0, 0, 1, 1, 2], [0], [0]>} : vector<2x8x8xbf16>, vector<2x8x32xbf16>, vector<2x8x32xf32> -> vector<2x8x32xf32>
    "tpu.trace_stop"() : () -> ()
    %35 = vector.shape_cast %34 : vector<2x8x32xf32> to vector<16x32xf32>
    %36 = arith.truncf %35 : vector<16x32xf32> to vector<16x32xbf16>
    %c0_15 = arith.constant 0 : index
    %c0_16 = arith.constant 0 : index
    %37 = vector.load %arg5[%c0_15, %c0_16] : memref<128x128xbf16, #tpu.memory_space<vmem>>, vector<32x128xbf16>
    %cst_17 = arith.constant dense<0.000000e+00> : vector<16x128xf32>
    %38 = tpu.matmul %36, %37, %cst_17 {dimension_numbers = #tpu.dot_dimension_numbers<[1], [0], [0], [1], [0, 0, 1, 1], [], []>} : vector<16x32xbf16>, vector<32x128xbf16>, vector<16x128xf32> -> vector<16x128xf32>
    %39 = arith.addf %19, %38 : vector<16x128xf32>
    %40 = vector.extract_strided_slice %14 {offsets = [0, 0, 32], sizes = [2, 8, 32], strides = [1, 1, 1]} : vector<2x8x128xbf16> to vector<2x8x32xbf16>
    %41 = vector.extract_strided_slice %16 {offsets = [0, 0, 32], sizes = [2, 8, 32], strides = [1, 1, 1]} : vector<2x8x128xbf16> to vector<2x8x32xbf16>
    "tpu.trace_start"() <{level = 10 : i32, message = "vqe,vke->vqk"}> : () -> ()
    %cst_18 = arith.constant dense<0.000000e+00> : vector<2x8x8xf32>
    %42 = tpu.matmul %40, %41, %cst_18 {dimension_numbers = #tpu.dot_dimension_numbers<[2], [2], [1], [1], [0, 0, 0, 1, 1, 1], [0], [0]>} : vector<2x8x32xbf16>, vector<2x8x32xbf16>, vector<2x8x8xf32> -> vector<2x8x8xf32>
    "tpu.trace_stop"() : () -> ()
    %cst_19 = arith.constant dense<0xFF800000> : vector<2x8xf32>
    %43 = vector.multi_reduction <maximumf>, %42, %cst_19 [2] : vector<2x8x8xf32> to vector<2x8xf32>
    %44 = vector.shape_cast %43 : vector<2x8xf32> to vector<2x8x1xf32>
    %45 = vector.broadcast %44 : vector<2x8x1xf32> to vector<2x8x8xf32>
    %46 = arith.subf %42, %45 : vector<2x8x8xf32>
    %47 = math.exp %46 : vector<2x8x8xf32>
    %cst_20 = arith.constant dense<0.000000e+00> : vector<2x8xf32>
    %48 = vector.multi_reduction <add>, %47, %cst_20 [2] : vector<2x8x8xf32> to vector<2x8xf32>
    %49 = vector.shape_cast %48 : vector<2x8xf32> to vector<2x8x1xf32>
    %50 = vector.broadcast %49 : vector<2x8x1xf32> to vector<2x8x8xf32>
    %51 = arith.divf %47, %50 : vector<2x8x8xf32>
    %52 = arith.truncf %51 : vector<2x8x8xf32> to vector<2x8x8xbf16>
    %53 = vector.extract_strided_slice %18 {offsets = [0, 0, 32], sizes = [2, 8, 32], strides = [1, 1, 1]} : vector<2x8x128xbf16> to vector<2x8x32xbf16>
    "tpu.trace_start"() <{level = 10 : i32, message = "vqk,vke->vqe"}> : () -> ()
    %cst_21 = arith.constant dense<0.000000e+00> : vector<2x8x32xf32>
    %54 = tpu.matmul %52, %53, %cst_21 {dimension_numbers = #tpu.dot_dimension_numbers<[2], [1], [1], [2], [0, 0, 0, 1, 1, 2], [0], [0]>} : vector<2x8x8xbf16>, vector<2x8x32xbf16>, vector<2x8x32xf32> -> vector<2x8x32xf32>
    "tpu.trace_stop"() : () -> ()
    %55 = vector.shape_cast %54 : vector<2x8x32xf32> to vector<16x32xf32>
    %56 = arith.truncf %55 : vector<16x32xf32> to vector<16x32xbf16>
    %c32 = arith.constant 32 : index
    %c0_22 = arith.constant 0 : index
    %57 = vector.load %arg5[%c32, %c0_22] : memref<128x128xbf16, #tpu.memory_space<vmem>>, vector<32x128xbf16>
    %cst_23 = arith.constant dense<0.000000e+00> : vector<16x128xf32>
    %58 = tpu.matmul %56, %57, %cst_23 {dimension_numbers = #tpu.dot_dimension_numbers<[1], [0], [0], [1], [0, 0, 1, 1], [], []>} : vector<16x32xbf16>, vector<32x128xbf16>, vector<16x128xf32> -> vector<16x128xf32>
    %59 = arith.addf %39, %58 : vector<16x128xf32>
    %60 = vector.extract_strided_slice %14 {offsets = [0, 0, 64], sizes = [2, 8, 32], strides = [1, 1, 1]} : vector<2x8x128xbf16> to vector<2x8x32xbf16>
    %61 = vector.extract_strided_slice %16 {offsets = [0, 0, 64], sizes = [2, 8, 32], strides = [1, 1, 1]} : vector<2x8x128xbf16> to vector<2x8x32xbf16>
    "tpu.trace_start"() <{level = 10 : i32, message = "vqe,vke->vqk"}> : () -> ()
    %cst_24 = arith.constant dense<0.000000e+00> : vector<2x8x8xf32>
    %62 = tpu.matmul %60, %61, %cst_24 {dimension_numbers = #tpu.dot_dimension_numbers<[2], [2], [1], [1], [0, 0, 0, 1, 1, 1], [0], [0]>} : vector<2x8x32xbf16>, vector<2x8x32xbf16>, vector<2x8x8xf32> -> vector<2x8x8xf32>
    "tpu.trace_stop"() : () -> ()
    %cst_25 = arith.constant dense<0xFF800000> : vector<2x8xf32>
    %63 = vector.multi_reduction <maximumf>, %62, %cst_25 [2] : vector<2x8x8xf32> to vector<2x8xf32>
    %64 = vector.shape_cast %63 : vector<2x8xf32> to vector<2x8x1xf32>
    %65 = vector.broadcast %64 : vector<2x8x1xf32> to vector<2x8x8xf32>
    %66 = arith.subf %62, %65 : vector<2x8x8xf32>
    %67 = math.exp %66 : vector<2x8x8xf32>
    %cst_26 = arith.constant dense<0.000000e+00> : vector<2x8xf32>
    %68 = vector.multi_reduction <add>, %67, %cst_26 [2] : vector<2x8x8xf32> to vector<2x8xf32>
    %69 = vector.shape_cast %68 : vector<2x8xf32> to vector<2x8x1xf32>
    %70 = vector.broadcast %69 : vector<2x8x1xf32> to vector<2x8x8xf32>
    %71 = arith.divf %67, %70 : vector<2x8x8xf32>
    %72 = arith.truncf %71 : vector<2x8x8xf32> to vector<2x8x8xbf16>
    %73 = vector.extract_strided_slice %18 {offsets = [0, 0, 64], sizes = [2, 8, 32], strides = [1, 1, 1]} : vector<2x8x128xbf16> to vector<2x8x32xbf16>
    "tpu.trace_start"() <{level = 10 : i32, message = "vqk,vke->vqe"}> : () -> ()
    %cst_27 = arith.constant dense<0.000000e+00> : vector<2x8x32xf32>
    %74 = tpu.matmul %72, %73, %cst_27 {dimension_numbers = #tpu.dot_dimension_numbers<[2], [1], [1], [2], [0, 0, 0, 1, 1, 2], [0], [0]>} : vector<2x8x8xbf16>, vector<2x8x32xbf16>, vector<2x8x32xf32> -> vector<2x8x32xf32>
    "tpu.trace_stop"() : () -> ()
    %75 = vector.shape_cast %74 : vector<2x8x32xf32> to vector<16x32xf32>
    %76 = arith.truncf %75 : vector<16x32xf32> to vector<16x32xbf16>
    %c64 = arith.constant 64 : index
    %c0_28 = arith.constant 0 : index
    %77 = vector.load %arg5[%c64, %c0_28] : memref<128x128xbf16, #tpu.memory_space<vmem>>, vector<32x128xbf16>
    %cst_29 = arith.constant dense<0.000000e+00> : vector<16x128xf32>
    %78 = tpu.matmul %76, %77, %cst_29 {dimension_numbers = #tpu.dot_dimension_numbers<[1], [0], [0], [1], [0, 0, 1, 1], [], []>} : vector<16x32xbf16>, vector<32x128xbf16>, vector<16x128xf32> -> vector<16x128xf32>
    %79 = arith.addf %59, %78 : vector<16x128xf32>
    %80 = vector.extract_strided_slice %14 {offsets = [0, 0, 96], sizes = [2, 8, 32], strides = [1, 1, 1]} : vector<2x8x128xbf16> to vector<2x8x32xbf16>
    %81 = vector.extract_strided_slice %16 {offsets = [0, 0, 96], sizes = [2, 8, 32], strides = [1, 1, 1]} : vector<2x8x128xbf16> to vector<2x8x32xbf16>
    "tpu.trace_start"() <{level = 10 : i32, message = "vqe,vke->vqk"}> : () -> ()
    %cst_30 = arith.constant dense<0.000000e+00> : vector<2x8x8xf32>
    %82 = tpu.matmul %80, %81, %cst_30 {dimension_numbers = #tpu.dot_dimension_numbers<[2], [2], [1], [1], [0, 0, 0, 1, 1, 1], [0], [0]>} : vector<2x8x32xbf16>, vector<2x8x32xbf16>, vector<2x8x8xf32> -> vector<2x8x8xf32>
    "tpu.trace_stop"() : () -> ()
    %cst_31 = arith.constant dense<0xFF800000> : vector<2x8xf32>
    %83 = vector.multi_reduction <maximumf>, %82, %cst_31 [2] : vector<2x8x8xf32> to vector<2x8xf32>
    %84 = vector.shape_cast %83 : vector<2x8xf32> to vector<2x8x1xf32>
    %85 = vector.broadcast %84 : vector<2x8x1xf32> to vector<2x8x8xf32>
    %86 = arith.subf %82, %85 : vector<2x8x8xf32>
    %87 = math.exp %86 : vector<2x8x8xf32>
    %cst_32 = arith.constant dense<0.000000e+00> : vector<2x8xf32>
    %88 = vector.multi_reduction <add>, %87, %cst_32 [2] : vector<2x8x8xf32> to vector<2x8xf32>
    %89 = vector.shape_cast %88 : vector<2x8xf32> to vector<2x8x1xf32>
    %90 = vector.broadcast %89 : vector<2x8x1xf32> to vector<2x8x8xf32>
    %91 = arith.divf %87, %90 : vector<2x8x8xf32>
    %92 = arith.truncf %91 : vector<2x8x8xf32> to vector<2x8x8xbf16>
    %93 = vector.extract_strided_slice %18 {offsets = [0, 0, 96], sizes = [2, 8, 32], strides = [1, 1, 1]} : vector<2x8x128xbf16> to vector<2x8x32xbf16>
    "tpu.trace_start"() <{level = 10 : i32, message = "vqk,vke->vqe"}> : () -> ()
    %cst_33 = arith.constant dense<0.000000e+00> : vector<2x8x32xf32>
    %94 = tpu.matmul %92, %93, %cst_33 {dimension_numbers = #tpu.dot_dimension_numbers<[2], [1], [1], [2], [0, 0, 0, 1, 1, 2], [0], [0]>} : vector<2x8x8xbf16>, vector<2x8x32xbf16>, vector<2x8x32xf32> -> vector<2x8x32xf32>
    "tpu.trace_stop"() : () -> ()
    %95 = vector.shape_cast %94 : vector<2x8x32xf32> to vector<16x32xf32>
    %96 = arith.truncf %95 : vector<16x32xf32> to vector<16x32xbf16>
    %c96 = arith.constant 96 : index
    %c0_34 = arith.constant 0 : index
    %97 = vector.load %arg5[%c96, %c0_34] : memref<128x128xbf16, #tpu.memory_space<vmem>>, vector<32x128xbf16>
    %cst_35 = arith.constant dense<0.000000e+00> : vector<16x128xf32>
    %98 = tpu.matmul %96, %97, %cst_35 {dimension_numbers = #tpu.dot_dimension_numbers<[1], [0], [0], [1], [0, 0, 1, 1], [], []>} : vector<16x32xbf16>, vector<32x128xbf16>, vector<16x128xf32> -> vector<16x128xf32>
    %99 = arith.addf %79, %98 : vector<16x128xf32>
    %100 = arith.addf %1, %99 : vector<16x128xf32>
    %c0_36 = arith.constant 0 : index
    %c0_37 = arith.constant 0 : index
    %101 = vector.load %arg6[%c0_36, %c0_37] : memref<1x128xf32, #tpu.memory_space<vmem>>, vector<1x128xf32>
    %102 = vector.broadcast %101 : vector<1x128xf32> to vector<16x128xf32>
    %103 = arith.addf %100, %102 : vector<16x128xf32>
    %c0_38 = arith.constant 0 : index
    %c0_39 = arith.constant 0 : index
    %104 = vector.load %arg7[%c0_38, %c0_39] : memref<1x128xf32, #tpu.memory_space<vmem>>, vector<1x128xf32>
    %c0_40 = arith.constant 0 : index
    %c0_41 = arith.constant 0 : index
    %105 = vector.load %arg8[%c0_40, %c0_41] : memref<1x128xf32, #tpu.memory_space<vmem>>, vector<1x128xf32>
    %cst_42 = arith.constant dense<0.000000e+00> : vector<16xf32>
    %106 = vector.multi_reduction <add>, %103, %cst_42 [1] : vector<16x128xf32> to vector<16xf32>
    %107 = vector.shape_cast %106 : vector<16xf32> to vector<16x1xf32>
    %cst_43 = arith.constant 1.280000e+02 : f32
    %108 = vector.broadcast %cst_43 : f32 to vector<16x1xf32>
    %109 = arith.divf %107, %108 : vector<16x1xf32>
    %110 = vector.broadcast %109 : vector<16x1xf32> to vector<16x128xf32>
    %111 = arith.subf %103, %110 : vector<16x128xf32>
    %112 = arith.mulf %111, %111 : vector<16x128xf32>
    %cst_44 = arith.constant dense<0.000000e+00> : vector<16xf32>
    %113 = vector.multi_reduction <add>, %112, %cst_44 [1] : vector<16x128xf32> to vector<16xf32>
    %114 = vector.shape_cast %113 : vector<16xf32> to vector<16x1xf32>
    %cst_45 = arith.constant 1.280000e+02 : f32
    %115 = vector.broadcast %cst_45 : f32 to vector<16x1xf32>
    %116 = arith.divf %114, %115 : vector<16x1xf32>
    %117 = vector.broadcast %109 : vector<16x1xf32> to vector<16x128xf32>
    %118 = arith.subf %103, %117 : vector<16x128xf32>
    %cst_46 = arith.constant 9.99999974E-6 : f32
    %119 = vector.broadcast %cst_46 : f32 to vector<16x1xf32>
    %120 = arith.addf %116, %119 : vector<16x1xf32>
    %121 = math.rsqrt %120 : vector<16x1xf32>
    %122 = vector.broadcast %121 : vector<16x1xf32> to vector<16x128xf32>
    %123 = arith.mulf %118, %122 : vector<16x128xf32>
    %124 = vector.broadcast %104 : vector<1x128xf32> to vector<16x128xf32>
    %125 = arith.mulf %123, %124 : vector<16x128xf32>
    %126 = vector.broadcast %105 : vector<1x128xf32> to vector<16x128xf32>
    %127 = arith.addf %125, %126 : vector<16x128xf32>
    %128 = vector.shape_cast %127 : vector<16x128xf32> to vector<2x8x128xf32>
    %129 = vector.extract_strided_slice %128 {offsets = [0, 7, 0], sizes = [2, 1, 128], strides = [1, 1, 1]} : vector<2x8x128xf32> to vector<2x1x128xf32>
    %130 = vector.shape_cast %129 : vector<2x1x128xf32> to vector<2x128xf32>
    %131 = arith.truncf %130 : vector<2x128xf32> to vector<2x128xbf16>
    %c0_47 = arith.constant 0 : index
    %c0_48 = arith.constant 0 : index
    %132 = vector.load %arg9[%c0_47, %c0_48] : memref<128x128xbf16, #tpu.memory_space<vmem>>, vector<128x128xbf16>
    %cst_49 = arith.constant dense<0.000000e+00> : vector<2x128xf32>
    %133 = tpu.matmul %131, %132, %cst_49 {dimension_numbers = #tpu.dot_dimension_numbers<[1], [0], [0], [1], [0, 0, 1, 1], [], []>} : vector<2x128xbf16>, vector<128x128xbf16>, vector<2x128xf32> -> vector<2x128xf32>
    %c0_50 = arith.constant 0 : index
    %c0_51 = arith.constant 0 : index
    %134 = vector.load %arg10[%c0_50, %c0_51] : memref<1x128xf32, #tpu.memory_space<vmem>>, vector<1x128xf32>
    %135 = vector.broadcast %134 : vector<1x128xf32> to vector<2x128xf32>
    %136 = arith.addf %133, %135 : vector<2x128xf32>
    %cst_52 = arith.constant 0.176776692 : f32
    %137 = vector.broadcast %cst_52 : f32 to vector<2x128xf32>
    %138 = arith.mulf %136, %137 : vector<2x128xf32>
    %139 = arith.truncf %138 : vector<2x128xf32> to vector<2x128xbf16>
    %140 = arith.truncf %3 : vector<16x128xf32> to vector<16x128xbf16>
    %c0_53 = arith.constant 0 : index
    %c0_54 = arith.constant 0 : index
    %141 = vector.load %arg11[%c0_53, %c0_54] : memref<128x256xbf16, #tpu.memory_space<vmem>>, vector<128x256xbf16>
    %cst_55 = arith.constant dense<0.000000e+00> : vector<16x256xf32>
    %142 = tpu.matmul %140, %141, %cst_55 {dimension_numbers = #tpu.dot_dimension_numbers<[1], [0], [0], [1], [0, 0, 1, 1], [], []>} : vector<16x128xbf16>, vector<128x256xbf16>, vector<16x256xf32> -> vector<16x256xf32>
    %c0_56 = arith.constant 0 : index
    %c0_57 = arith.constant 0 : index
    %143 = vector.load %arg12[%c0_56, %c0_57] : memref<1x256xf32, #tpu.memory_space<vmem>>, vector<1x256xf32>
    %144 = vector.broadcast %143 : vector<1x256xf32> to vector<16x256xf32>
    %145 = arith.addf %142, %144 : vector<16x256xf32>
    %146 = vector.extract_strided_slice %145 {offsets = [0, 0], sizes = [16, 128], strides = [1, 1]} : vector<16x256xf32> to vector<16x128xf32>
    %147 = arith.truncf %146 : vector<16x128xf32> to vector<16x128xbf16>
    %148 = vector.extract_strided_slice %145 {offsets = [0, 128], sizes = [16, 128], strides = [1, 1]} : vector<16x256xf32> to vector<16x128xf32>
    %149 = arith.truncf %148 : vector<16x128xf32> to vector<16x128xbf16>
    %cst_58 = arith.constant 0.000000e+00 : f32
    %150 = vector.broadcast %cst_58 : f32 to vector<2x128xf32>
    %151 = vector.extract_strided_slice %139 {offsets = [0, 0], sizes = [2, 32], strides = [1, 1]} : vector<2x128xbf16> to vector<2x32xbf16>
    %152 = vector.extract_strided_slice %147 {offsets = [0, 0], sizes = [16, 32], strides = [1, 1]} : vector<16x128xbf16> to vector<16x32xbf16>
    %cst_59 = arith.constant dense<0.000000e+00> : vector<2x16xf32>
    %153 = tpu.matmul %151, %152, %cst_59 {dimension_numbers = #tpu.dot_dimension_numbers<[1], [1], [0], [0], [0, 0, 1, 0], [], []>} : vector<2x32xbf16>, vector<16x32xbf16>, vector<2x16xf32> -> vector<2x16xf32>
    %cst_60 = arith.constant dense<0xFF800000> : vector<2xf32>
    %154 = vector.multi_reduction <maximumf>, %153, %cst_60 [1] : vector<2x16xf32> to vector<2xf32>
    %155 = vector.shape_cast %154 : vector<2xf32> to vector<2x1xf32>
    %156 = vector.broadcast %155 : vector<2x1xf32> to vector<2x16xf32>
    %157 = arith.subf %153, %156 : vector<2x16xf32>
    %158 = math.exp %157 : vector<2x16xf32>
    %cst_61 = arith.constant dense<0.000000e+00> : vector<2xf32>
    %159 = vector.multi_reduction <add>, %158, %cst_61 [1] : vector<2x16xf32> to vector<2xf32>
    %160 = vector.shape_cast %159 : vector<2xf32> to vector<2x1xf32>
    %161 = vector.broadcast %160 : vector<2x1xf32> to vector<2x16xf32>
    %162 = arith.divf %158, %161 : vector<2x16xf32>
    %163 = arith.truncf %162 : vector<2x16xf32> to vector<2x16xbf16>
    %164 = vector.extract_strided_slice %149 {offsets = [0, 0], sizes = [16, 32], strides = [1, 1]} : vector<16x128xbf16> to vector<16x32xbf16>
    %cst_62 = arith.constant dense<0.000000e+00> : vector<2x32xf32>
    %165 = tpu.matmul %163, %164, %cst_62 {dimension_numbers = #tpu.dot_dimension_numbers<[1], [0], [0], [1], [0, 0, 1, 1], [], []>} : vector<2x16xbf16>, vector<16x32xbf16>, vector<2x32xf32> -> vector<2x32xf32>
    %166 = arith.truncf %165 : vector<2x32xf32> to vector<2x32xbf16>
    %c0_63 = arith.constant 0 : index
    %c0_64 = arith.constant 0 : index
    %167 = vector.load %arg13[%c0_63, %c0_64] : memref<128x128xbf16, #tpu.memory_space<vmem>>, vector<32x128xbf16>
    %cst_65 = arith.constant dense<0.000000e+00> : vector<2x128xf32>
    %168 = tpu.matmul %166, %167, %cst_65 {dimension_numbers = #tpu.dot_dimension_numbers<[1], [0], [0], [1], [0, 0, 1, 1], [], []>} : vector<2x32xbf16>, vector<32x128xbf16>, vector<2x128xf32> -> vector<2x128xf32>
    %169 = arith.addf %150, %168 : vector<2x128xf32>
    %170 = vector.extract_strided_slice %139 {offsets = [0, 32], sizes = [2, 32], strides = [1, 1]} : vector<2x128xbf16> to vector<2x32xbf16>
    %171 = vector.extract_strided_slice %147 {offsets = [0, 32], sizes = [16, 32], strides = [1, 1]} : vector<16x128xbf16> to vector<16x32xbf16>
    %cst_66 = arith.constant dense<0.000000e+00> : vector<2x16xf32>
    %172 = tpu.matmul %170, %171, %cst_66 {dimension_numbers = #tpu.dot_dimension_numbers<[1], [1], [0], [0], [0, 0, 1, 0], [], []>} : vector<2x32xbf16>, vector<16x32xbf16>, vector<2x16xf32> -> vector<2x16xf32>
    %cst_67 = arith.constant dense<0xFF800000> : vector<2xf32>
    %173 = vector.multi_reduction <maximumf>, %172, %cst_67 [1] : vector<2x16xf32> to vector<2xf32>
    %174 = vector.shape_cast %173 : vector<2xf32> to vector<2x1xf32>
    %175 = vector.broadcast %174 : vector<2x1xf32> to vector<2x16xf32>
    %176 = arith.subf %172, %175 : vector<2x16xf32>
    %177 = math.exp %176 : vector<2x16xf32>
    %cst_68 = arith.constant dense<0.000000e+00> : vector<2xf32>
    %178 = vector.multi_reduction <add>, %177, %cst_68 [1] : vector<2x16xf32> to vector<2xf32>
    %179 = vector.shape_cast %178 : vector<2xf32> to vector<2x1xf32>
    %180 = vector.broadcast %179 : vector<2x1xf32> to vector<2x16xf32>
    %181 = arith.divf %177, %180 : vector<2x16xf32>
    %182 = arith.truncf %181 : vector<2x16xf32> to vector<2x16xbf16>
    %183 = vector.extract_strided_slice %149 {offsets = [0, 32], sizes = [16, 32], strides = [1, 1]} : vector<16x128xbf16> to vector<16x32xbf16>
    %cst_69 = arith.constant dense<0.000000e+00> : vector<2x32xf32>
    %184 = tpu.matmul %182, %183, %cst_69 {dimension_numbers = #tpu.dot_dimension_numbers<[1], [0], [0], [1], [0, 0, 1, 1], [], []>} : vector<2x16xbf16>, vector<16x32xbf16>, vector<2x32xf32> -> vector<2x32xf32>
    %185 = arith.truncf %184 : vector<2x32xf32> to vector<2x32xbf16>
    %c32_70 = arith.constant 32 : index
    %c0_71 = arith.constant 0 : index
    %186 = vector.load %arg13[%c32_70, %c0_71] : memref<128x128xbf16, #tpu.memory_space<vmem>>, vector<32x128xbf16>
    %cst_72 = arith.constant dense<0.000000e+00> : vector<2x128xf32>
    %187 = tpu.matmul %185, %186, %cst_72 {dimension_numbers = #tpu.dot_dimension_numbers<[1], [0], [0], [1], [0, 0, 1, 1], [], []>} : vector<2x32xbf16>, vector<32x128xbf16>, vector<2x128xf32> -> vector<2x128xf32>
    %188 = arith.addf %169, %187 : vector<2x128xf32>
    %189 = vector.extract_strided_slice %139 {offsets = [0, 64], sizes = [2, 32], strides = [1, 1]} : vector<2x128xbf16> to vector<2x32xbf16>
    %190 = vector.extract_strided_slice %147 {offsets = [0, 64], sizes = [16, 32], strides = [1, 1]} : vector<16x128xbf16> to vector<16x32xbf16>
    %cst_73 = arith.constant dense<0.000000e+00> : vector<2x16xf32>
    %191 = tpu.matmul %189, %190, %cst_73 {dimension_numbers = #tpu.dot_dimension_numbers<[1], [1], [0], [0], [0, 0, 1, 0], [], []>} : vector<2x32xbf16>, vector<16x32xbf16>, vector<2x16xf32> -> vector<2x16xf32>
    %cst_74 = arith.constant dense<0xFF800000> : vector<2xf32>
    %192 = vector.multi_reduction <maximumf>, %191, %cst_74 [1] : vector<2x16xf32> to vector<2xf32>
    %193 = vector.shape_cast %192 : vector<2xf32> to vector<2x1xf32>
    %194 = vector.broadcast %193 : vector<2x1xf32> to vector<2x16xf32>
    %195 = arith.subf %191, %194 : vector<2x16xf32>
    %196 = math.exp %195 : vector<2x16xf32>
    %cst_75 = arith.constant dense<0.000000e+00> : vector<2xf32>
    %197 = vector.multi_reduction <add>, %196, %cst_75 [1] : vector<2x16xf32> to vector<2xf32>
    %198 = vector.shape_cast %197 : vector<2xf32> to vector<2x1xf32>
    %199 = vector.broadcast %198 : vector<2x1xf32> to vector<2x16xf32>
    %200 = arith.divf %196, %199 : vector<2x16xf32>
    %201 = arith.truncf %200 : vector<2x16xf32> to vector<2x16xbf16>
    %202 = vector.extract_strided_slice %149 {offsets = [0, 64], sizes = [16, 32], strides = [1, 1]} : vector<16x128xbf16> to vector<16x32xbf16>
    %cst_76 = arith.constant dense<0.000000e+00> : vector<2x32xf32>
    %203 = tpu.matmul %201, %202, %cst_76 {dimension_numbers = #tpu.dot_dimension_numbers<[1], [0], [0], [1], [0, 0, 1, 1], [], []>} : vector<2x16xbf16>, vector<16x32xbf16>, vector<2x32xf32> -> vector<2x32xf32>
    %204 = arith.truncf %203 : vector<2x32xf32> to vector<2x32xbf16>
    %c64_77 = arith.constant 64 : index
    %c0_78 = arith.constant 0 : index
    %205 = vector.load %arg13[%c64_77, %c0_78] : memref<128x128xbf16, #tpu.memory_space<vmem>>, vector<32x128xbf16>
    %cst_79 = arith.constant dense<0.000000e+00> : vector<2x128xf32>
    %206 = tpu.matmul %204, %205, %cst_79 {dimension_numbers = #tpu.dot_dimension_numbers<[1], [0], [0], [1], [0, 0, 1, 1], [], []>} : vector<2x32xbf16>, vector<32x128xbf16>, vector<2x128xf32> -> vector<2x128xf32>
    %207 = arith.addf %188, %206 : vector<2x128xf32>
    %208 = vector.extract_strided_slice %139 {offsets = [0, 96], sizes = [2, 32], strides = [1, 1]} : vector<2x128xbf16> to vector<2x32xbf16>
    %209 = vector.extract_strided_slice %147 {offsets = [0, 96], sizes = [16, 32], strides = [1, 1]} : vector<16x128xbf16> to vector<16x32xbf16>
    %cst_80 = arith.constant dense<0.000000e+00> : vector<2x16xf32>
    %210 = tpu.matmul %208, %209, %cst_80 {dimension_numbers = #tpu.dot_dimension_numbers<[1], [1], [0], [0], [0, 0, 1, 0], [], []>} : vector<2x32xbf16>, vector<16x32xbf16>, vector<2x16xf32> -> vector<2x16xf32>
    %cst_81 = arith.constant dense<0xFF800000> : vector<2xf32>
    %211 = vector.multi_reduction <maximumf>, %210, %cst_81 [1] : vector<2x16xf32> to vector<2xf32>
    %212 = vector.shape_cast %211 : vector<2xf32> to vector<2x1xf32>
    %213 = vector.broadcast %212 : vector<2x1xf32> to vector<2x16xf32>
    %214 = arith.subf %210, %213 : vector<2x16xf32>
    %215 = math.exp %214 : vector<2x16xf32>
    %cst_82 = arith.constant dense<0.000000e+00> : vector<2xf32>
    %216 = vector.multi_reduction <add>, %215, %cst_82 [1] : vector<2x16xf32> to vector<2xf32>
    %217 = vector.shape_cast %216 : vector<2xf32> to vector<2x1xf32>
    %218 = vector.broadcast %217 : vector<2x1xf32> to vector<2x16xf32>
    %219 = arith.divf %215, %218 : vector<2x16xf32>
    %220 = arith.truncf %219 : vector<2x16xf32> to vector<2x16xbf16>
    %221 = vector.extract_strided_slice %149 {offsets = [0, 96], sizes = [16, 32], strides = [1, 1]} : vector<16x128xbf16> to vector<16x32xbf16>
    %cst_83 = arith.constant dense<0.000000e+00> : vector<2x32xf32>
    %222 = tpu.matmul %220, %221, %cst_83 {dimension_numbers = #tpu.dot_dimension_numbers<[1], [0], [0], [1], [0, 0, 1, 1], [], []>} : vector<2x16xbf16>, vector<16x32xbf16>, vector<2x32xf32> -> vector<2x32xf32>
    %223 = arith.truncf %222 : vector<2x32xf32> to vector<2x32xbf16>
    %c96_84 = arith.constant 96 : index
    %c0_85 = arith.constant 0 : index
    %224 = vector.load %arg13[%c96_84, %c0_85] : memref<128x128xbf16, #tpu.memory_space<vmem>>, vector<32x128xbf16>
    %cst_86 = arith.constant dense<0.000000e+00> : vector<2x128xf32>
    %225 = tpu.matmul %223, %224, %cst_86 {dimension_numbers = #tpu.dot_dimension_numbers<[1], [0], [0], [1], [0, 0, 1, 1], [], []>} : vector<2x32xbf16>, vector<32x128xbf16>, vector<2x128xf32> -> vector<2x128xf32>
    %226 = arith.addf %207, %225 : vector<2x128xf32>
    %227 = arith.addf %130, %226 : vector<2x128xf32>
    %c0_87 = arith.constant 0 : index
    %c0_88 = arith.constant 0 : index
    %228 = vector.load %arg14[%c0_87, %c0_88] : memref<1x128xf32, #tpu.memory_space<vmem>>, vector<1x128xf32>
    %229 = vector.broadcast %228 : vector<1x128xf32> to vector<2x128xf32>
    %230 = arith.addf %227, %229 : vector<2x128xf32>
    %c0_89 = arith.constant 0 : index
    %c0_90 = arith.constant 0 : index
    %231 = vector.load %arg15[%c0_89, %c0_90] : memref<1x128xf32, #tpu.memory_space<vmem>>, vector<1x128xf32>
    %c0_91 = arith.constant 0 : index
    %c0_92 = arith.constant 0 : index
    %232 = vector.load %arg16[%c0_91, %c0_92] : memref<1x128xf32, #tpu.memory_space<vmem>>, vector<1x128xf32>
    %cst_93 = arith.constant dense<0.000000e+00> : vector<2xf32>
    %233 = vector.multi_reduction <add>, %230, %cst_93 [1] : vector<2x128xf32> to vector<2xf32>
    %234 = vector.shape_cast %233 : vector<2xf32> to vector<2x1xf32>
    %cst_94 = arith.constant 1.280000e+02 : f32
    %235 = vector.broadcast %cst_94 : f32 to vector<2x1xf32>
    %236 = arith.divf %234, %235 : vector<2x1xf32>
    %237 = vector.broadcast %236 : vector<2x1xf32> to vector<2x128xf32>
    %238 = arith.subf %230, %237 : vector<2x128xf32>
    %239 = arith.mulf %238, %238 : vector<2x128xf32>
    %cst_95 = arith.constant dense<0.000000e+00> : vector<2xf32>
    %240 = vector.multi_reduction <add>, %239, %cst_95 [1] : vector<2x128xf32> to vector<2xf32>
    %241 = vector.shape_cast %240 : vector<2xf32> to vector<2x1xf32>
    %cst_96 = arith.constant 1.280000e+02 : f32
    %242 = vector.broadcast %cst_96 : f32 to vector<2x1xf32>
    %243 = arith.divf %241, %242 : vector<2x1xf32>
    %244 = vector.broadcast %236 : vector<2x1xf32> to vector<2x128xf32>
    %245 = arith.subf %230, %244 : vector<2x128xf32>
    %cst_97 = arith.constant 9.99999974E-6 : f32
    %246 = vector.broadcast %cst_97 : f32 to vector<2x1xf32>
    %247 = arith.addf %243, %246 : vector<2x1xf32>
    %248 = math.rsqrt %247 : vector<2x1xf32>
    %249 = vector.broadcast %248 : vector<2x1xf32> to vector<2x128xf32>
    %250 = arith.mulf %245, %249 : vector<2x128xf32>
    %251 = vector.broadcast %231 : vector<1x128xf32> to vector<2x128xf32>
    %252 = arith.mulf %250, %251 : vector<2x128xf32>
    %253 = vector.broadcast %232 : vector<1x128xf32> to vector<2x128xf32>
    %254 = arith.addf %252, %253 : vector<2x128xf32>
    %255 = tpu.iota {dimensions = array<i32: 1>} : vector<2x8x128xi32>
    %256 = vector.shape_cast %254 : vector<2x128xf32> to vector<2x1x128xf32>
    %257 = vector.shape_cast %256 : vector<2x1x128xf32> to vector<2x1x128xf32>
    %258 = vector.broadcast %257 : vector<2x1x128xf32> to vector<2x8x128xf32>
    %c7_i32 = arith.constant 7 : i32
    %259 = vector.broadcast %c7_i32 : i32 to vector<2x8x128xi32>
    %260 = arith.cmpi eq, %255, %259 : vector<2x8x128xi32>
    %261 = arith.select %260, %258, %128 : vector<2x8x128xi1>, vector<2x8x128xf32>
    %262 = vector.shape_cast %261 : vector<2x8x128xf32> to vector<16x128xf32>
    %263 = arith.truncf %262 : vector<16x128xf32> to vector<16x128xbf16>
    %c0_98 = arith.constant 0 : index
    %c0_99 = arith.constant 0 : index
    %264 = vector.load %arg17[%c0_98, %c0_99] : memref<128x256xbf16, #tpu.memory_space<vmem>>, vector<128x256xbf16>
    %cst_100 = arith.constant dense<0.000000e+00> : vector<16x256xf32>
    %265 = tpu.matmul %263, %264, %cst_100 {dimension_numbers = #tpu.dot_dimension_numbers<[1], [0], [0], [1], [0, 0, 1, 1], [], []>} : vector<16x128xbf16>, vector<128x256xbf16>, vector<16x256xf32> -> vector<16x256xf32>
    %c0_101 = arith.constant 0 : index
    %c0_102 = arith.constant 0 : index
    %266 = vector.load %arg18[%c0_101, %c0_102] : memref<1x256xf32, #tpu.memory_space<vmem>>, vector<1x256xf32>
    %267 = vector.broadcast %266 : vector<1x256xf32> to vector<16x256xf32>
    %268 = arith.addf %265, %267 : vector<16x256xf32>
    %cst_103 = arith.constant 0.000000e+00 : f32
    %269 = vector.broadcast %cst_103 : f32 to vector<16x256xf32>
    %270 = arith.maximumf %268, %269 : vector<16x256xf32>
    %271 = arith.truncf %270 : vector<16x256xf32> to vector<16x256xbf16>
    %c0_104 = arith.constant 0 : index
    %c0_105 = arith.constant 0 : index
    %272 = vector.load %arg19[%c0_104, %c0_105] : memref<256x128xbf16, #tpu.memory_space<vmem>>, vector<256x128xbf16>
    %cst_106 = arith.constant dense<0.000000e+00> : vector<16x128xf32>
    %273 = tpu.matmul %271, %272, %cst_106 {dimension_numbers = #tpu.dot_dimension_numbers<[1], [0], [0], [1], [0, 0, 1, 1], [], []>} : vector<16x256xbf16>, vector<256x128xbf16>, vector<16x128xf32> -> vector<16x128xf32>
    %c0_107 = arith.constant 0 : index
    %c0_108 = arith.constant 0 : index
    %274 = vector.load %arg20[%c0_107, %c0_108] : memref<1x128xf32, #tpu.memory_space<vmem>>, vector<1x128xf32>
    %275 = vector.broadcast %274 : vector<1x128xf32> to vector<16x128xf32>
    %276 = arith.addf %273, %275 : vector<16x128xf32>
    %277 = arith.addf %262, %276 : vector<16x128xf32>
    %c0_109 = arith.constant 0 : index
    %c0_110 = arith.constant 0 : index
    %278 = vector.load %arg21[%c0_109, %c0_110] : memref<1x128xf32, #tpu.memory_space<vmem>>, vector<1x128xf32>
    %c0_111 = arith.constant 0 : index
    %c0_112 = arith.constant 0 : index
    %279 = vector.load %arg22[%c0_111, %c0_112] : memref<1x128xf32, #tpu.memory_space<vmem>>, vector<1x128xf32>
    %cst_113 = arith.constant dense<0.000000e+00> : vector<16xf32>
    %280 = vector.multi_reduction <add>, %277, %cst_113 [1] : vector<16x128xf32> to vector<16xf32>
    %281 = vector.shape_cast %280 : vector<16xf32> to vector<16x1xf32>
    %cst_114 = arith.constant 1.280000e+02 : f32
    %282 = vector.broadcast %cst_114 : f32 to vector<16x1xf32>
    %283 = arith.divf %281, %282 : vector<16x1xf32>
    %284 = vector.broadcast %283 : vector<16x1xf32> to vector<16x128xf32>
    %285 = arith.subf %277, %284 : vector<16x128xf32>
    %286 = arith.mulf %285, %285 : vector<16x128xf32>
    %cst_115 = arith.constant dense<0.000000e+00> : vector<16xf32>
    %287 = vector.multi_reduction <add>, %286, %cst_115 [1] : vector<16x128xf32> to vector<16xf32>
    %288 = vector.shape_cast %287 : vector<16xf32> to vector<16x1xf32>
    %cst_116 = arith.constant 1.280000e+02 : f32
    %289 = vector.broadcast %cst_116 : f32 to vector<16x1xf32>
    %290 = arith.divf %288, %289 : vector<16x1xf32>
    %291 = vector.broadcast %283 : vector<16x1xf32> to vector<16x128xf32>
    %292 = arith.subf %277, %291 : vector<16x128xf32>
    %cst_117 = arith.constant 9.99999974E-6 : f32
    %293 = vector.broadcast %cst_117 : f32 to vector<16x1xf32>
    %294 = arith.addf %290, %293 : vector<16x1xf32>
    %295 = math.rsqrt %294 : vector<16x1xf32>
    %296 = vector.broadcast %295 : vector<16x1xf32> to vector<16x128xf32>
    %297 = arith.mulf %292, %296 : vector<16x128xf32>
    %298 = vector.broadcast %278 : vector<1x128xf32> to vector<16x128xf32>
    %299 = arith.mulf %297, %298 : vector<16x128xf32>
    %300 = vector.broadcast %279 : vector<1x128xf32> to vector<16x128xf32>
    %301 = arith.addf %299, %300 : vector<16x128xf32>
    %302 = vector.shape_cast %301 : vector<16x128xf32> to vector<2x8x128xf32>
    %c0_118 = arith.constant 0 : index
    %c0_119 = arith.constant 0 : index
    %c0_120 = arith.constant 0 : index
    %303 = vector.load %arg23[%c0_118, %c0_119, %c0_120] : memref<2x8x128xf32, #tpu.memory_space<vmem>>, vector<2x8x128xf32>
    tpu.vector_store %arg23[%c0_118, %c0_119, %c0_120], %302 {strides = array<i32>} : memref<2x8x128xf32, #tpu.memory_space<vmem>>, vector<2x8x128xf32>,
    return
  }
  func.func @transform_0(%arg0: i32) -> (i32, i32, i32) {
    %c0_i32 = arith.constant 0 : i32
    %c0_i32_0 = arith.constant 0 : i32
    %c0_i32_1 = arith.constant 0 : i32
    return %arg0, %c0_i32, %c0_i32_0 : i32, i32, i32
  }
  func.func @transform_1(%arg0: i32) -> (i32, i32, i32) {
    %c0_i32 = arith.constant 0 : i32
    %c0_i32_0 = arith.constant 0 : i32
    %c0_i32_1 = arith.constant 0 : i32
    return %arg0, %c0_i32, %c0_i32_0 : i32, i32, i32
  }
  func.func @transform_2(%arg0: i32) -> (i32, i32) {
    %c0_i32 = arith.constant 0 : i32
    %c0_i32_0 = arith.constant 0 : i32
    %c0_i32_1 = arith.constant 0 : i32
    return %c0_i32, %c0_i32_0 : i32, i32
  }
  func.func @transform_3(%arg0: i32) -> (i32, i32) {
    %c0_i32 = arith.constant 0 : i32
    %c0_i32_0 = arith.constant 0 : i32
    %c0_i32_1 = arith.constant 0 : i32
    return %c0_i32, %c0_i32_0 : i32, i32
  }
  func.func @transform_4(%arg0: i32) -> (i32, i32) {
    %c0_i32 = arith.constant 0 : i32
    %c0_i32_0 = arith.constant 0 : i32
    %c0_i32_1 = arith.constant 0 : i32
    return %c0_i32, %c0_i32_0 : i32, i32
  }
  func.func @transform_5(%arg0: i32) -> (i32, i32) {
    %c0_i32 = arith.constant 0 : i32
    %c0_i32_0 = arith.constant 0 : i32
    %c0_i32_1 = arith.constant 0 : i32
    return %c0_i32, %c0_i32_0 : i32, i32
  }
  func.func @transform_6(%arg0: i32) -> (i32, i32) {
    %c0_i32 = arith.constant 0 : i32
    %c0_i32_0 = arith.constant 0 : i32
    %c0_i32_1 = arith.constant 0 : i32
    return %c0_i32, %c0_i32_0 : i32, i32
  }
  func.func @transform_7(%arg0: i32) -> (i32, i32) {
    %c0_i32 = arith.constant 0 : i32
    %c0_i32_0 = arith.constant 0 : i32
    %c0_i32_1 = arith.constant 0 : i32
    return %c0_i32, %c0_i32_0 : i32, i32
  }
  func.func @transform_8(%arg0: i32) -> (i32, i32) {
    %c0_i32 = arith.constant 0 : i32
    %c0_i32_0 = arith.constant 0 : i32
    %c0_i32_1 = arith.constant 0 : i32
    return %c0_i32, %c0_i32_0 : i32, i32
  }
  func.func @transform_9(%arg0: i32) -> (i32, i32) {
    %c0_i32 = arith.constant 0 : i32
    %c0_i32_0 = arith.constant 0 : i32
    %c0_i32_1 = arith.constant 0 : i32
    return %c0_i32, %c0_i32_0 : i32, i32
  }
  func.func @transform_10(%arg0: i32) -> (i32, i32) {
    %c0_i32 = arith.constant 0 : i32
    %c0_i32_0 = arith.constant 0 : i32
    %c0_i32_1 = arith.constant 0 : i32
    return %c0_i32, %c0_i32_0 : i32, i32
  }
  func.func @transform_11(%arg0: i32) -> (i32, i32) {
    %c0_i32 = arith.constant 0 : i32
    %c0_i32_0 = arith.constant 0 : i32
    %c0_i32_1 = arith.constant 0 : i32
    return %c0_i32, %c0_i32_0 : i32, i32
  }
  func.func @transform_12(%arg0: i32) -> (i32, i32) {
    %c0_i32 = arith.constant 0 : i32
    %c0_i32_0 = arith.constant 0 : i32
    %c0_i32_1 = arith.constant 0 : i32
    return %c0_i32, %c0_i32_0 : i32, i32
  }
  func.func @transform_13(%arg0: i32) -> (i32, i32) {
    %c0_i32 = arith.constant 0 : i32
    %c0_i32_0 = arith.constant 0 : i32
    %c0_i32_1 = arith.constant 0 : i32
    return %c0_i32, %c0_i32_0 : i32, i32
  }
  func.func @transform_14(%arg0: i32) -> (i32, i32) {
    %c0_i32 = arith.constant 0 : i32
    %c0_i32_0 = arith.constant 0 : i32
    %c0_i32_1 = arith.constant 0 : i32
    return %c0_i32, %c0_i32_0 : i32, i32
  }
  func.func @transform_15(%arg0: i32) -> (i32, i32) {
    %c0_i32 = arith.constant 0 : i32
    %c0_i32_0 = arith.constant 0 : i32
    %c0_i32_1 = arith.constant 0 : i32
    return %c0_i32, %c0_i32_0 : i32, i32
  }
  func.func @transform_16(%arg0: i32) -> (i32, i32) {
    %c0_i32 = arith.constant 0 : i32
    %c0_i32_0 = arith.constant 0 : i32
    %c0_i32_1 = arith.constant 0 : i32
    return %c0_i32, %c0_i32_0 : i32, i32
  }
  func.func @transform_17(%arg0: i32) -> (i32, i32) {
    %c0_i32 = arith.constant 0 : i32
    %c0_i32_0 = arith.constant 0 : i32
    %c0_i32_1 = arith.constant 0 : i32
    return %c0_i32, %c0_i32_0 : i32, i32
  }
  func.func @transform_18(%arg0: i32) -> (i32, i32) {
    %c0_i32 = arith.constant 0 : i32
    %c0_i32_0 = arith.constant 0 : i32
    %c0_i32_1 = arith.constant 0 : i32
    return %c0_i32, %c0_i32_0 : i32, i32
  }
  func.func @transform_19(%arg0: i32) -> (i32, i32) {
    %c0_i32 = arith.constant 0 : i32
    %c0_i32_0 = arith.constant 0 : i32
    %c0_i32_1 = arith.constant 0 : i32
    return %c0_i32, %c0_i32_0 : i32, i32
  }
  func.func @transform_20(%arg0: i32) -> (i32, i32) {
    %c0_i32 = arith.constant 0 : i32
    %c0_i32_0 = arith.constant 0 : i32
    %c0_i32_1 = arith.constant 0 : i32
    return %c0_i32, %c0_i32_0 : i32, i32
  }
  func.func @transform_21(%arg0: i32) -> (i32, i32) {
    %c0_i32 = arith.constant 0 : i32
    %c0_i32_0 = arith.constant 0 : i32
    %c0_i32_1 = arith.constant 0 : i32
    return %c0_i32, %c0_i32_0 : i32, i32
  }
  func.func @transform_22(%arg0: i32) -> (i32, i32, i32) {
    %c0_i32 = arith.constant 0 : i32
    %c0_i32_0 = arith.constant 0 : i32
    %c0_i32_1 = arith.constant 0 : i32
    return %arg0, %c0_i32, %c0_i32_0 : i32, i32, i32
  }
}

</mosaic_0001>

<bundles_post_ra>
// kernel: encoder_layer_forward.1
= control target key start
LH: loop header
LB: loop body
LE: loop exit
PB: predicated region body
PF: predicated region fallthrough
CT: control target
= control target key end

     0   :  { %s6577_s0 = inlined_call_operand.vmem [shape: f32[4,8,128], index: 0, kind: input, shape index: {}]   ;;  %s6578_s1 = inlined_call_operand.hbm [shape: f32[2,16,128], index: 1, kind: input, shape index: {}]   ;;  %s6579_s2 = inlined_call_operand.hbm [shape: bf16[128,384], index: 2, kind: input, shape index: {}]   ;;  %s6580_s3 = inlined_call_operand.vmem [shape: f32[1,384], index: 3, kind: input, shape index: {}]   ;;  %s6581_s4 = inlined_call_operand.hbm [shape: bf16[128,128], index: 4, kind: input, shape index: {}]   ;;  %s6582_s5 = inlined_call_operand.vmem [shape: f32[1,128], index: 5, kind: input, shape index: {}]   ;;  %s6583_s6 = inlined_call_operand.hbm [shape: f32[1,128], index: 6, kind: input, shape index: {}]   ;;  %s6584_s7 = inlined_call_operand.hbm [shape: f32[1,128], index: 7, kind: input, shape index: {}]   ;;  %s6585_s8 = inlined_call_operand.hbm [shape: bf16[128,128], index: 8, kind: input, shape index: {}]   ;;  %s6586_s9 = inlined_call_operand.hbm [shape: f32[1,128], index: 9, kind: input, shape index: {}]   ;;  %s6587_s10 = inlined_call_operand.hbm [shape: bf16[128,256], index: 10, kind: input, shape index: {}]   ;;  %s6588_s11 = inlined_call_operand.hbm [shape: f32[1,256], index: 11, kind: input, shape index: {}]   ;;  %s6589_s12 = inlined_call_operand.hbm [shape: bf16[128,128], index: 12, kind: input, shape index: {}]   ;;  %s6590_s13 = inlined_call_operand.hbm [shape: f32[1,128], index: 13, kind: input, shape index: {}]   ;;  %s6591_s14 = inlined_call_operand.hbm [shape: f32[1,128], index: 14, kind: input, shape index: {}]   ;;  %s6592_s15 = inlined_call_operand.hbm [shape: f32[1,128], index: 15, kind: input, shape index: {}]   ;;  %s6593_s16 = inlined_call_operand.hbm [shape: bf16[128,256], index: 16, kind: input, shape index: {}]   ;;  %s6594_s17 = inlined_call_operand.hbm [shape: f32[1,256], index: 17, kind: input, shape index: {}]   ;;  %s6595_s18 = inlined_call_operand.hbm [shape: bf16[256,128], index: 18, kind: input, shape index: {}]   ;;  %s6596_s19 = inlined_call_operand.hbm [shape: f32[1,128], index: 19, kind: input, shape index: {}]   ;;  %s6597_s20 = inlined_call_operand.hbm [shape: f32[1,128], index: 20, kind: input, shape index: {}]   ;;  %s6598_s21 = inlined_call_operand.hbm [shape: f32[1,128], index: 21, kind: input, shape index: {}]   ;;  %s6599_s22 = inlined_call_operand.hbm [shape: f32[4,8,128], index: 22, kind: output, shape index: {}]  }
   0x1   :  { %6616 = sst [smem:[#allocation49_spill]] %s6577_s0 }
   0x2   :  { %6617 = sst [smem:[#allocation50_spill]] %s6578_s1 }
   0x3   :  { %6618 = sst [smem:[#allocation51_spill]] %s6579_s2 }
   0x4   :  { %6619 = sst [smem:[#allocation52_spill]] %s6580_s3 }
   0x5   :  { %6620 = sst [smem:[#allocation53_spill]] %s6581_s4 }
   0x6   :  { %6621 = sst [smem:[#allocation54_spill]] %s6582_s5 }
   0x7   :  { %6622 = sst [smem:[#allocation55_spill]] %s6583_s6 }
   0x8   :  { %6623 = sst [smem:[#allocation56_spill]] %s6584_s7 }
   0x9   :  { %6624 = sst [smem:[#allocation57_spill]] %s6585_s8 }
   0xa   :  { %6625 = sst [smem:[#allocation58_spill]] %s6586_s9 }
   0xb   :  { %6626 = sst [smem:[#allocation59_spill]] %s6587_s10 }
   0xc   :  { %6627 = sst [smem:[#allocation60_spill]] %s6599_s22 }
   0xd   :  { %27 = vsyncpa [#allocation3], 0 }
   0xe   :  { %29 = vsyncpa [#allocation3 + $0x1], 0 }
   0xf   :  { %30 = vsyncpa [#allocation6], 0 }
  0x10   :  { %31 = vsyncpa [#allocation9], 0 }
  0x11   :  { %32 = vsyncpa [#allocation12], 0 }
  0x12   :  { %33 = vsyncpa [#allocation15], 0 }
  0x13   :  { %34 = vsyncpa [#allocation18], 0 }
  0x14   :  { %35 = vsyncpa [#allocation21], 0 }
  0x15   :  { %36 = vsyncpa [#allocation24], 0 }
  0x16   :  { %37 = vsyncpa [#allocation27], 0 }
  0x17   :  { %38 = vsyncpa [#allocation30], 0 }
  0x18   :  { %39 = vsyncpa [#allocation4], 0 }
  0x19   :  { %41 = vsyncpa [#allocation4 + $0x1], 0  ;;  %s5830_s3 = smov 0   ;;  %s5832_s28 = smov 0  }
  0x1a   :  { %s5834_s29 = smov 0   ;;  %s5836_s30 = smov 0  }
  0x1b LB: > { %6628 = sst [smem:[#allocation44_spill]] %s5667_s3  ;;  %s5681_s4 = smov [#allocation5]   ;;  %s5679_s30 = sphi %s5836_s30, %s6691_s30   ;;  %s5675_s29 = sphi %s5834_s29, %s6690_s29   ;;  %s5671_s28 = sphi %s5832_s28, %s6689_s28   ;;  %s5667_s3 = sphi %s5830_s3, %s6688_s3  }
  0x1c   : > { %6629 = sst [smem:[#allocation45_spill]] %s5671_s28  ;;  %s562_s0 = sshll.u32 %s5681_s4, 4  ;;  %s563_s0 = int_to_ptr.vmem [resolvable:$true] %s562_s0 }
  0x1d   : > { %6630 = sst [smem:[#allocation46_spill]] %s5675_s29  ;;  %s5851_s23 = sadd.s32 4294967295, %s5679_s30  }
  0x1e   : > { %6631 = sst [smem:[#allocation47_spill]] %s5851_s23  ;;  %p4111_p0 = scmp.ge.s32.totalorder %s5679_s30, 1 }
  0x1f   : > { %p6608_p1 = scmp.eq.s32.totalorder %s5851_s23, 0  ;;  %p550_p2 = scmp.lt.s32.totalorder %s5679_s30, 3 }
  0x20   : > { %s5682_s5 = smov [#allocation8]   ;;  %s5683_s25 = smov [#allocation11]  }
  0x21   : > { %p5856_p3 = pnand %p4111_p0, %p550_p2  ;;  %s595_s24 = sshll.u32 %s5682_s5, 4  ;;  %s596_s24 = int_to_ptr.vmem [resolvable:$true] %s595_s24 }
  0x22   : > { %s616_s26 = sshll.u32 %s5683_s25, 4  ;;  %s5094_s27 = scalar_lea.vmem %s563_s0, 3072  ;;  %s617_s26 = int_to_ptr.vmem [resolvable:$true] %s616_s26 }
  0x23   : > { %s6632_s1 = scalar_select %p5856_p3, 1, 0 }
  0x24   : > { %p4738_p5 = pneg %p5856_p3  ;;  %p5095_p8 = scmp.ne.s32.totalorder %s563_s0, %s5094_s27 }
  0x25   : > { %6633 = sst [smem:[#allocation48_spill]] %s6632_s1  ;;  %p5102_p11 = scmp.lt.s32.totalorder %s563_s0, %s563_s0 }
  0x26   : > { %p5865_p6 = pnand %p4738_p5, %p6608_p1  ;;  %p5103_p12 = scmp.lt.s32.totalorder %s5094_s27, %s5094_s27 }
  0x28   : > { %p5871_p7 = pneg %p5865_p6  ;;  %p5104_p13 = por %p5103_p12, %p5102_p11 }
  0x2a   : > { %p5097_p9 = pnand %p5095_p8, %p5871_p7 }
  0x2c   : > { %p5098_p10 = pneg %p5097_p9 }
  0x2e   : > { %p5105_p0 = pnand %p5104_p13, %p5098_p10 }
  0x30   : > { %5108 = shalt.err (!%p5105_p0)
}
  0x31   : > { %s5684_s4 = smov 192   ;;  %s5685_s5 = smov 12  }
  0x32   : > { %s6636_s1 = sld [smem:[#allocation51_spill]]  ;;  %s5120_s23 = scalar_lea.vmem %s596_s24, 16 }
  0x33   : > { %p5121_p2 = scmp.ne.s32.totalorder %s596_s24, %s5120_s23  ;;  %s5127_s3 = scalar_lea.vmem %s596_s24, 32 }
  0x34   : > { %p5128_p9 = scmp.lt.s32.totalorder %s596_s24, %s596_s24  ;;  %p5129_p4 = scmp.lt.s32.totalorder %s5127_s3, %s5120_s23 }
  0x35   : > { %p5123_p5 = pnand %p5121_p2, %p5871_p7 }
  0x36   : > { %p5130_p11 = por %p5129_p4, %p5128_p9 }
  0x37   : > { %p5124_p8 = pneg %p5123_p5 }
  0x38   : > { %4741 = dma.hbm_to_vmem [thread:$0]  (!%p5865_p6), %s6636_s1, 3072, %s563_s0, [#allocation6], %s5684_s4, %s5684_s4, %s5685_s5  }
  0x39   : > { %p5131_p10 = pnand %p5130_p11, %p5124_p8 }
  0x3b   : > { %5134 = shalt.err (!%p5131_p10)
}
  0x3c   : > { %s6637_s29 = sld [smem:[#allocation55_spill]]  ;;  %s5146_s22 = scalar_lea.vmem %s617_s26, 1024 }
  0x3d   : > { %p5147_p12 = scmp.ne.s32.totalorder %s617_s26, %s5146_s22  ;;  %p5154_p2 = scmp.lt.s32.totalorder %s617_s26, %s617_s26 }
  0x3e   : > { %p5155_p5 = scmp.lt.s32.totalorder %s5146_s22, %s5146_s22 }
  0x3f   : > { %p5149_p13 = pnand %p5147_p12, %p5871_p7 }
  0x40   : > { %p5156_p1 = por %p5155_p5, %p5154_p2 }
  0x41   : > { %p5150_p0 = pneg %p5149_p13 }
  0x42   : > { %4747 = dma.hbm_to_vmem [thread:$0]  (!%p5865_p6), %s6637_s29, 16, %s596_s24, [#allocation9]  }
  0x43   : > { %p5157_p3 = pnand %p5156_p1, %p5150_p0 }
  0x45   : > { %5160 = shalt.err (!%p5157_p3)
}
  0x46   : > { %s6610_s3 = smov 64   ;;  %s5687_s0 = smov 4  }
  0x47   : > { %s6638_s8 = sld [smem:[#allocation57_spill]]  ;;  %s5688_s23 = smov [#allocation14]  }
  0x48   : > { %s640_s1 = sshll.u32 %s5688_s23, 4  ;;  %s641_s1 = int_to_ptr.vmem [resolvable:$true] %s640_s1 }
  0x49   : > { %s5172_s24 = scalar_lea.vmem %s641_s1, 2048  ;;  %p5180_p8 = scmp.lt.s32.totalorder %s641_s1, %s641_s1 }
  0x4a   : > { %p5173_p4 = scmp.ne.s32.totalorder %s641_s1, %s5172_s24  ;;  %p5181_p9 = scmp.lt.s32.totalorder %s5172_s24, %s5172_s24 }
  0x4c   : > { %p5175_p1 = pnand %p5173_p4, %p5871_p7  ;;  %p5182_p11 = por %p5181_p9, %p5180_p8 }
  0x4d   : > { %4753 = dma.hbm_to_vmem [thread:$0]  (!%p5865_p6), %s6638_s8, 1024, %s617_s26, [#allocation12], %s6610_s3, %s6610_s3, %s5687_s0  }
  0x4e   : > { %p5176_p3 = pneg %p5175_p1 }
  0x50   : > { %p5183_p10 = pnand %p5182_p11, %p5176_p3 }
  0x52   : > { %5186 = shalt.err (!%p5183_p10)
}
  0x53   : > { %s6612_s4 = smov 128   ;;  %s6613_s5 = smov 8  }
  0x54   : > { %s6639_s10 = sld [smem:[#allocation59_spill]]  ;;  %s5691_s27 = smov [#allocation17]  }
  0x55   : > { %s664_s22 = sshll.u32 %s5691_s27, 4  ;;  %s5692_s28 = smov [#allocation20]   ;;  %s665_s22 = int_to_ptr.vmem [resolvable:$true] %s664_s22 }
  0x56   : > { %s689_s29 = sshll.u32 %s5692_s28, 4  ;;  %s5198_s23 = scalar_lea.vmem %s665_s22, 1024  ;;  %s690_s29 = int_to_ptr.vmem [resolvable:$true] %s689_s29 }
  0x57   : > { %p5199_p12 = scmp.ne.s32.totalorder %s665_s22, %s5198_s23  ;;  %p5206_p2 = scmp.lt.s32.totalorder %s665_s22, %s665_s22 }
  0x58   : > { %p5207_p5 = scmp.lt.s32.totalorder %s5198_s23, %s5198_s23 }
  0x59   : > { %p5201_p13 = pnand %p5199_p12, %p5871_p7 }
  0x5a   : > { %4759 = dma.hbm_to_vmem [thread:$0]  (!%p5865_p6), %s6639_s10, 2048, %s641_s1, [#allocation15], %s6612_s4, %s6612_s4, %s6613_s5  }
  0x5b   : > { %p5202_p0 = pneg %p5201_p13  ;;  %p5208_p4 = por %p5207_p5, %p5206_p2 }
  0x5d   : > { %p5209_p1 = pnand %p5208_p4, %p5202_p0 }
  0x5f   : > { %5212 = shalt.err (!%p5209_p1)
}
  0x60   : > { %4765 = dma.hbm_to_vmem [thread:$0]  (!%p5865_p6), %s6589_s12, 1024, %s665_s22, [#allocation18], %s6610_s3, %s6610_s3, %s5687_s0  }
  0x61   : > { %s5224_s26 = scalar_lea.vmem %s690_s29, 16  ;;  %s5231_s25 = scalar_lea.vmem %s690_s29, 32 }
  0x62   : > { %p5225_p3 = scmp.ne.s32.totalorder %s690_s29, %s5224_s26  ;;  %p5232_p11 = scmp.lt.s32.totalorder %s690_s29, %s690_s29 }
  0x63   : > { %p5233_p10 = scmp.lt.s32.totalorder %s5231_s25, %s5224_s26 }
  0x64   : > { %p5227_p8 = pnand %p5225_p3, %p5871_p7 }
  0x65   : > { %p5234_p12 = por %p5233_p10, %p5232_p11 }
  0x66   : > { %p5228_p9 = pneg %p5227_p8 }
  0x68   : > { %p5235_p13 = pnand %p5234_p12, %p5228_p9 }
  0x6a   : > { %5238 = shalt.err (!%p5235_p13)
}
  0x6b   : > { %4771 = dma.hbm_to_vmem [thread:$0]  (!%p5865_p6), %s6591_s14, 16, %s690_s29, [#allocation21]  }
  0x6c   : > { %s5693_s23 = smov [#allocation23]   ;;  %s5694_s1 = smov [#allocation26]  }
  0x6d   : > { %s710_s22 = sshll.u32 %s5693_s23, 4  ;;  %s734_s24 = sshll.u32 %s5694_s1, 4  ;;  %s711_s22 = int_to_ptr.vmem [resolvable:$true] %s710_s22  ;;  %s735_s24 = int_to_ptr.vmem [resolvable:$true] %s734_s24 }
  0x6e   : > { %s5250_s3 = scalar_lea.vmem %s711_s22, 2048  ;;  %p5258_p4 = scmp.lt.s32.totalorder %s711_s22, %s711_s22 }
  0x6f   : > { %p5251_p0 = scmp.ne.s32.totalorder %s711_s22, %s5250_s3  ;;  %p5259_p1 = scmp.lt.s32.totalorder %s5250_s3, %s5250_s3 }
  0x71   : > { %p5253_p2 = pnand %p5251_p0, %p5871_p7  ;;  %p5260_p3 = por %p5259_p1, %p5258_p4 }
  0x73   : > { %p5254_p5 = pneg %p5253_p2 }
  0x75   : > { %p5261_p8 = pnand %p5260_p3, %p5254_p5 }
  0x77   : > { %5264 = shalt.err (!%p5261_p8)
}
  0x78   : > { %4777 = dma.hbm_to_vmem [thread:$0]  (!%p5865_p6), %s6593_s16, 2048, %s711_s22, [#allocation24], %s6612_s4, %s6612_s4, %s6613_s5  }
  0x79   : > { %s5276_s25 = scalar_lea.vmem %s735_s24, 2048  ;;  %p5284_p12 = scmp.lt.s32.totalorder %s735_s24, %s735_s24 }
  0x7a   : > { %p5277_p9 = scmp.ne.s32.totalorder %s735_s24, %s5276_s25  ;;  %p5285_p13 = scmp.lt.s32.totalorder %s5276_s25, %s5276_s25 }
  0x7c   : > { %p5279_p11 = pnand %p5277_p9, %p5871_p7  ;;  %p5286_p0 = por %p5285_p13, %p5284_p12 }
  0x7e   : > { %p5280_p10 = pneg %p5279_p11 }
  0x80   : > { %p5287_p2 = pnand %p5286_p0, %p5280_p10 }
  0x82   : > { %5290 = shalt.err (!%p5287_p2)
}
  0x83   : > { %s6640_s3 = smov 64   ;;  %s5695_s23 = smov [#allocation29]  }
  0x84   : > { %4783 = dma.hbm_to_vmem [thread:$0]  (!%p5865_p6), %s6595_s18, 2048, %s735_s24, [#allocation27], %s6640_s3, %s6640_s3, %s5687_s0  }
  0x85   : > { %s759_s22 = sshll.u32 %s5695_s23, 4  ;;  %s5696_s1 = smov [#allocation7]   ;;  %s760_s22 = int_to_ptr.vmem [resolvable:$true] %s759_s22 }
  0x86   : > { %s578_s29 = sshll.u32 %s5696_s1, 4  ;;  %s5302_s26 = scalar_lea.vmem %s760_s22, 16  ;;  %s579_s29 = int_to_ptr.vmem [resolvable:$true] %s578_s29 }
  0x87   : > { %p5303_p5 = scmp.ne.s32.totalorder %s760_s22, %s5302_s26  ;;  %s5309_s25 = scalar_lea.vmem %s760_s22, 32 }
  0x88   : > { %p5310_p3 = scmp.lt.s32.totalorder %s760_s22, %s760_s22  ;;  %p5311_p8 = scmp.lt.s32.totalorder %s5309_s25, %s5302_s26 }
  0x89   : > { %p5305_p4 = pnand %p5303_p5, %p5871_p7 }
  0x8a   : > { %p5312_p9 = por %p5311_p8, %p5310_p3 }
  0x8b   : > { %p5306_p1 = pneg %p5305_p4 }
  0x8d   : > { %p5313_p11 = pnand %p5312_p9, %p5306_p1 }
  0x8f   : > { %5316 = shalt.err (!%p5313_p11)
}
  0x90   : > { %4789 = dma.hbm_to_vmem [thread:$0]  (!%p5865_p6), %s6597_s20, 16, %s760_s22, [#allocation30]  }
  0x91   : > { %s5328_s28 = scalar_lea.vmem %s579_s29, 1024  ;;  %p5336_p0 = scmp.lt.s32.totalorder %s579_s29, %s579_s29 }
  0x92   : > { %p5329_p10 = scmp.ne.s32.totalorder %s579_s29, %s5328_s28  ;;  %p5337_p2 = scmp.lt.s32.totalorder %s5328_s28, %s5328_s28 }
  0x94   : > { %p5331_p12 = pnand %p5329_p10, %p5871_p7  ;;  %p5338_p5 = por %p5337_p2, %p5336_p0 }
  0x96   : > { %p5332_p13 = pneg %p5331_p12 }
  0x98   : > { %p5339_p4 = pnand %p5338_p5, %p5332_p13 }
  0x9a   : > { %5342 = shalt.err (!%p5339_p4)
}
  0x9b   : > { %s6641_s26 = sld [smem:[#allocation53_spill]]  ;;  %s5697_s22 = smov [#allocation10]  }
  0x9c   : > { %s606_s25 = sshll.u32 %s5697_s22, 4  ;;  %s5698_s24 = smov [#allocation13]   ;;  %s607_s25 = int_to_ptr.vmem [resolvable:$true] %s606_s25 }
  0x9d   : > { %s630_s27 = sshll.u32 %s5698_s24, 4  ;;  %s5354_s28 = scalar_lea.vmem %s607_s25, 16  ;;  %s631_s27 = int_to_ptr.vmem [resolvable:$true] %s630_s27 }
  0x9e   : > { %p5355_p1 = scmp.ne.s32.totalorder %s607_s25, %s5354_s28  ;;  %s5361_s4 = scalar_lea.vmem %s607_s25, 32 }
  0x9f   : > { %p5362_p9 = scmp.lt.s32.totalorder %s607_s25, %s607_s25  ;;  %p5363_p11 = scmp.lt.s32.totalorder %s5361_s4, %s5354_s28 }
  0xa0   : > { %p5357_p3 = pnand %p5355_p1, %p5871_p7 }
  0xa1   : > { %4744 = dma.hbm_to_vmem [thread:$0]  (!%p5865_p6), %s6641_s26, 1024, %s579_s29, [#allocation6], %s6640_s3, %s6640_s3, %s5687_s0  }
  0xa2   : > { %p5358_p8 = pneg %p5357_p3  ;;  %p5364_p10 = por %p5363_p11, %p5362_p9 }
  0xa4   : > { %p5365_p12 = pnand %p5364_p10, %p5358_p8 }
  0xa6   : > { %5368 = shalt.err (!%p5365_p12)
}
  0xa7   : > { %s6642_s7 = sld [smem:[#allocation56_spill]]  ;;  %s5380_s29 = scalar_lea.vmem %s631_s27, 16 }
  0xa8   : > { %p5381_p13 = scmp.ne.s32.totalorder %s631_s27, %s5380_s29  ;;  %s5387_s23 = scalar_lea.vmem %s631_s27, 32 }
  0xa9   : > { %p5388_p5 = scmp.lt.s32.totalorder %s631_s27, %s631_s27  ;;  %p5389_p4 = scmp.lt.s32.totalorder %s5387_s23, %s5380_s29 }
  0xaa   : > { %p5383_p0 = pnand %p5381_p13, %p5871_p7 }
  0xab   : > { %p5390_p1 = por %p5389_p4, %p5388_p5 }
  0xac   : > { %p5384_p2 = pneg %p5383_p0 }
  0xad   : > { %4750 = dma.hbm_to_vmem [thread:$0]  (!%p5865_p6), %s6642_s7, 16, %s607_s25, [#allocation9]  }
  0xae   : > { %p5391_p3 = pnand %p5390_p1, %p5384_p2 }
  0xb0   : > { %5394 = shalt.err (!%p5391_p3)
}
  0xb1   : > { %s6643_s9 = sld [smem:[#allocation58_spill]]  ;;  %s5699_s26 = smov [#allocation16]  }
  0xb2   : > { %s654_s22 = sshll.u32 %s5699_s26, 4  ;;  %s5700_s25 = smov [#allocation19]   ;;  %s655_s22 = int_to_ptr.vmem [resolvable:$true] %s654_s22 }
  0xb3   : > { %s678_s24 = sshll.u32 %s5700_s25, 4  ;;  %s5406_s28 = scalar_lea.vmem %s655_s22, 32  ;;  %s679_s24 = int_to_ptr.vmem [resolvable:$true] %s678_s24 }
  0xb4   : > { %p5407_p8 = scmp.ne.s32.totalorder %s655_s22, %s5406_s28  ;;  %p5414_p10 = scmp.lt.s32.totalorder %s655_s22, %s655_s22 }
  0xb5   : > { %p5415_p12 = scmp.lt.s32.totalorder %s5406_s28, %s5406_s28 }
  0xb6   : > { %p5409_p9 = pnand %p5407_p8, %p5871_p7 }
  0xb7   : > { %4756 = dma.hbm_to_vmem [thread:$0]  (!%p5865_p6), %s6643_s9, 16, %s631_s27, [#allocation12]  }
  0xb8   : > { %p5410_p11 = pneg %p5409_p9  ;;  %p5416_p13 = por %p5415_p12, %p5414_p10 }
  0xba   : > { %p5417_p0 = pnand %p5416_p13, %p5410_p11 }
  0xbc   : > { %5420 = shalt.err (!%p5417_p0)
}
  0xbd   : > { %4762 = dma.hbm_to_vmem [thread:$0]  (!%p5865_p6), %s6588_s11, 32, %s655_s22, [#allocation15]  }
  0xbe   : > { %s5432_s3 = scalar_lea.vmem %s679_s24, 16  ;;  %s5439_s29 = scalar_lea.vmem %s679_s24, 32 }
  0xbf   : > { %p5433_p2 = scmp.ne.s32.totalorder %s679_s24, %s5432_s3  ;;  %p5440_p1 = scmp.lt.s32.totalorder %s679_s24, %s679_s24 }
  0xc0   : > { %p5441_p3 = scmp.lt.s32.totalorder %s5439_s29, %s5432_s3 }
  0xc1   : > { %p5435_p5 = pnand %p5433_p2, %p5871_p7 }
  0xc2   : > { %p5442_p8 = por %p5441_p3, %p5440_p1 }
  0xc3   : > { %p5436_p4 = pneg %p5435_p5 }
  0xc5   : > { %p5443_p9 = pnand %p5442_p8, %p5436_p4 }
  0xc7   : > { %5446 = shalt.err (!%p5443_p9)
}
  0xc8   : > { %4768 = dma.hbm_to_vmem [thread:$0]  (!%p5865_p6), %s6590_s13, 16, %s679_s24, [#allocation18]  }
  0xc9   : > { %s5701_s1 = smov [#allocation22]   ;;  %s5702_s22 = smov [#allocation25]  }
  0xca   : > { %s700_s26 = sshll.u32 %s5701_s1, 4  ;;  %s724_s25 = sshll.u32 %s5702_s22, 4  ;;  %s701_s26 = int_to_ptr.vmem [resolvable:$true] %s700_s26  ;;  %s725_s25 = int_to_ptr.vmem [resolvable:$true] %s724_s25 }
  0xcb   : > { %s5458_s28 = scalar_lea.vmem %s701_s26, 16  ;;  %s5465_s0 = scalar_lea.vmem %s701_s26, 32 }
  0xcc   : > { %p5459_p11 = scmp.ne.s32.totalorder %s701_s26, %s5458_s28  ;;  %p5466_p13 = scmp.lt.s32.totalorder %s701_s26, %s701_s26 }
  0xcd   : > { %p5467_p0 = scmp.lt.s32.totalorder %s5465_s0, %s5458_s28 }
  0xce   : > { %p5461_p10 = pnand %p5459_p11, %p5871_p7 }
  0xcf   : > { %p5468_p2 = por %p5467_p0, %p5466_p13 }
  0xd0   : > { %p5462_p12 = pneg %p5461_p10 }
  0xd2   : > { %p5469_p5 = pnand %p5468_p2, %p5462_p12 }
  0xd4   : > { %5472 = shalt.err (!%p5469_p5)
}
  0xd5   : > { %4774 = dma.hbm_to_vmem [thread:$0]  (!%p5865_p6), %s6592_s15, 16, %s701_s26, [#allocation21]  }
  0xd6   : > { %s5484_s3 = scalar_lea.vmem %s725_s25, 32  ;;  %p5492_p8 = scmp.lt.s32.totalorder %s725_s25, %s725_s25 }
  0xd7   : > { %p5485_p4 = scmp.ne.s32.totalorder %s725_s25, %s5484_s3  ;;  %p5493_p9 = scmp.lt.s32.totalorder %s5484_s3, %s5484_s3 }
  0xd9   : > { %p5487_p1 = pnand %p5485_p4, %p5871_p7  ;;  %p5494_p11 = por %p5493_p9, %p5492_p8 }
  0xdb   : > { %p5488_p3 = pneg %p5487_p1 }
  0xdd   : > { %p5495_p10 = pnand %p5494_p11, %p5488_p3 }
  0xdf   : > { %5498 = shalt.err (!%p5495_p10)
}
  0xe0   : > { %4780 = dma.hbm_to_vmem [thread:$0]  (!%p5865_p6), %s6594_s17, 32, %s725_s25, [#allocation24]  }
  0xe1   : > { %s5703_s4 = smov [#allocation28]   ;;  %s5704_s26 = smov [#allocation31]  }
  0xe2   : > { %s748_s1 = sshll.u32 %s5703_s4, 4  ;;  %s770_s22 = sshll.u32 %s5704_s26, 4  ;;  %s749_s1 = int_to_ptr.vmem [resolvable:$true] %s748_s1  ;;  %s771_s22 = int_to_ptr.vmem [resolvable:$true] %s770_s22 }
  0xe3   : > { %s5510_s28 = scalar_lea.vmem %s749_s1, 16  ;;  %s5517_s0 = scalar_lea.vmem %s749_s1, 32 }
  0xe4   : > { %p5511_p12 = scmp.ne.s32.totalorder %s749_s1, %s5510_s28  ;;  %p5518_p2 = scmp.lt.s32.totalorder %s749_s1, %s749_s1 }
  0xe5   : > { %p5519_p5 = scmp.lt.s32.totalorder %s5517_s0, %s5510_s28 }
  0xe6   : > { %p5513_p13 = pnand %p5511_p12, %p5871_p7 }
  0xe7   : > { %p5520_p4 = por %p5519_p5, %p5518_p2 }
  0xe8   : > { %p5514_p0 = pneg %p5513_p13 }
  0xea   : > { %p5521_p1 = pnand %p5520_p4, %p5514_p0 }
  0xec   : > { %5524 = shalt.err (!%p5521_p1)
}
  0xed   : > { %4786 = dma.hbm_to_vmem [thread:$0]  (!%p5865_p6), %s6596_s19, 16, %s749_s1, [#allocation27]  }
  0xee   : > { %s5536_s27 = scalar_lea.vmem %s771_s22, 16  ;;  %s5543_s3 = scalar_lea.vmem %s771_s22, 32 }
  0xef   : > { %p5537_p3 = scmp.ne.s32.totalorder %s771_s22, %s5536_s27  ;;  %p5544_p11 = scmp.lt.s32.totalorder %s771_s22, %s771_s22 }
  0xf0   : > { %p5545_p10 = scmp.lt.s32.totalorder %s5543_s3, %s5536_s27 }
  0xf1   : > { %p5539_p8 = pnand %p5537_p3, %p5871_p7 }
  0xf2   : > { %p5546_p12 = por %p5545_p10, %p5544_p11 }
  0xf3   : > { %p5540_p9 = pneg %p5539_p8 }
  0xf5   : > { %p5547_p13 = pnand %p5546_p12, %p5540_p9 }
  0xf7   : > { %5550 = shalt.err (!%p5547_p13)
}
  0xf8   : > { %s6644_s4 = sld [smem:[#allocation46_spill]]  ;;  %s4110_s28 = sadd.s32 4294967294, %s5679_s30  }
  0xf9   : > { %s6645_s1 = sld [smem:[#allocation45_spill]]  ;;  %s6021_s6 = sadd.s32 1, %s5679_s30  }
  0xfa   : > { %s6646_s2 = sld [smem:[#allocation44_spill]]  ;;  %s77_s0 = ssub.s32 %s5679_s30, %s6021_s6 }
  0xfb   : > { %s6647_s26 = sld [smem:[#allocation47_spill]]  ;;  %p78_p7 = scmp.eq.s32.totalorder %s77_s0, 0 }
  0xfc   : > { %4792 = dma.hbm_to_vmem [thread:$0]  (!%p5865_p6), %s6598_s21, 16, %s771_s22, [#allocation30]  }
  0xfd   : > { %p88_p2 = scmp.eq.s32.totalorder %s5679_s30, 0  ;;  %p543_p8 = scmp.eq.s32.totalorder %s4110_s28, 1 }
  0xfe   : > { %s80_s25 = sadd.s32 1, %s6644_s4  ;;  %p4819_p9 = scmp.lt.s32.totalorder %s5679_s30, 2 }
  0xff   : > { %p87_p0 = scmp.ne.s32.totalorder %s6644_s4, %s6645_s1  ;;  %s790_s3 = sand.u32 1, %s6644_s4  }
 0x100   : > { %p93_p5 = scmp.ne.s32.totalorder %s6645_s1, %s6646_s2  ;;  %s4131_s1 = sshll.u32 %s790_s3, 4 }
 0x101   : > { %s6032_s24 = scalar_select %p78_p7, %s6644_s4, %s80_s25  }
 0x102   : > { %p6034_p4 = por %p88_p2, %p87_p0  ;;  %p6649_p1 = scmp.eq.s32.totalorder %s6647_s26, 0 }
 0x103   : > { %p537_p3 = scmp.eq.s32.totalorder %s6647_s26, 1  ;;  %p6051_p10 = por %p543_p8, %p93_p5 }
 0x104   : > { %p6040_p6 = por %p6649_p1, %p93_p5  ;;  %s4300_s2 = sshll.u32 %s5679_s30, 8 }
 0x105   : > { %p6047_p11 = por %p537_p3, %p87_p0  ;;  %s6653_s5 = sld [smem:[#allocation50_spill]] }
 0x106   : > { %s6650_s22 = scalar_select %p6040_p6, 1, 0 }
 0x107   : > { %s6651_s29 = scalar_select %p6047_p11, 1, 0 }
 0x108   : > { %s6652_s23 = scalar_select %p6051_p10, 1, 0 }
 0x109   : > { %s794_s26 = scalar_lea.vmem [#allocation2], %s4131_s1  ;;  %p6065_p12 = pnand %p4819_p9, %p6034_p4 }
 0x10a   : > { %s801_s4 = sshll.u32 %s794_s26, 4  ;;  %s6069_s8 = scalar_lea.sflag [#allocation3], %s790_s3  ;;  %s6061_s4 = int_to_ptr.vmem [resolvable:$true] %s801_s4 }
 0x10b   : > { %s6059_s7 = scalar_lea.hbm %s6653_s5, %s4300_s2  ;;  %p5553_p7 = pneg %p6065_p12 }
 0x10c   : > { %s5551_s9 = scalar_lea.hbm %s6059_s7, 256  ;;  %s5556_s1 = scalar_lea.hbm %s6653_s5, 512 }
 0x10d   : > { %p5552_p13 = scmp.ne.s32.totalorder %s6059_s7, %s5551_s9  ;;  %p5557_p5 = scmp.lt.s32.totalorder %s6059_s7, %s6653_s5 }
 0x10e   : > { %p5558_p4 = scmp.lt.s32.totalorder %s5556_s1, %s5551_s9 }
 0x10f   : > { %p5554_p0 = pnand %p5553_p7, %p5552_p13 }
 0x110   : > { %p5559_p1 = por %p5558_p4, %p5557_p5 }
 0x111   : > { %p5555_p2 = pneg %p5554_p0 }
 0x113   : > { %p5560_p3 = pnand %p5559_p1, %p5555_p2 }
 0x115   : > { %5563 = shalt.err (!%p5560_p3)
}
 0x116   : > { %s5564_s27 = scalar_lea.vmem %s6061_s4, 256  ;;  %s5705_s3 = smov [#allocation2]  }
 0x117   : > { %p5565_p8 = scmp.ne.s32.totalorder %s6061_s4, %s5564_s27  ;;  %s5569_s10 = sshll.u32 %s5705_s3, 4  ;;  %s5570_s10 = int_to_ptr.vmem [resolvable:$false] %s5569_s10 }
 0x118   : > { %s5571_s2 = scalar_lea.vmem %s5570_s10, 512  ;;  %p5572_p0 = scmp.lt.s32.totalorder %s6061_s4, %s5570_s10 }
 0x119   : > { %p5567_p9 = pnand %p5565_p8, %p5553_p7  ;;  %p5573_p10 = scmp.lt.s32.totalorder %s5571_s2, %s5564_s27 }
 0x11b   : > { %p5568_p13 = pneg %p5567_p9  ;;  %p5574_p11 = por %p5573_p10, %p5572_p0 }
 0x11d   : > { %p5575_p6 = pnand %p5574_p11, %p5568_p13 }
 0x11f   : > { %5578 = shalt.err (!%p5575_p6)
}
 0x120   : > { %s6655_s9 = smov 8   ;;  %s6656_s0 = smov 128  }
 0x121   : > { %4796 = dma.hbm_to_vmem [thread:$0]  (!%p6065_p12), %s6059_s7, 256, %s6061_s4, %s6069_s8, %s6656_s0, %s6656_s0, %s6655_s9  }
 0x122   : > { %s6657_s1 = sld [smem:[#allocation48_spill]] }
 0x128   : > { %p6658_p7 = scmp.ne.s32.totalorder %s6657_s1, 0 }
 0x129   : > { %s6659_s25 = sld [smem:[#allocation45_spill]] (!%p6658_p7)  ;;  %p6660_p6 = scmp.ne.s32.totalorder (!%p6658_p7), %s6650_s22, 0 }
 0x12a   : > { %813 = sbr.rel (%p6658_p7) target bundleno = 7238 (0x1c46), region = 108 }
 0x12f   : > { %s6096_s26 = sand.u32 1, %s6659_s25  }
 0x130   : > { %s4135_s10 = sshll.u32 %s6096_s26, 4  ;;  %s816_s27 = scalar_lea.sflag [#allocation3], %s6096_s26 }
 0x131   : > { %s6102_s28 = scalar_lea.vmem [#allocation2], %s4135_s10 }
 0x132   : > { %5622 = dma.done.wait (%p6660_p6), %s816_s27, 256  }
 0x133   : > { %5624 = vsyncadd (%p6660_p6), %s816_s27, 4294967040  ;;  %s6661_s7 = sld [smem:[#allocation47_spill]] }
 0x139   : > { %p6662_p11 = scmp.eq.s32.totalorder %s6661_s7, 0 }
 0x13b   : > { %5626 = dma.done.wait (%p6662_p11), [#allocation6], 4096   ;;  %p6663_p10 = pmov %p6662_p11 }
 0x13d   : > { %5628 = vsyncadd (%p6663_p10), [#allocation6], 4294963200  ;;  %p6664_p12 = pmov %p6663_p10 }
 0x13e   : > { %p6665_p2 = pmov %p6663_p10 }
 0x13f   : > { %5630 = dma.done.wait (%p6664_p12), [#allocation9], 32  }
 0x140   : > { %5632 = vsyncadd (%p6665_p2), [#allocation9], 4294967264  ;;  %p6666_p5 = pmov %p6665_p2 }
 0x141   : > { %p6667_p4 = pmov %p6665_p2 }
 0x142   : > { %5634 = dma.done.wait (%p6666_p5), [#allocation12], 1040  }
 0x143   : > { %5636 = vsyncadd (%p6667_p4), [#allocation12], 4294966256  ;;  %p6668_p1 = pmov %p6665_p2 }
 0x145   : > { %5638 = dma.done.wait (%p6668_p1), [#allocation15], 2080   ;;  %p6669_p3 = pmov %p6668_p1 }
 0x146   : > { %p6670_p8 = pmov %p6668_p1 }
 0x147   : > { %5640 = vsyncadd (%p6669_p3), [#allocation15], 4294965216 }
 0x148   : > { %5642 = dma.done.wait (%p6670_p8), [#allocation18], 1040   ;;  %p6671_p9 = pmov %p6668_p1 }
 0x149   : > { %p6672_p13 = pmov %p6668_p1 }
 0x14a   : > { %5644 = vsyncadd (%p6671_p9), [#allocation18], 4294966256 }
 0x14b   : > { %5646 = dma.done.wait (%p6672_p13), [#allocation21], 32   ;;  %p6673_p0 = pmov %p6668_p1 }
 0x14d   : > { %5648 = vsyncadd (%p6673_p0), [#allocation21], 4294967264  ;;  %p6674_p7 = pmov %p6673_p0 }
 0x14e   : > { %p6675_p6 = pmov %p6673_p0 }
 0x14f   : > { %5650 = dma.done.wait (%p6674_p7), [#allocation24], 2080  }
 0x150   : > { %5652 = vsyncadd (%p6675_p6), [#allocation24], 4294965216  ;;  %p6676_p11 = pmov %p6673_p0 }
 0x151   : > { %p6677_p10 = pmov %p6673_p0 }
 0x152   : > { %5654 = dma.done.wait (%p6676_p11), [#allocation27], 2064  }
 0x153   : > { %5656 = vsyncadd (%p6677_p10), [#allocation27], 4294965232  ;;  %p6678_p12 = pmov %p6673_p0 }
 0x154   : > { %p6679_p2 = pmov %p6673_p0 }
 0x155   : > { %5658 = dma.done.wait (%p6678_p12), [#allocation30], 32  }
 0x156   : > { %5660 = vsyncadd (%p6679_p2), [#allocation30], 4294967264  ;;  %v5706_v0 = vmov 0   ;;  %v5707_v1 = vmov 0.0   ;;  %v4903_v2 = vld [vmem:[#allocation5 + $0xac] ss:$12 sps:$4 sm:$0xff]   ;;  %v1004_v29 = vlaneseq }
 0x157   : > { %1179 = vmatprep.mubr.bf16.mxu0 %v5706_v0  ;;  %4414 = vmatprep.subr.bf16.mxu1 %v5707_v1  ;;  %v4905_v3 = vld [vmem:[#allocation5 + $0xa8] ss:$12 sps:$4 sm:$0xff]   ;;  %s4155_s8 = sshll.u32 %s6661_s7, 1  ;;  %v4908_v5 = vld [vmem:[#allocation5 + $0x90] ss:$12 sps:$4 sm:$0xff]   ;;  %s6680_s2 = sld [smem:[#allocation49_spill]] }
 0x158   : > { %1147 = vmatprep.subr.bf16.mxu0 %v4903_v2  ;;  %v4906_v4 = vld [vmem:[#allocation5 + $0x94] ss:$12 sps:$4 sm:$0xff]   ;;  %v4909_v6 = vld [vmem:[#allocation5 + $0x7c] ss:$12 sps:$4 sm:$0xff]   ;;  %p958_p5 = scmp.lt.s32.totalorder %s4155_s8, 3  ;;  %vm5708_vm0 = vmmov 0  }
 0x159   : > { %1148 = vmatpush1.bf16.msra.mxu0 %v4905_v3  ;;  %v4911_v7 = vld [vmem:[#allocation5 + $0x78] ss:$12 sps:$4 sm:$0xff]   ;;  %v4914_v9 = vld [vmem:[#allocation5 + $0x60] ss:$12 sps:$4 sm:$0xff]   ;;  %v4927_v11 = vld [vmem:[#allocation5 + $0xb0] ss:$12 sps:$4 sm:$0xff]   ;;  %4430 = vmatprep.mubr.msk.bf16.mxu1 %vm5708_vm0, %v5707_v1 }
 0x15a   : > { %1149 = vmatprep.subr.bf16.mxu0 %v4906_v4  ;;  %v4912_v8 = vld [vmem:[#allocation5 + $0x64] ss:$12 sps:$4 sm:$0xff]   ;;  %s6693_s8 = smov (!%p958_p5, %s4155_s8), 3  ;;  %v4915_v10 = vld [vmem:[#allocation5 + $0x4c] ss:$12 sps:$4 sm:$0xff]   ;;  %4415 = vmatpush3.bf16.msra.mxu1 %v4927_v11  ;;  %v6171_v30 = vshrl.u32 %v1004_v29, 7 }
 0x15b   : > { %s4156_s22 = sshll.u32 %s6693_s8, 3  ;;  %v4928_v12 = vld [vmem:[#allocation5 + $0x98] ss:$12 sps:$4 sm:$0xff]   ;;  %v4917_v13 = vld [vmem:[#allocation5 + $0x48] ss:$12 sps:$4 sm:$0xff]   ;;  %4416 = vmatprep.subr.bf16.mxu1 %v5707_v1  ;;  %s6681_s25 = sld [smem:[#allocation52_spill]] }
 0x15c   : > { %v4918_v14 = vld [vmem:[#allocation5 + $0x34] ss:$12 sps:$4 sm:$0xff]   ;;  %v4920_v15 = vld [vmem:[#allocation5 + $0x30] ss:$12 sps:$4 sm:$0xff]   ;;  %v4923_v19 = vld [vmem:[#allocation5 + $0x18] ss:$12 sps:$4 sm:$0xff]  }
 0x15d   : > { %1150 = vmatpush1.bf16.msra.mxu0 %v4908_v5  ;;  %v4921_v16 = vld [vmem:[#allocation5 + $0x1c] ss:$12 sps:$4 sm:$0xff]   ;;  %v4929_v17 = vld [vmem:[#allocation5 + $0x80] ss:$12 sps:$4 sm:$0xff]   ;;  %v4924_v20 = vld [vmem:[#allocation5 + $0x4] ss:$12 sps:$4 sm:$0xff]   ;;  %s961_s9 = scalar_lea.vmem %s6680_s2, %s4156_s22 }
 0x15e   : > { %1151 = vmatprep.subr.bf16.mxu0 %v4909_v6  ;;  %4417 = vmatpush3.bf16.msra.mxu1 %v4928_v12  ;;  %v4930_v18 = vld [vmem:[#allocation5 + $0x68] ss:$12 sps:$4 sm:$0xff]   ;;  %v4931_v21 = vld [vmem:[#allocation5 + $0x50] ss:$12 sps:$4 sm:$0xff]   ;;  %v4926_v22 = vld [vmem:[#allocation5] ss:$12 sps:$4 sm:$0xff]  }
 0x15f   : > { %4418 = vmatprep.subr.bf16.mxu1 %v5707_v1  ;;  %v6153_v23 = vld [vmem:[%s961_s9] sm:$0xff]  ;;  %v6155_v24 = vld [vmem:[%s961_s9 + $0x8] sm:$0xff]  ;;  %v6174_v31 = vsub.s32 1, %v6171_v30  ;;  %v6177_v32 = vsub.s32 0, %v6171_v30  ;;  %vm1239_vm1 = vcmask 261120   ;;  %s5709_s27 = smov 96  }
 0x160   : > { %v4932_v25 = vld [vmem:[#allocation5 + $0x38] ss:$12 sps:$4 sm:$0xff]   ;;  %v969_v26 = vpack.c.bf16 %v6155_v24, %v6153_v23  ;;  %v4933_v27 = vld [vmem:[#allocation5 + $0x20] ss:$12 sps:$4 sm:$0xff]   ;;  %v4934_v28 = vld [vmem:[#allocation5 + $0x8] ss:$12 sps:$4 sm:$0xff]  }
 0x161   : > { %1152 = vmatpush1.bf16.msra.mxu0 %v4911_v7  ;;  %v1002_v33 = vld [vmem:[%s6681_s25] sm:$0x7]  ;;  %v1014_v52 = vsub.s32 2, %v6171_v30  ;;  %vm1360_vm2 = vcmask 1043456   ;;  %vm1332_vm3 = vcmask 64512   ;;  %s5710_s8 = smov 64  }
 0x162   : > { %1153 = vmatprep.subr.bf16.mxu0 %v4912_v8  ;;  %4419 = vmatpush3.bf16.msra.mxu1 %v4929_v17  ;;  %v1011_v34 = vrot.slane %v1002_v33, %v6174_v31  ;;  %v1007_v36 = vrot.slane %v1002_v33, %v6177_v32  ;;  %s5711_s22 = smov 32   ;;  %s6682_s2 = sld [smem:[#allocation54_spill]]  ;;  %vm2447_vm4 = vcmask 1041409   ;;  %vm2741_vm5 = vcmask 123904  }
 0x163   : > { %4420 = vmatprep.subr.bf16.mxu1 %v5707_v1  ;;  %v1015_v53 = vrot.slane %v1002_v33, %v1014_v52  ;;  %vm2754_vm6 = vcmask 130048   ;;  %vm3394_vm7 = vcmask 1040384   ;;  %vm3390_vm8 = vcmask 1047559   ;;  %s956_s9 = scalar_lea.vmem [#allocation32], %s4135_s10  ;;  %p6684_p1 = scmp.ne.s32.totalorder %s6651_s29, 0 }
 0x164   : > { %vm3459_vm9 = vcmp.eq.s32.totalorder %v6171_v30, 7  ;;  %s3854_s0 = sshll.u32 %s956_s9, 4  ;;  %s5712_s10 = smov [#allocation32]   ;;  %s6534_s0 = int_to_ptr.vmem [resolvable:$true] %s3854_s0 }
 0x165   : > { %1154 = vmatpush1.bf16.msra.mxu0 %v4914_v9  ;;  %s5579_s4 = scalar_lea.vmem %s6534_s0, 256 }
 0x166   : > { %1155 = vmatprep.subr.bf16.mxu0 %v4915_v10  ;;  %4421 = vmatpush3.bf16.msra.mxu1 %v4930_v18  ;;  %p5580_p4 = scmp.ne.s32.totalorder %s6534_s0, %s5579_s4 }
 0x167   : > { %4422 = vmatprep.subr.bf16.mxu1 %v5707_v1 }
 0x168   : > { %p5581_p3 = pnand %p5580_p4, %p6684_p1 }
 0x169   : > { %1156 = vmatpush1.bf16.msra.mxu0 %v4917_v13 }
 0x16a   : > { %1157 = vmatprep.subr.bf16.mxu0 %v4918_v14  ;;  %4423 = vmatpush3.bf16.msra.mxu1 %v4931_v21  ;;  %p5582_p8 = pneg %p5581_p3 }
 0x16b   : > { %4424 = vmatprep.subr.bf16.mxu1 %v5707_v1 }
 0x16d   : > { %1158 = vmatpush1.bf16.msra.mxu0 %v4920_v15 }
 0x16e   : > { %1159 = vmatprep.subr.bf16.mxu0 %v4921_v16  ;;  %4425 = vmatpush3.bf16.msra.mxu1 %v4932_v25 }
 0x16f   : > { %4426 = vmatprep.subr.bf16.mxu1 %v5707_v1 }
 0x171   : > { %1160 = vmatpush1.bf16.msra.mxu0 %v4923_v19 }
 0x172   : > { %1161 = vmatprep.subr.bf16.mxu0 %v4924_v20  ;;  %4427 = vmatpush3.bf16.msra.mxu1 %v4933_v27 }
 0x173   : > { %4428 = vmatprep.subr.bf16.mxu1 %v5707_v1 }
 0x175   : > { %1162 = vmatpush1.bf16.msra.mxu0 %v4926_v22 }
 0x176   : > { %4434 = vmatprep.subr.bf16.mxu0 %v5707_v1  ;;  %4429 = vmatpush3.bf16.msra.mxu1 %v4934_v28 }
 0x177   : > { %4440 = vmatprep.subr.bf16.mxu1 %v5707_v1 }
 0x178   : > { %1180 = vmatmul.mubr.bf16.vlgmr.msra.gmra.mxu0 %v969_v26 }
 0x179   : > { %4436 = vmatprep.mubr.msk.bf16.mxu0 %vm5708_vm0, %v5707_v1  ;;  %4431 = vmatmul.mubr.bf16.vlgmr.msra.gmra.mxu1 %v969_v26 }
 0x17a   : > { %4442 = vmatprep.mubr.msk.bf16.mxu1 %vm5708_vm0, %v5707_v1 }
 0x238   : > { %v1181_v35 = vpop.f32.mrf.mxu0 }
 0x239   : > { %v1182_v40 = vadd.f32 %v1181_v35, %v1007_v36  ;;  %v1224_v54 = vpop.f32.mrf.mxu1 }
 0x23a   : > { %v1183_v37 = vpop.f32.mrf.mxu0  ;;  %v1225_v56 = vadd.f32 %v1224_v54, %v1015_v53 }
 0x23b   : > { %v1184_v38 = vadd.f32 %v1183_v37, %v1011_v34  ;;  %v1231_v45 = vmul.f32 0.17677669, %v1182_v40  ;;  %v4432_v55 = vpop.f32.mrf.mxu1 }
 0x23c   : > { %v1185_v39 = vpop.f32.mrf.mxu0  ;;  %v6209_v60 = vpack.c.bf16 %v1225_v56, %v1225_v56 }
 0x23d   : > { %v6184_v41 = vpack.c.bf16 %v1184_v38, %v1184_v38  ;;  %v1186_v46 = vadd.f32 %v1185_v39, %v1007_v36  ;;  %v6195_v49 = vpack.c.bf16 %v1231_v45, %v1231_v45  ;;  %v1227_v57 = vpop.f32.mrf.mxu1 }
 0x23e   : > { %v1187_v42 = vpop.f32.mrf.mxu0  ;;  %v1228_v58 = vadd.f32 %v1227_v57, %v1015_v53  ;;  %v1362_v62 = vsel %vm1360_vm2, %v6209_v60, 0 }
 0x23f   : > { %v1188_v43 = vadd.f32 %v1187_v42, %v1011_v34  ;;  %v1244_v44 = vsel %vm1239_vm1, %v6184_v41, 0  ;;  %v1232_v50 = vmul.f32 0.17677669, %v1186_v46  ;;  %v4433_v59 = vpop.f32.mrf.mxu1 }
 0x240   : > { %4435 = vmatpush3.bf16.xpose.msra.mxu0 %v1244_v44  ;;  %v6211_v61 = vpack.c.bf16 %v1228_v58, %v1228_v58 }
 0x241   : > { %v6188_v47 = vpack.c.bf16 %v1188_v43, %v1188_v43  ;;  %4446 = vmatprep.subr.bf16.mxu0 %v5707_v1  ;;  %v6202_v51 = vpack.c.bf16 %v1232_v50, %v1232_v50 }
 0x242   : > { %v1408_v63 = vsel %vm1360_vm2, %v6211_v61, 0 }
 0x243   : > { %1511 = vrot.lane.b32.xlu1 %v6188_v47, %s5709_s27  ;;  %v1290_v48 = vsel %vm1239_vm1, %v6188_v47, 0 }
 0x244   : > { %4441 = vmatpush3.bf16.xpose.msra.mxu1 %v1290_v48 }
 0x245   : > { %4452 = vmatprep.subr.bf16.mxu1 %v5707_v1 }
 0x247   : > { %4437 = vmatmul.mubr.msk.bf16.vlgmr.msra.gmra.mxu0 %vm1239_vm1, %v6195_v49 }
 0x248   : > { %4448 = vmatprep.mubr.msk.bf16.mxu0 %vm5708_vm0, %v5707_v1  ;;  %4447 = vmatpush3.bf16.msra.mxu0 %v1362_v62 }
 0x249   : > { %4458 = vmatprep.subr.bf16.mxu0 %v5707_v1 }
 0x24b   : > { %4443 = vmatmul.mubr.msk.bf16.vlgmr.msra.gmra.mxu1 %vm1239_vm1, %v6202_v51 }
 0x24c   : > { %4454 = vmatprep.mubr.msk.bf16.mxu1 %vm5708_vm0, %v5707_v1  ;;  %4453 = vmatpush3.bf16.msra.mxu1 %v1408_v63 }
 0x24d   : > { %4464 = vmatprep.subr.bf16.mxu1 %v5707_v1 }
 0x2b5   : > { %v1512_v22 = vpop.permute.xlu1 %1511 }
 0x2b6   : > { %v1517_v38 = vsel %vm1239_vm1, %v1512_v22, 0  ;;  %v4937_v22 = vld [vmem:[#allocation7 + $0x18] sm:$0xff]  }
 0x307   : > { %v1280_v2 = vpop.f32.mrf.mxu0 }
 0x308   : > { %v1333_v3 = vsel %vm1332_vm3, %v1280_v2, -inf }
 0x309   : > { %1334 = vmax.xlane.f32.xlu0 %v1333_v3  ;;  %v4438_v4 = vpop.f32.mrf.mxu0 }
 0x30b   : > { %v1283_v5 = vpop.f32.mrf.mxu0  ;;  %v1326_v6 = vpop.f32.mrf.mxu1 }
 0x30c   : > { %v1336_v7 = vsel %vm1332_vm3, %v1326_v6, -inf }
 0x30d   : > { %v4444_v8 = vpop.f32.mrf.mxu1  ;;  %1337 = vmax.xlane.f32.xlu0 %v1336_v7  ;;  %v4439_v9 = vpop.f32.mrf.mxu0 }
 0x30f   : > { %v1329_v10 = vpop.f32.mrf.mxu1 }
 0x311   : > { %v4445_v11 = vpop.f32.mrf.mxu1 }
 0x323   : > { %1459 = vrot.lane.b32.xlu0 %v6184_v41, %s5709_s27 }
 0x392   : > { %v1335_v12 = vpop.xlane.xlu0 %1334 }
 0x393   : > { %v1339_v13 = vsub.f32 %v1280_v2, %v1335_v12 }
 0x395   : > { %v1341_v14 = vmul.f32 1.442695, %v1339_v13 }
 0x396   : > { %v1338_v15 = vpop.xlane.xlu0 %1337 }
 0x397   : > { %5023 = vpow2.f32 %v1341_v14  ;;  %v1340_v16 = vsub.f32 %v1326_v6, %v1338_v15 }
 0x399   : > { %v1343_v17 = vmul.f32 1.442695, %v1340_v16 }
 0x39a   : > { %v1460_v29 = vpop.permute.xlu0 %1459 }
 0x39b   : > { %5025 = vpow2.f32 %v1343_v17  ;;  %v1465_v35 = vsel %vm1239_vm1, %v1460_v29, 0 }
 0x3a4   : > { %v5024_v18 = vpop.eup %5023 }
 0x3a5   : > { %v1345_v19 = vsel %vm1332_vm3, %v5024_v18, 0.0 }
 0x3a6   : > { %1346 = vadd.xlane.f32.xlu1 %v1345_v19 }
 0x3a8   : > { %v5026_v20 = vpop.eup %5025 }
 0x3a9   : > { %v1348_v21 = vsel %vm1332_vm3, %v5026_v20, 0.0 }
 0x3aa   : > { %1349 = vadd.xlane.f32.xlu1 %v1348_v21 }
 0x3bb   : > { %1456 = vrot.lane.b32.xlu1 %v6195_v49, %s5709_s27 }
 0x3bf   : > { %1508 = vrot.lane.b32.xlu1 %v6202_v51, %s5709_s27 }
 0x42f   : > { %v1347_v25 = vpop.xlane.xlu1 %1346 }
 0x430   : > { %5027 = vrcp.f32 %v1347_v25 }
 0x433   : > { %v1350_v26 = vpop.xlane.xlu1 %1349 }
 0x434   : > { %5029 = vrcp.f32 %v1350_v26 }
 0x437   : > { %v1457_v39 = vpop.permute.xlu1 %1456 }
 0x43b   : > { %v1509_v40 = vpop.permute.xlu1 %1508 }
 0x43d   : > { %v5028_v27 = vpop.eup %5027 }
 0x43e   : > { %v1352_v28 = vmul.f32 %v5028_v27, %v5024_v18 }
 0x440   : > { %v1355_v33 = vpack.c.bf16 %v1352_v28, %v1352_v28  ;;  %v4935_v28 = vld [vmem:[#allocation7 + $0x8] sm:$0xff]  }
 0x441   : > { %v5030_v34 = vpop.eup %5029 }
 0x442   : > { %4449 = vmatmul.mubr.msk.bf16.vlgmr.msra.gmra.mxu0 %vm1332_vm3, %v1355_v33  ;;  %v1354_v36 = vmul.f32 %v5030_v34, %v5026_v20  ;;  %v4936_v34 = vld [vmem:[#allocation7] sm:$0xff]  }
 0x443   : > { %4459 = vmatpush3.bf16.xpose.msra.mxu0 %v1465_v35  ;;  %4460 = vmatprep.mubr.msk.bf16.mxu0 %vm5708_vm0, %v5707_v1 }
 0x444   : > { %v1356_v37 = vpack.c.bf16 %v1354_v36, %v1354_v36  ;;  %4470 = vmatprep.subr.bf16.mxu0 %v5707_v1 }
 0x446   : > { %4455 = vmatmul.mubr.msk.bf16.vlgmr.msra.gmra.mxu1 %vm1332_vm3, %v1356_v37 }
 0x447   : > { %4465 = vmatpush3.bf16.xpose.msra.mxu1 %v1517_v38  ;;  %4466 = vmatprep.mubr.msk.bf16.mxu1 %vm5708_vm0, %v5707_v1  ;;  %v4938_v38 = vld [vmem:[#allocation7 + $0x10] sm:$0xff]  }
 0x448   : > { %4476 = vmatprep.subr.bf16.mxu1 %v5707_v1 }
 0x44a   : > { %4461 = vmatmul.mubr.msk.bf16.vlgmr.msra.gmra.mxu0 %vm1239_vm1, %v1457_v39 }
 0x44b   : > { %4472 = vmatprep.mubr.msk.bf16.mxu0 %vm5708_vm0, %v5707_v1 }
 0x44e   : > { %4467 = vmatmul.mubr.msk.bf16.vlgmr.msra.gmra.mxu1 %vm1239_vm1, %v1509_v40 }
 0x44f   : > { %4478 = vmatprep.mubr.msk.bf16.mxu1 %vm5708_vm0, %v5707_v1 }
 0x502   : > { %v6245_v42 = vpop.f32.mrf.mxu0 }
 0x504   : > { %v4450_v43 = vpop.f32.mrf.mxu0 }
 0x506   : > { %v1401_v44 = vpop.f32.mrf.mxu0  ;;  %v6247_v45 = vpop.f32.mrf.mxu1 }
 0x507   : > { %v1450_v46 = vpack.c.bf16 %v6247_v45, %v6245_v42 }
 0x508   : > { %v4451_v48 = vpop.f32.mrf.mxu0  ;;  %v4456_v50 = vpop.f32.mrf.mxu1 }
 0x50a   : > { %v1447_v52 = vpop.f32.mrf.mxu1  ;;  %v1501_v53 = vpop.f32.mrf.mxu0 }
 0x50b   : > { %v1559_v54 = vsel %vm1332_vm3, %v1501_v53, -inf }
 0x50c   : > { %v4457_v55 = vpop.f32.mrf.mxu1  ;;  %1560 = vmax.xlane.f32.xlu0 %v1559_v54  ;;  %v4462_v56 = vpop.f32.mrf.mxu0 }
 0x50e   : > { %v1504_v57 = vpop.f32.mrf.mxu0  ;;  %v1553_v58 = vpop.f32.mrf.mxu1 }
 0x50f   : > { %v1562_v59 = vsel %vm1332_vm3, %v1553_v58, -inf }
 0x510   : > { %1563 = vmax.xlane.f32.xlu1 %v1562_v59  ;;  %v4463_v62 = vpop.f32.mrf.mxu0  ;;  %v4468_v63 = vpop.f32.mrf.mxu1 }
 0x512   : > { %v1556_v2 = vpop.f32.mrf.mxu1 }
 0x514   : > { %v4469_v3 = vpop.f32.mrf.mxu1 }
 0x521   : > { %1633 = vrot.lane.b32.xlu1 %v6211_v61, %s5709_s27 }
 0x525   : > { %1800 = vrot.lane.b32.xlu1 %v6184_v41, %s5710_s8 }
 0x529   : > { %1850 = vrot.lane.b32.xlu1 %v6188_v47, %s5710_s8 }
 0x52d   : > { %1848 = vrot.lane.b32.xlu1 %v6202_v51, %s5710_s8 }
 0x595   : > { %v1561_v4 = vpop.xlane.xlu0 %1560 }
 0x596   : > { %v1565_v5 = vsub.f32 %v1501_v53, %v1561_v4 }
 0x598   : > { %v1567_v6 = vmul.f32 1.442695, %v1565_v5 }
 0x599   : > { %v1564_v7 = vpop.xlane.xlu1 %1563 }
 0x59a   : > { %5031 = vpow2.f32 %v1567_v6  ;;  %v1566_v8 = vsub.f32 %v1553_v58, %v1564_v7 }
 0x59c   : > { %v1569_v9 = vmul.f32 1.442695, %v1566_v8 }
 0x59d   : > { %v1634_v10 = vpop.permute.xlu1 %1633 }
 0x59e   : > { %5033 = vpow2.f32 %v1569_v9  ;;  %v1639_v11 = vsel %vm1360_vm2, %v1634_v10, 0 }
 0x59f   : > { %4477 = vmatpush3.bf16.msra.mxu1 %v1639_v11 }
 0x5a0   : > { %4490 = vmatprep.subr.bf16.mxu1 %v5707_v1 }
 0x5a1   : > { %v1801_v33 = vpop.permute.xlu1 %1800 }
 0x5a2   : > { %v1806_v48 = vsel %vm1239_vm1, %v1801_v33, 0 }
 0x5a5   : > { %v1851_v35 = vpop.permute.xlu1 %1850 }
 0x5a6   : > { %v1856_v36 = vsel %vm1239_vm1, %v1851_v35, 0 }
 0x5a7   : > { %v5032_v12 = vpop.eup %5031 }
 0x5a8   : > { %v1571_v13 = vsel %vm1332_vm3, %v5032_v12, 0.0 }
 0x5a9   : > { %1572 = vadd.xlane.f32.xlu0 %v1571_v13  ;;  %v1849_v37 = vpop.permute.xlu1 %1848 }
 0x5ab   : > { %v5034_v14 = vpop.eup %5033 }
 0x5ac   : > { %v1574_v15 = vsel %vm1332_vm3, %v5034_v14, 0.0 }
 0x5ad   : > { %1575 = vadd.xlane.f32.xlu0 %v1574_v15 }
 0x5c3   : > { %1584 = vrot.lane.b32.xlu0 %v6209_v60, %s5709_s27 }
 0x5c7   : > { %1798 = vrot.lane.b32.xlu0 %v6195_v49, %s5710_s8 }
 0x632   : > { %v1573_v16 = vpop.xlane.xlu0 %1572 }
 0x633   : > { %5035 = vrcp.f32 %v1573_v16 }
 0x636   : > { %v1576_v17 = vpop.xlane.xlu0 %1575 }
 0x637   : > { %5037 = vrcp.f32 %v1576_v17 }
 0x63a   : > { %v1585_v18 = vpop.permute.xlu0 %1584 }
 0x63b   : > { %v1590_v19 = vsel %vm1360_vm2, %v1585_v18, 0 }
 0x63c   : > { %4471 = vmatpush3.bf16.msra.mxu0 %v1590_v19 }
 0x63d   : > { %4482 = vmatprep.subr.bf16.mxu0 %v5707_v1 }
 0x63e   : > { %v1799_v54 = vpop.permute.xlu0 %1798 }
 0x640   : > { %v5036_v20 = vpop.eup %5035 }
 0x641   : > { %v1578_v21 = vmul.f32 %v5036_v20, %v5032_v12 }
 0x643   : > { %v1581_v25 = vpack.c.bf16 %v1578_v21, %v1578_v21 }
 0x644   : > { %v5038_v26 = vpop.eup %5037 }
 0x645   : > { %4473 = vmatmul.mubr.msk.bf16.vlgmr.msra.gmra.mxu0 %vm1332_vm3, %v1581_v25  ;;  %v1580_v27 = vmul.f32 %v5038_v26, %v5034_v14 }
 0x646   : > { %4483 = vmatpush3.bf16.msra.mxu0 %v4937_v22  ;;  %4486 = vmatprep.mubr.msk.bf16.mxu0 %vm5708_vm0, %v5707_v1 }
 0x647   : > { %v1582_v29 = vpack.c.bf16 %v1580_v27, %v1580_v27  ;;  %4484 = vmatprep.subr.bf16.mxu0 %v5707_v1 }
 0x649   : > { %4479 = vmatmul.mubr.msk.bf16.vlgmr.msra.gmra.mxu1 %vm1332_vm3, %v1582_v29 }
 0x64a   : > { %4491 = vmatpush3.bf16.msra.mxu1 %v4935_v28  ;;  %4494 = vmatprep.mubr.msk.bf16.mxu1 %vm5708_vm0, %v5707_v1 }
 0x64b   : > { %4492 = vmatprep.subr.bf16.mxu1 %v5707_v1  ;;  %4485 = vmatpush3.bf16.msra.mxu0 %v4938_v38 }
 0x64c   : > { %4498 = vmatprep.subr.bf16.mxu0 %v5707_v1 }
 0x64e   : > { %4493 = vmatpush3.bf16.msra.mxu1 %v4936_v34 }
 0x64f   : > { %4504 = vmatprep.subr.bf16.mxu1 %v5707_v1 }
 0x651   : > { %4495 = vmatmul.mubr.msk.bf16.vlgmr.msra.gmra.mxu1 %vm1239_vm1, %v1450_v46 }
 0x652   : > { %4505 = vmatpush3.bf16.xpose.msra.mxu1 %v1856_v36  ;;  %4506 = vmatprep.mubr.msk.bf16.mxu1 %vm5708_vm0, %v5707_v1 }
 0x653   : > { %4516 = vmatprep.subr.bf16.mxu1 %v5707_v1 }
 0x659   : > { %4507 = vmatmul.mubr.msk.bf16.vlgmr.msra.gmra.mxu1 %vm1239_vm1, %v1849_v37 }
 0x65a   : > { %4518 = vmatprep.mubr.msk.bf16.mxu1 %vm5708_vm0, %v5707_v1 }
 0x705   : > { %v1626_v39 = vpop.f32.mrf.mxu0 }
 0x707   : > { %v4474_v40 = vpop.f32.mrf.mxu0 }
 0x709   : > { %v1629_v42 = vpop.f32.mrf.mxu0  ;;  %v1675_v43 = vpop.f32.mrf.mxu1 }
 0x70a   : > { %v1681_v44 = vpack.c.bf16 %v1675_v43, %v1626_v39  ;;  %v4939_v43 = vld [vmem:[#allocation7 + $0x28] sm:$0xff]  }
 0x70b   : > { %v4475_v45 = vpop.f32.mrf.mxu0  ;;  %v4480_v46 = vpop.f32.mrf.mxu1 }
 0x70c   : > { %4487 = vmatmul.mubr.msk.bf16.vlgmr.msra.gmra.mxu0 %vm1239_vm1, %v1681_v44  ;;  %v4940_v44 = vld [vmem:[#allocation7 + $0x20] sm:$0xff]  }
 0x70d   : > { %4499 = vmatpush3.bf16.xpose.msra.mxu0 %v1806_v48  ;;  %v1678_v50 = vpop.f32.mrf.mxu1  ;;  %4500 = vmatprep.mubr.msk.bf16.mxu0 %vm5708_vm0, %v5707_v1 }
 0x70e   : > { %4510 = vmatprep.subr.bf16.mxu0 %v5707_v1 }
 0x70f   : > { %v4481_v52 = vpop.f32.mrf.mxu1 }
 0x711   : > { %v6297_v53 = vpop.f32.mrf.mxu1 }
 0x713   : > { %v4496_v55 = vpop.f32.mrf.mxu1 }
 0x714   : > { %4501 = vmatmul.mubr.msk.bf16.vlgmr.msra.gmra.mxu0 %vm1239_vm1, %v1799_v54 }
 0x715   : > { %v6300_v56 = vpop.f32.mrf.mxu1  ;;  %4512 = vmatprep.mubr.msk.bf16.mxu0 %vm5708_vm0, %v5707_v1 }
 0x717   : > { %v4497_v57 = vpop.f32.mrf.mxu1 }
 0x719   : > { %v1892_v58 = vpop.f32.mrf.mxu1 }
 0x71a   : > { %v1901_v59 = vsel %vm1332_vm3, %v1892_v58, -inf }
 0x71b   : > { %1902 = vmax.xlane.f32.xlu1 %v1901_v59  ;;  %v4508_v62 = vpop.f32.mrf.mxu1 }
 0x71d   : > { %v1895_v63 = vpop.f32.mrf.mxu1 }
 0x71f   : > { %v4509_v2 = vpop.f32.mrf.mxu1 }
 0x72c   : > { %1970 = vrot.lane.b32.xlu1 %v6211_v61, %s5710_s8 }
 0x730   : > { %2083 = vrot.lane.b32.xlu1 %v6184_v41, %s5711_s22 }
 0x734   : > { %2133 = vrot.lane.b32.xlu1 %v6188_v47, %s5711_s22 }
 0x738   : > { %2131 = vrot.lane.b32.xlu1 %v6202_v51, %s5711_s22 }
 0x7a4   : > { %v1903_v3 = vpop.xlane.xlu1 %1902 }
 0x7a5   : > { %v1905_v6 = vsub.f32 %v1892_v58, %v1903_v3 }
 0x7a7   : > { %v1908_v7 = vmul.f32 1.442695, %v1905_v6 }
 0x7a8   : > { %v1971_v4 = vpop.permute.xlu1 %1970 }
 0x7a9   : > { %v1976_v5 = vsel %vm1360_vm2, %v1971_v4, 0  ;;  %5039 = vpow2.f32 %v1908_v7 }
 0x7aa   : > { %4517 = vmatpush3.bf16.msra.mxu1 %v1976_v5 }
 0x7ab   : > { %4530 = vmatprep.subr.bf16.mxu1 %v5707_v1 }
 0x7ac   : > { %v2084_v26 = vpop.permute.xlu1 %2083 }
 0x7ad   : > { %v2089_v28 = vsel %vm1239_vm1, %v2084_v26, 0 }
 0x7b0   : > { %v2134_v54 = vpop.permute.xlu1 %2133 }
 0x7b1   : > { %v2139_v59 = vsel %vm1239_vm1, %v2134_v54, 0  ;;  %v4209_v54 = vld [vmem:[%s6682_s2] ss:$0 sm:$0xff] }
 0x7b4   : > { %v2132_v2 = vpop.permute.xlu1 %2131 }
 0x7b6   : > { %v5040_v51 = vpop.eup %5039 }
 0x7b7   : > { %v1913_v14 = vsel %vm1332_vm3, %v5040_v51, 0.0 }
 0x7cc   : > { %v6315_v8 = vpop.f32.mrf.mxu0 }
 0x7ce   : > { %v4488_v9 = vpop.f32.mrf.mxu0 }
 0x7cf   : > { %v1792_v9 = vadd.f32 %v6297_v53, %v6315_v8 }
 0x7d0   : > { %v6317_v41 = vpop.f32.mrf.mxu0 }
 0x7d2   : > { %v4489_v10 = vpop.f32.mrf.mxu0 }
 0x7d4   : > { %v1842_v47 = vpop.f32.mrf.mxu0 }
 0x7d5   : > { %v1898_v11 = vsel %vm1332_vm3, %v1842_v47, -inf }
 0x7d6   : > { %1899 = vmax.xlane.f32.xlu0 %v1898_v11  ;;  %v4502_v12 = vpop.f32.mrf.mxu0 }
 0x7d8   : > { %v1845_v13 = vpop.f32.mrf.mxu0 }
 0x7da   : > { %1914 = vadd.xlane.f32.xlu0 %v1913_v14  ;;  %v4503_v15 = vpop.f32.mrf.mxu0 }
 0x85f   : > { %v1900_v16 = vpop.xlane.xlu0 %1899 }
 0x860   : > { %v1904_v17 = vsub.f32 %v1842_v47, %v1900_v16 }
 0x862   : > { %v1906_v18 = vmul.f32 1.442695, %v1904_v17 }
 0x863   : > { %v1915_v19 = vpop.xlane.xlu0 %1914 }
 0x864   : > { %5041 = vpow2.f32 %v1906_v18 }
 0x865   : > { %5043 = vrcp.f32 %v1915_v19 }
 0x871   : > { %v5042_v20 = vpop.eup %5041 }
 0x872   : > { %v5044_v21 = vpop.eup %5043  ;;  %v1910_v22 = vsel %vm1332_vm3, %v5042_v20, 0.0 }
 0x873   : > { %1911 = vadd.xlane.f32.xlu0 %v1910_v22  ;;  %v1919_v25 = vmul.f32 %v5044_v21, %v5040_v51  ;;  %v1795_v51 = vadd.f32 %v6300_v56, %v6317_v41 }
 0x875   : > { %v1921_v27 = vpack.c.bf16 %v1919_v25, %v1919_v25 }
 0x877   : > { %4519 = vmatmul.mubr.msk.bf16.vlgmr.msra.gmra.mxu1 %vm1332_vm3, %v1921_v27 }
 0x878   : > { %4531 = vmatpush3.bf16.xpose.msra.mxu1 %v2089_v28  ;;  %4532 = vmatprep.mubr.msk.bf16.mxu1 %vm5708_vm0, %v5707_v1 }
 0x879   : > { %4542 = vmatprep.subr.bf16.mxu1 %v5707_v1 }
 0x889   : > { %1922 = vrot.lane.b32.xlu0 %v6209_v60, %s5710_s8 }
 0x88d   : > { %2081 = vrot.lane.b32.xlu0 %v6195_v49, %s5711_s22 }
 0x8fc   : > { %v1912_v29 = vpop.xlane.xlu0 %1911 }
 0x8fd   : > { %5045 = vrcp.f32 %v1912_v29 }
 0x900   : > { %v1923_v33 = vpop.permute.xlu0 %1922 }
 0x901   : > { %v1928_v34 = vsel %vm1360_vm2, %v1923_v33, 0 }
 0x902   : > { %4511 = vmatpush3.bf16.msra.mxu0 %v1928_v34 }
 0x903   : > { %4522 = vmatprep.subr.bf16.mxu0 %v5707_v1 }
 0x904   : > { %v2082_v35 = vpop.permute.xlu0 %2081 }
 0x905   : > { %4533 = vmatmul.mubr.msk.bf16.vlgmr.msra.gmra.mxu1 %vm1239_vm1, %v2082_v35 }
 0x906   : > { %4544 = vmatprep.mubr.msk.bf16.mxu1 %vm5708_vm0, %v5707_v1 }
 0x90a   : > { %v5046_v36 = vpop.eup %5045 }
 0x90b   : > { %v1917_v37 = vmul.f32 %v5046_v36, %v5042_v20  ;;  %v4941_v36 = vld [vmem:[#allocation7 + $0x38] sm:$0xff]  }
 0x90d   : > { %v1920_v38 = vpack.c.bf16 %v1917_v37, %v1917_v37  ;;  %v4942_v37 = vld [vmem:[#allocation7 + $0x30] sm:$0xff]  }
 0x90f   : > { %4513 = vmatmul.mubr.msk.bf16.vlgmr.msra.gmra.mxu0 %vm1332_vm3, %v1920_v38 }
 0x910   : > { %4526 = vmatprep.mubr.msk.bf16.mxu0 %vm5708_vm0, %v5707_v1  ;;  %4523 = vmatpush3.bf16.msra.mxu0 %v4939_v43 }
 0x911   : > { %4524 = vmatprep.subr.bf16.mxu0 %v5707_v1 }
 0x914   : > { %4525 = vmatpush3.bf16.msra.mxu0 %v4940_v44 }
 0x915   : > { %4536 = vmatprep.subr.bf16.mxu0 %v5707_v1 }
 0x937   : > { %v2012_v49 = vpop.f32.mrf.mxu1 }
 0x939   : > { %v4520_v39 = vpop.f32.mrf.mxu1 }
 0x93b   : > { %v2015_v40 = vpop.f32.mrf.mxu1 }
 0x93d   : > { %v4521_v42 = vpop.f32.mrf.mxu1 }
 0x9c5   : > { %v2125_v45 = vpop.f32.mrf.mxu1 }
 0x9c6   : > { %v2181_v46 = vsel %vm1332_vm3, %v2125_v45, -inf }
 0x9c7   : > { %2182 = vmax.xlane.f32.xlu0 %v2181_v46  ;;  %v4534_v48 = vpop.f32.mrf.mxu1 }
 0x9c9   : > { %v2128_v50 = vpop.f32.mrf.mxu1 }
 0x9cb   : > { %v4535_v52 = vpop.f32.mrf.mxu1 }
 0x9cf   : > { %v1964_v55 = vpop.f32.mrf.mxu0 }
 0x9d0   : > { %v2018_v57 = vpack.c.bf16 %v2012_v49, %v1964_v55 }
 0x9d1   : > { %v4514_v58 = vpop.f32.mrf.mxu0 }
 0x9d2   : > { %4527 = vmatmul.mubr.msk.bf16.vlgmr.msra.gmra.mxu0 %vm1239_vm1, %v2018_v57 }
 0x9d3   : > { %4537 = vmatpush3.bf16.xpose.msra.mxu0 %v2139_v59  ;;  %v1967_v62 = vpop.f32.mrf.mxu0  ;;  %4538 = vmatprep.mubr.msk.bf16.mxu0 %vm5708_vm0, %v5707_v1 }
 0x9d4   : > { %4548 = vmatprep.subr.bf16.mxu0 %v5707_v1 }
 0x9d5   : > { %v4515_v63 = vpop.f32.mrf.mxu0 }
 0x9da   : > { %4539 = vmatmul.mubr.msk.bf16.vlgmr.msra.gmra.mxu0 %vm1239_vm1, %v2132_v2 }
 0x9db   : > { %4550 = vmatprep.mubr.msk.bf16.mxu0 %vm5708_vm0, %v5707_v1 }
 0xa50   : > { %v2183_v3 = vpop.xlane.xlu0 %2182 }
 0xa51   : > { %v2187_v4 = vsub.f32 %v2125_v45, %v2183_v3  ;;  %v4943_v3 = vld [vmem:[#allocation14 + $0x70] ss:$8 sps:$4 sm:$0xff]  }
 0xa53   : > { %v2189_v5 = vmul.f32 1.442695, %v2187_v4  ;;  %v4945_v4 = vld [vmem:[#allocation14 + $0x74] ss:$8 sps:$4 sm:$0xff]  }
 0xa55   : > { %5047 = vpow2.f32 %v2189_v5  ;;  %v4948_v5 = vld [vmem:[#allocation14 + $0x64] ss:$8 sps:$4 sm:$0xff]  }
 0xa62   : > { %v5048_v6 = vpop.eup %5047 }
 0xa63   : > { %v2193_v7 = vsel %vm1332_vm3, %v5048_v6, 0.0 }
 0xa64   : > { %2194 = vadd.xlane.f32.xlu0 %v2193_v7  ;;  %v4951_v7 = vld [vmem:[#allocation14 + $0x54] ss:$8 sps:$4 sm:$0xff]  }
 0xa92   : > { %v2072_v10 = vpop.f32.mrf.mxu0 }
 0xa93   : > { %v2079_v47 = vadd.f32 %v2072_v10, %v1792_v9  ;;  %v4949_v9 = vld [vmem:[#allocation14 + $0x50] ss:$8 sps:$4 sm:$0xff]  }
 0xa94   : > { %v4528_v11 = vpop.f32.mrf.mxu0 }
 0xa96   : > { %v2075_v12 = vpop.f32.mrf.mxu0 }
 0xa97   : > { %v2080_v13 = vadd.f32 %v2075_v12, %v1795_v51 }
 0xa98   : > { %v4529_v14 = vpop.f32.mrf.mxu0 }
 0xa99   : > { %v4954_v14 = vld [vmem:[#allocation14 + $0x44] ss:$8 sps:$4 sm:$0xff]  }
 0xa9a   : > { %v2175_v15 = vpop.f32.mrf.mxu0 }
 0xa9b   : > { %v2184_v16 = vsel %vm1332_vm3, %v2175_v15, -inf }
 0xa9c   : > { %2185 = vmax.xlane.f32.xlu1 %v2184_v16  ;;  %v4540_v17 = vpop.f32.mrf.mxu0  ;;  %v4957_v16 = vld [vmem:[#allocation14 + $0x34] ss:$8 sps:$4 sm:$0xff]  }
 0xa9d   : > { %v4955_v17 = vld [vmem:[#allocation14 + $0x30] ss:$8 sps:$4 sm:$0xff]  }
 0xa9e   : > { %v2178_v18 = vpop.f32.mrf.mxu0 }
 0xa9f   : > { %v4958_v18 = vld [vmem:[#allocation11 + $0x38] sm:$0xff]  }
 0xaa0   : > { %v4541_v19 = vpop.f32.mrf.mxu0 }
 0xaa1   : > { %v4961_v19 = vld [vmem:[#allocation14 + $0x24] ss:$8 sps:$4 sm:$0xff]  }
 0xaad   : > { %2253 = vrot.lane.b32.xlu1 %v6211_v61, %s5711_s22 }
 0xaed   : > { %v2195_v25 = vpop.xlane.xlu0 %2194 }
 0xb25   : > { %v2186_v53 = vpop.xlane.xlu1 %2185 }
 0xb26   : > { %v2188_v8 = vsub.f32 %v2175_v15, %v2186_v53  ;;  %v4952_v15 = vld [vmem:[#allocation14 + $0x40] ss:$8 sps:$4 sm:$0xff]  }
 0xb27   : > { %v4959_v53 = vld [vmem:[#allocation14 + $0x20] ss:$8 sps:$4 sm:$0xff]  }
 0xb28   : > { %v2191_v20 = vmul.f32 1.442695, %v2188_v8  ;;  %v4962_v8 = vld [vmem:[#allocation11 + $0x30] sm:$0xff]  }
 0xb29   : > { %v2254_v21 = vpop.permute.xlu1 %2253 }
 0xb2a   : > { %5049 = vpow2.f32 %v2191_v20  ;;  %v2259_v56 = vsel %vm1360_vm2, %v2254_v21, 0  ;;  %v4965_v20 = vld [vmem:[#allocation14 + $0x14] ss:$8 sps:$4 sm:$0xff]   ;;  %v4963_v21 = vld [vmem:[#allocation14 + $0x10] ss:$8 sps:$4 sm:$0xff]  }
 0xb2b   : > { %4549 = vmatpush3.bf16.msra.mxu0 %v2259_v56  ;;  %5051 = vrcp.f32 %v2195_v25  ;;  %v4966_v56 = vld [vmem:[#allocation11 + $0x28] sm:$0xff]   ;;  %v4970_v25 = vld [vmem:[#allocation11 + $0x20] sm:$0xff]  }
 0xb2c   : > { %4562 = vmatprep.subr.bf16.mxu0 %v5707_v1 }
 0xb37   : > { %v5050_v41 = vpop.eup %5049 }
 0xb38   : > { %v2196_v22 = vsel %vm1332_vm3, %v5050_v41, 0.0  ;;  %v5052_v61 = vpop.eup %5051 }
 0xb39   : > { %2197 = vadd.xlane.f32.xlu0 %v2196_v22  ;;  %v2200_v27 = vmul.f32 %v5052_v61, %v5048_v6  ;;  %v4946_v6 = vld [vmem:[#allocation14 + $0x60] ss:$8 sps:$4 sm:$0xff]  }
 0xb3a   : > { %v4967_v22 = vld [vmem:[#allocation14] ss:$8 sps:$4 sm:$0xff]  }
 0xb3b   : > { %v2203_v33 = vpack.c.bf16 %v2200_v27, %v2200_v27  ;;  %v967_v61 = vld [vmem:[%s6102_s28] sm:$0xff] }
 0xb4f   : > { %2205 = vrot.lane.b32.xlu0 %v6209_v60, %s5711_s22 }
 0xbc2   : > { %v2198_v26 = vpop.xlane.xlu0 %2197 }
 0xbc3   : > { %5053 = vrcp.f32 %v2198_v26  ;;  %v968_v26 = vld [vmem:[%s6102_s28 + $0x8] sm:$0xff]  ;;  %s4301_s28 = sshll.u32 %s6661_s7, 8  ;;  %s5583_s7 = sshll.u32 %s5712_s10, 4  ;;  %s5584_s7 = int_to_ptr.vmem [resolvable:$false] %s5583_s7 }
 0xbc4   : > { %v2541_v27 = vpack.c.bf16 %v968_v26, %v967_v61  ;;  %s5585_s3 = scalar_lea.vmem %s5584_s7, 512  ;;  %p5586_p9 = scmp.lt.s32.totalorder %s6534_s0, %s5584_s7 }
 0xbc5   : > { %p5587_p13 = scmp.lt.s32.totalorder %s5585_s3, %s5579_s4 }
 0xbc6   : > { %v2206_v28 = vpop.permute.xlu0 %2205 }
 0xbc7   : > { %v2211_v29 = vsel %vm1360_vm2, %v2206_v28, 0  ;;  %v4971_v28 = vld [vmem:[#allocation11 + $0x18] sm:$0xff]   ;;  %p5588_p0 = por %p5587_p13, %p5586_p9 }
 0xbc8   : > { %4543 = vmatpush3.bf16.msra.mxu1 %v2211_v29  ;;  %v4972_v29 = vld [vmem:[#allocation11 + $0x10] sm:$0xff]  }
 0xbc9   : > { %4554 = vmatprep.subr.bf16.mxu1 %v5707_v1  ;;  %p5589_p7 = pnand %p5588_p0, %p5582_p8 }
 0xbcb   : > { %4545 = vmatmul.mubr.msk.bf16.vlgmr.msra.gmra.mxu1 %vm1332_vm3, %v2203_v33  ;;  %v4973_v33 = vld [vmem:[#allocation11 + $0x8] sm:$0xff]  }
 0xbcc   : > { %4558 = vmatprep.mubr.msk.bf16.mxu1 %vm5708_vm0, %v5707_v1  ;;  %4555 = vmatpush3.bf16.msra.mxu1 %v4941_v36 }
 0xbcd   : > { %4556 = vmatprep.subr.bf16.mxu1 %v5707_v1 }
 0xbd0   : > { %v5054_v34 = vpop.eup %5053  ;;  %4557 = vmatpush3.bf16.msra.mxu1 %v4942_v37 }
 0xbd1   : > { %v2202_v60 = vmul.f32 %v5054_v34, %v5050_v41  ;;  %2650 = vmatprep.subr.bf16.mxu1 %v4945_v4  ;;  %v4969_v41 = vld [vmem:[#allocation14 + $0x4] ss:$8 sps:$4 sm:$0xff]  }
 0xbd2   : > { %v4974_v34 = vld [vmem:[#allocation11] sm:$0xff]  }
 0xbd3   : > { %v2204_v35 = vpack.c.bf16 %v2202_v60, %v2202_v60 }
 0xbd5   : > { %4551 = vmatmul.mubr.msk.bf16.vlgmr.msra.gmra.mxu0 %vm1332_vm3, %v2204_v35 }
 0xbd6   : > { %4578 = vmatprep.mubr.msk.bf16.mxu0 %vm5708_vm0, %v5707_v1  ;;  %4563 = vmatpush3.bf16.msra.mxu0 %v4958_v18 }
 0xbd7   : > { %4564 = vmatprep.subr.bf16.mxu0 %v5707_v1 }
 0xbda   : > { %4565 = vmatpush3.bf16.msra.mxu0 %v4962_v8 }
 0xbdb   : > { %4566 = vmatprep.subr.bf16.mxu0 %v5707_v1 }
 0xbde   : > { %4567 = vmatpush3.bf16.msra.mxu0 %v4966_v56 }
 0xbdf   : > { %4568 = vmatprep.subr.bf16.mxu0 %v5707_v1 }
 0xbe2   : > { %4569 = vmatpush3.bf16.msra.mxu0 %v4970_v25 }
 0xbe3   : > { %4570 = vmatprep.subr.bf16.mxu0 %v5707_v1 }
 0xbe6   : > { %4571 = vmatpush3.bf16.msra.mxu0 %v4971_v28 }
 0xbe7   : > { %4572 = vmatprep.subr.bf16.mxu0 %v5707_v1 }
 0xbea   : > { %4573 = vmatpush3.bf16.msra.mxu0 %v4972_v29 }
 0xbeb   : > { %4574 = vmatprep.subr.bf16.mxu0 %v5707_v1 }
 0xbee   : > { %4575 = vmatpush3.bf16.msra.mxu0 %v4973_v33 }
 0xbef   : > { %4576 = vmatprep.subr.bf16.mxu0 %v5707_v1 }
 0xbf2   : > { %4577 = vmatpush3.bf16.msra.mxu0 %v4974_v34 }
 0xbf3   : > { %4582 = vmatprep.subr.bf16.mxu0 %v5707_v1 }
 0xc8b   : > { %v2247_v38 = vpop.f32.mrf.mxu1 }
 0xc8d   : > { %v4546_v49 = vpop.f32.mrf.mxu1 }
 0xc8f   : > { %v2250_v39 = vpop.f32.mrf.mxu1 }
 0xc91   : > { %v4547_v40 = vpop.f32.mrf.mxu1 }
 0xc92   : > { %v4210_v40 = vld [vmem:[#allocation8] ss:$0 sm:$0xff] }
 0xc95   : > { %v2295_v42 = vpop.f32.mrf.mxu0 }
 0xc96   : > { %v2301_v43 = vpack.c.bf16 %v2295_v42, %v2247_v38 }
 0xc97   : > { %v4552_v44 = vpop.f32.mrf.mxu0 }
 0xc98   : > { %4559 = vmatmul.mubr.msk.bf16.vlgmr.msra.gmra.mxu1 %vm1239_vm1, %v2301_v43  ;;  %v4211_v43 = vld [vmem:[#allocation10] ss:$0 sm:$0xff] }
 0xc99   : > { %v2298_v45 = vpop.f32.mrf.mxu0  ;;  %2682 = vmatprep.mubr.bf16.mxu1 %v5706_v0  ;;  %2651 = vmatpush1.bf16.msra.mxu1 %v4943_v3  ;;  %v2558_v3 = vld [vmem:[#allocation16] sm:$0x3] }
 0xc9a   : > { %2652 = vmatprep.subr.bf16.mxu1 %v4948_v5  ;;  %v2563_v4 = vrot.slane %v2558_v3, %v6177_v32 }
 0xc9b   : > { %v4553_v46 = vpop.f32.mrf.mxu0 }
 0xc9d   : > { %2653 = vmatpush1.bf16.msra.mxu1 %v4946_v6  ;;  %v2567_v6 = vrot.slane %v2558_v3, %v6174_v31  ;;  %v4976_v3 = vld [vmem:[#allocation17] sm:$0xff]  }
 0xc9e   : > { %2654 = vmatprep.subr.bf16.mxu1 %v4951_v7 }
 0xca1   : > { %2655 = vmatpush1.bf16.msra.mxu1 %v4949_v9 }
 0xca2   : > { %2656 = vmatprep.subr.bf16.mxu1 %v4954_v14  ;;  %v4212_v14 = vld [vmem:[#allocation13] ss:$0 sm:$0xff] }
 0xca5   : > { %2657 = vmatpush1.bf16.msra.mxu1 %v4952_v15 }
 0xca6   : > { %2658 = vmatprep.subr.bf16.mxu1 %v4957_v16 }
 0xca9   : > { %2659 = vmatpush1.bf16.msra.mxu1 %v4955_v17 }
 0xcaa   : > { %2660 = vmatprep.subr.bf16.mxu1 %v4961_v19 }
 0xcad   : > { %2661 = vmatpush1.bf16.msra.mxu1 %v4959_v53 }
 0xcae   : > { %2662 = vmatprep.subr.bf16.mxu1 %v4965_v20 }
 0xcb1   : > { %2663 = vmatpush1.bf16.msra.mxu1 %v4963_v21 }
 0xcb2   : > { %2664 = vmatprep.subr.bf16.mxu1 %v4969_v41 }
 0xcb5   : > { %2665 = vmatpush1.bf16.msra.mxu1 %v4967_v22 }
 0xcb6   : > { %4588 = vmatprep.subr.bf16.mxu1 %v5707_v1 }
 0xcb8   : > { %2683 = vmatmul.mubr.bf16.vlgmr.msra.gmra.mxu1 %v2541_v27 }
 0xcb9   : > { %4590 = vmatprep.mubr.msk.bf16.mxu1 %vm5708_vm0, %v5707_v1 }
 0xd58   : > { %v2355_v48 = vpop.f32.mrf.mxu1 }
 0xd59   : > { %v2362_v50 = vadd.f32 %v2355_v48, %v2079_v47 }
 0xd5a   : > { %v4560_v52 = vpop.f32.mrf.mxu1 }
 0xd5b   : > { %v2364_v55 = vadd.f32 %v2362_v50, %v6153_v23 }
 0xd5c   : > { %v2358_v57 = vpop.f32.mrf.mxu1 }
 0xd5d   : > { %v2363_v58 = vadd.f32 %v2358_v57, %v2080_v13  ;;  %v2373_v59 = vadd.f32 %v4209_v54, %v2364_v55 }
 0xd5e   : > { %v4561_v62 = vpop.f32.mrf.mxu1 }
 0xd5f   : > { %v2365_v63 = vadd.f32 %v2363_v58, %v6155_v24  ;;  %2377 = vadd.xlane.f32.xlu1 %v2373_v59 }
 0xd61   : > { %v2374_v2 = vadd.f32 %v4209_v54, %v2365_v63 }
 0xd63   : > { %2379 = vadd.xlane.f32.xlu0 %v2374_v2 }
 0xd78   : > { %v2684_v5 = vpop.f32.mrf.mxu1 }
 0xd79   : > { %v2685_v9 = vadd.f32 %v2684_v5, %v2563_v4 }
 0xd7a   : > { %v2686_v7 = vpop.f32.mrf.mxu1 }
 0xde8   : > { %v2378_v23 = vpop.xlane.xlu1 %2377 }
 0xde9   : > { %v2382_v10 = vmul.f32 0.0078125, %v2378_v23  ;;  %v2688_v23 = vpop.f32.mrf.mxu1 }
 0xdeb   : > { %v6379_v47 = vsub.f32 %v2373_v59, %v2382_v10  ;;  %v2687_v10 = vadd.f32 %v2686_v7, %v2567_v6 }
 0xdec   : > { %v2380_v24 = vpop.xlane.xlu0 %2379 }
 0xded   : > { %v2383_v11 = vmul.f32 0.0078125, %v2380_v24  ;;  %v2386_v51 = vmul.f32 %v6379_v47, %v6379_v47  ;;  %v2690_v24 = vpop.f32.mrf.mxu1 }
 0xdef   : > { %v6383_v12 = vsub.f32 %v2374_v2, %v2383_v11  ;;  %2388 = vadd.xlane.f32.xlu0 %v2386_v51  ;;  %v2691_v51 = vadd.f32 %v2690_v24, %v2567_v6 }
 0xdf1   : > { %v2387_v13 = vmul.f32 %v6383_v12, %v6383_v12 }
 0xdf3   : > { %2390 = vadd.xlane.f32.xlu1 %v2387_v13 }
 0xe78   : > { %v2389_v60 = vpop.xlane.xlu0 %2388 }
 0xe79   : > { %v2392_v35 = vmul.f32 0.0078125, %v2389_v60 }
 0xe7b   : > { %v2394_v36 = vadd.f32 1e-05, %v2392_v35 }
 0xe7c   : > { %v2391_v37 = vpop.xlane.xlu1 %2390 }
 0xe7d   : > { %5055 = vrsqrt.f32 %v2394_v36  ;;  %v2393_v38 = vmul.f32 0.0078125, %v2391_v37 }
 0xe7f   : > { %v2395_v49 = vadd.f32 1e-05, %v2393_v38 }
 0xe81   : > { %5057 = vrsqrt.f32 %v2395_v49 }
 0xe8a   : > { %v5056_v39 = vpop.eup %5055 }
 0xe8b   : > { %v2398_v42 = vmul.f32 %v5056_v39, %v6379_v47  ;;  %v2689_v47 = vadd.f32 %v2688_v23, %v2563_v4 }
 0xe8d   : > { %v2406_v44 = vmul.f32 %v4210_v40, %v2398_v42  ;;  %v6414_v11 = vpack.c.bf16 %v2689_v47, %v2685_v9 }
 0xe8e   : > { %v5058_v45 = vpop.eup %5057 }
 0xe8f   : > { %v2399_v46 = vmul.f32 %v5058_v45, %v6383_v12  ;;  %v6402_v48 = vadd.f32 %v4211_v43, %v2406_v44  ;;  %v6416_v12 = vpack.c.bf16 %v2691_v51, %v2687_v10  ;;  %2807 = vrot.lane.b32.xlu0 %v6414_v11, %s5709_s27  ;;  %v2699_v13 = vsel %vm1239_vm1, %v6414_v11, 0 }
 0xe91   : > { %v2407_v50 = vmul.f32 %v4210_v40, %v2399_v46  ;;  %v2416_v52 = vpack.c.bf16 %v6402_v48, %v6402_v48  ;;  %4589 = vmatpush3.bf16.msra.mxu1 %v6416_v12 }
 0xe92   : > { %4600 = vmatprep.subr.bf16.mxu1 %v5707_v1 }
 0xe93   : > { %v6406_v54 = vadd.f32 %v4211_v43, %v2407_v50  ;;  %v2443_v57 = vunpack.c.l.b16 %v2416_v52 }
 0xe95   : > { %v2417_v55 = vpack.c.bf16 %v6406_v54, %v6406_v54  ;;  %v2445_v59 = vrot.slane %v2443_v57, 7  ;;  %v4978_v57 = vld [vmem:[#allocation17 + $0x10] sm:$0xff]  }
 0xe97   : > { %v2444_v58 = vunpack.c.l.b16 %v2417_v55  ;;  %v4977_v55 = vld [vmem:[#allocation17 + $0x18] sm:$0xff]  }
 0xe99   : > { %v2446_v62 = vrot.slane %v2444_v58, 6 }
 0xe9b   : > { %v2448_v63 = vsel %vm2447_vm4, %v2446_v62, %v2445_v59 }
 0xe9c   : > { %v2449_v2 = vpack.c.b16 %v2448_v63, %v2448_v63  ;;  %v4975_v63 = vld [vmem:[#allocation17 + $0x8] sm:$0xff]  }
 0xe9e   : > { %4579 = vmatmul.mubr.bf16.vlgmr.msra.gmra.mxu0 %v2449_v2 }
 0xe9f   : > { %4584 = vmatprep.mubr.msk.bf16.mxu0 %vm5708_vm0, %v5707_v1  ;;  %4583 = vmatpush3.bf16.xpose.msra.mxu0 %v2699_v13 }
 0xea0   : > { %4594 = vmatprep.subr.bf16.mxu0 %v5707_v1 }
 0xf01   : > { %v2808_v18 = vpop.permute.xlu0 %2807 }
 0xf02   : > { %v2813_v20 = vsel %vm1239_vm1, %v2808_v18, 0 }
 0xf5e   : > { %v2533_v15 = vpop.f32.mrf.mxu0 }
 0xf5f   : > { %v2534_v16 = vadd.f32 %v4212_v14, %v2533_v15 }
 0xf60   : > { %v4580_v17 = vpop.f32.mrf.mxu0 }
 0xf61   : > { %v2539_v19 = vmul.f32 0.17677669, %v2534_v16 }
 0xf62   : > { %v2536_v53 = vpop.f32.mrf.mxu0 }
 0xf63   : > { %v6425_v8 = vpack.c.bf16 %v2539_v19, %v2539_v19 }
 0xf64   : > { %v4581_v21 = vpop.f32.mrf.mxu0 }
 0xf65   : > { %2804 = vrot.lane.b32.xlu1 %v6425_v8, %s5709_s27  ;;  %4585 = vmatmul.mubr.msk.bf16.vlgmr.msra.gmra.mxu0 %vm1239_vm1, %v6425_v8 }
 0xf66   : > { %4595 = vmatpush3.bf16.xpose.msra.mxu0 %v2813_v20  ;;  %4596 = vmatprep.mubr.msk.bf16.mxu0 %vm5708_vm0, %v5707_v1 }
 0xf67   : > { %4606 = vmatprep.subr.bf16.mxu0 %v5707_v1 }
 0xfd7   : > { %v2805_v56 = vpop.permute.xlu1 %2804 }
 0xfd8   : > { %4597 = vmatmul.mubr.msk.bf16.vlgmr.msra.gmra.mxu0 %vm1239_vm1, %v2805_v56 }
 0xfd9   : > { %4610 = vmatprep.mubr.msk.bf16.mxu0 %vm5708_vm0, %v5707_v1  ;;  %4607 = vmatpush3.bf16.msra.mxu0 %v4977_v55 }
 0xfda   : > { %4608 = vmatprep.subr.bf16.mxu0 %v5707_v1 }
 0xfdd   : > { %4609 = vmatpush3.bf16.msra.mxu0 %v4978_v57 }
 0xfde   : > { %4622 = vmatprep.subr.bf16.mxu0 %v5707_v1 }
0x1025   : > { %v2735_v41 = vpop.f32.mrf.mxu0 }
0x1026   : > { %v2742_v22 = vsel %vm2741_vm5, %v2735_v41, -inf }
0x1027   : > { %2743 = vmax.xlane.f32.xlu1 %v2742_v22  ;;  %v4586_v25 = vpop.f32.mrf.mxu0 }
0x1029   : > { %v2738_v61 = vpop.f32.mrf.mxu0 }
0x102b   : > { %v4587_v26 = vpop.f32.mrf.mxu0 }
0x1098   : > { %v2849_v27 = vpop.f32.mrf.mxu0 }
0x1099   : > { %v2855_v28 = vsel %vm2741_vm5, %v2849_v27, -inf }
0x109a   : > { %2856 = vmax.xlane.f32.xlu0 %v2855_v28  ;;  %v4598_v29 = vpop.f32.mrf.mxu0 }
0x109c   : > { %v2852_v33 = vpop.f32.mrf.mxu0 }
0x109e   : > { %v4599_v34 = vpop.f32.mrf.mxu0 }
0x10b0   : > { %v2744_v60 = vpop.xlane.xlu1 %2743 }
0x10b1   : > { %v2745_v35 = vsub.f32 %v2735_v41, %v2744_v60  ;;  %v4979_v60 = vld [vmem:[#allocation17 + $0x28] sm:$0xff]  }
0x10b3   : > { %v2746_v36 = vmul.f32 1.442695, %v2745_v35 }
0x10b5   : > { %5059 = vpow2.f32 %v2746_v36 }
0x10c2   : > { %v5060_v37 = vpop.eup %5059 }
0x10c3   : > { %v2748_v38 = vsel %vm2741_vm5, %v5060_v37, 0.0 }
0x10c4   : > { %2749 = vadd.xlane.f32.xlu0 %v2748_v38 }
0x10da   : > { %2868 = vrot.lane.b32.xlu0 %v6416_v12, %s5709_s27  ;;  %s6683_s27 = sld [smem:[#allocation60_spill]] }
0x1123   : > { %v2857_v49 = vpop.xlane.xlu0 %2856 }
0x1124   : > { %v2858_v39 = vsub.f32 %v2849_v27, %v2857_v49 }
0x1126   : > { %v2859_v40 = vmul.f32 1.442695, %v2858_v39 }
0x1128   : > { %5061 = vpow2.f32 %v2859_v40  ;;  %v4980_v40 = vld [vmem:[#allocation17 + $0x20] sm:$0xff]  }
0x1135   : > { %v5062_v42 = vpop.eup %5061 }
0x1136   : > { %v2861_v43 = vsel %vm2741_vm5, %v5062_v42, 0.0 }
0x1137   : > { %2862 = vadd.xlane.f32.xlu1 %v2861_v43 }
0x1148   : > { %3031 = vrot.lane.b32.xlu1 %v6414_v11, %s5710_s8 }
0x114c   : > { %3029 = vrot.lane.b32.xlu1 %v6425_v8, %s5710_s8 }
0x114d   : > { %v2750_v44 = vpop.xlane.xlu0 %2749 }
0x114e   : > { %5063 = vrcp.f32 %v2750_v44 }
0x1151   : > { %v2869_v52 = vpop.permute.xlu0 %2868 }
0x115b   : > { %v5064_v45 = vpop.eup %5063 }
0x115c   : > { %v2752_v46 = vmul.f32 %v5064_v45, %v5060_v37 }
0x115e   : > { %v2753_v50 = vpack.c.bf16 %v2752_v46, %v2752_v46 }
0x1160   : > { %4591 = vmatmul.mubr.msk.bf16.vlgmr.msra.gmra.mxu1 %vm2754_vm6, %v2753_v50 }
0x1161   : > { %4601 = vmatpush3.bf16.msra.mxu1 %v2869_v52  ;;  %4602 = vmatprep.mubr.msk.bf16.mxu1 %vm5708_vm0, %v5707_v1 }
0x1162   : > { %4614 = vmatprep.subr.bf16.mxu1 %v5707_v1 }
0x11c0   : > { %v2863_v58 = vpop.xlane.xlu1 %2862 }
0x11c1   : > { %5065 = vrcp.f32 %v2863_v58 }
0x11c4   : > { %v3032_v23 = vpop.permute.xlu1 %3031 }
0x11c5   : > { %v3037_v51 = vsel %vm1239_vm1, %v3032_v23, 0 }
0x11c8   : > { %v3030_v15 = vpop.permute.xlu1 %3029 }
0x11ce   : > { %v5066_v59 = vpop.eup %5065 }
0x11cf   : > { %v2865_v62 = vmul.f32 %v5066_v59, %v5062_v42 }
0x11d1   : > { %v2866_v2 = vpack.c.bf16 %v2865_v62, %v2865_v62 }
0x11d3   : > { %4603 = vmatmul.mubr.msk.bf16.vlgmr.msra.gmra.mxu1 %vm2754_vm6, %v2866_v2 }
0x11d4   : > { %4615 = vmatpush3.bf16.msra.mxu1 %v4975_v63  ;;  %4618 = vmatprep.mubr.msk.bf16.mxu1 %vm5708_vm0, %v5707_v1 }
0x11d5   : > { %4616 = vmatprep.subr.bf16.mxu1 %v5707_v1 }
0x11d8   : > { %4617 = vmatpush3.bf16.msra.mxu1 %v4976_v3 }
0x11d9   : > { %4628 = vmatprep.subr.bf16.mxu1 %v5707_v1 }
0x1220   : > { %v2792_v4 = vpop.f32.mrf.mxu1 }
0x1221   : > { %v2798_v5 = vpack.c.bf16 %v2792_v4, %v2792_v4 }
0x1222   : > { %v4592_v6 = vpop.f32.mrf.mxu1 }
0x1223   : > { %4619 = vmatmul.mubr.msk.bf16.vlgmr.msra.gmra.mxu1 %vm1239_vm1, %v2798_v5 }
0x1224   : > { %v2795_v7 = vpop.f32.mrf.mxu1  ;;  %4630 = vmatprep.mubr.msk.bf16.mxu1 %vm5708_vm0, %v5707_v1 }
0x1225   : > { %v4981_v7 = vld [vmem:[#allocation17 + $0x38] sm:$0xff]  }
0x1226   : > { %v4593_v9 = vpop.f32.mrf.mxu1 }
0x1293   : > { %v2908_v10 = vpop.f32.mrf.mxu1 }
0x1294   : > { %v2914_v47 = vpack.c.bf16 %v2908_v10, %v2908_v10 }
0x1295   : > { %v4604_v24 = vpop.f32.mrf.mxu1 }
0x1296   : > { %4611 = vmatmul.mubr.msk.bf16.vlgmr.msra.gmra.mxu0 %vm1239_vm1, %v2914_v47 }
0x1297   : > { %4623 = vmatpush3.bf16.xpose.msra.mxu0 %v3037_v51  ;;  %v2911_v13 = vpop.f32.mrf.mxu1  ;;  %4624 = vmatprep.mubr.msk.bf16.mxu0 %vm5708_vm0, %v5707_v1 }
0x1298   : > { %4634 = vmatprep.subr.bf16.mxu0 %v5707_v1 }
0x1299   : > { %v4605_v14 = vpop.f32.mrf.mxu1 }
0x129a   : > { %v4982_v14 = vld [vmem:[#allocation17 + $0x30] sm:$0xff]  }
0x129e   : > { %4625 = vmatmul.mubr.msk.bf16.vlgmr.msra.gmra.mxu0 %vm1239_vm1, %v3030_v15 }
0x129f   : > { %4638 = vmatprep.mubr.msk.bf16.mxu0 %vm5708_vm0, %v5707_v1  ;;  %4635 = vmatpush3.bf16.msra.mxu0 %v4979_v60 }
0x12a0   : > { %4636 = vmatprep.subr.bf16.mxu0 %v5707_v1 }
0x12a3   : > { %4637 = vmatpush3.bf16.msra.mxu0 %v4980_v40 }
0x12a4   : > { %4648 = vmatprep.subr.bf16.mxu0 %v5707_v1 }
0x12e3   : > { %v6470_v16 = vpop.f32.mrf.mxu1 }
0x12e5   : > { %v4620_v17 = vpop.f32.mrf.mxu1 }
0x12e7   : > { %v3026_v18 = vpop.f32.mrf.mxu1 }
0x12e9   : > { %v4621_v19 = vpop.f32.mrf.mxu1 }
0x1356   : > { %v6472_v53 = vpop.f32.mrf.mxu0 }
0x1357   : > { %v3024_v5 = vadd.f32 %v6470_v16, %v6472_v53 }
0x1358   : > { %v4612_v20 = vpop.f32.mrf.mxu0 }
0x135a   : > { %v2971_v21 = vpop.f32.mrf.mxu0 }
0x135c   : > { %v4613_v56 = vpop.f32.mrf.mxu0 }
0x135e   : > { %v3073_v41 = vpop.f32.mrf.mxu0 }
0x135f   : > { %v3079_v22 = vsel %vm2741_vm5, %v3073_v41, -inf }
0x1360   : > { %3080 = vmax.xlane.f32.xlu1 %v3079_v22  ;;  %v4626_v25 = vpop.f32.mrf.mxu0  ;;  %v4257_v22 = vld [vmem:[#allocation19] ss:$0 sm:$0xff] }
0x1362   : > { %v3076_v61 = vpop.f32.mrf.mxu0 }
0x1364   : > { %v4627_v26 = vpop.f32.mrf.mxu0 }
0x1371   : > { %3200 = vrot.lane.b32.xlu1 %v6414_v11, %s5711_s22 }
0x1375   : > { %3198 = vrot.lane.b32.xlu1 %v6425_v8, %s5711_s22 }
0x13e9   : > { %v3081_v27 = vpop.xlane.xlu1 %3080 }
0x13ea   : > { %v3082_v28 = vsub.f32 %v3073_v41, %v3081_v27 }
0x13ec   : > { %v3083_v29 = vmul.f32 1.442695, %v3082_v28 }
0x13ed   : > { %v3201_v37 = vpop.permute.xlu1 %3200 }
0x13ee   : > { %5067 = vpow2.f32 %v3083_v29  ;;  %v3206_v49 = vsel %vm1239_vm1, %v3201_v37, 0 }
0x13f1   : > { %v3199_v39 = vpop.permute.xlu1 %3198 }
0x13fb   : > { %v5068_v33 = vpop.eup %5067 }
0x13fc   : > { %v3085_v34 = vsel %vm2741_vm5, %v5068_v33, 0.0 }
0x13fd   : > { %3086 = vadd.xlane.f32.xlu0 %v3085_v34 }
0x1413   : > { %3091 = vrot.lane.b32.xlu0 %v6416_v12, %s5710_s8  ;;  %s6532_s8 = scalar_lea.hbm %s6683_s27, %s4301_s28 }
0x1486   : > { %v3087_v35 = vpop.xlane.xlu0 %3086 }
0x1487   : > { %5069 = vrcp.f32 %v3087_v35 }
0x148a   : > { %v3092_v11 = vpop.permute.xlu0 %3091 }
0x148b   : > { %4629 = vmatpush3.bf16.msra.mxu1 %v3092_v11 }
0x148c   : > { %4642 = vmatprep.subr.bf16.mxu1 %v5707_v1 }
0x1494   : > { %v5070_v8 = vpop.eup %5069 }
0x1495   : > { %v3089_v36 = vmul.f32 %v5070_v8, %v5068_v33 }
0x1497   : > { %v3090_v38 = vpack.c.bf16 %v3089_v36, %v3089_v36 }
0x1499   : > { %4631 = vmatmul.mubr.msk.bf16.vlgmr.msra.gmra.mxu1 %vm2754_vm6, %v3090_v38 }
0x149a   : > { %4643 = vmatpush3.bf16.xpose.msra.mxu1 %v3206_v49  ;;  %4644 = vmatprep.mubr.msk.bf16.mxu1 %vm5708_vm0, %v5707_v1 }
0x149b   : > { %4654 = vmatprep.subr.bf16.mxu1 %v5707_v1 }
0x14a1   : > { %4645 = vmatmul.mubr.msk.bf16.vlgmr.msra.gmra.mxu1 %vm1239_vm1, %v3199_v39 }
0x14a2   : > { %4658 = vmatprep.mubr.msk.bf16.mxu1 %vm5708_vm0, %v5707_v1  ;;  %4655 = vmatpush3.bf16.msra.mxu1 %v4981_v7  ;;  %v5008_v7 = vld [vmem:[#allocation26 + $0x38] sm:$0xff]  }
0x14a3   : > { %4656 = vmatprep.subr.bf16.mxu1 %v5707_v1 }
0x14a6   : > { %4657 = vmatpush3.bf16.msra.mxu1 %v4982_v14 }
0x1559   : > { %v3131_v42 = vpop.f32.mrf.mxu1 }
0x155a   : > { %v3137_v43 = vpack.c.bf16 %v3131_v42, %v3131_v42 }
0x155b   : > { %v4632_v44 = vpop.f32.mrf.mxu1 }
0x155c   : > { %4639 = vmatmul.mubr.msk.bf16.vlgmr.msra.gmra.mxu0 %vm1239_vm1, %v3137_v43  ;;  %v4985_v43 = vld [vmem:[#allocation23 + $0x74] ss:$8 sps:$4 sm:$0xff]   ;;  %v4983_v44 = vld [vmem:[#allocation23 + $0x70] ss:$8 sps:$4 sm:$0xff]  }
0x155d   : > { %v3134_v45 = vpop.f32.mrf.mxu1  ;;  %4650 = vmatprep.mubr.msk.bf16.mxu0 %vm5708_vm0, %v5707_v1 }
0x155e   : > { %v4988_v45 = vld [vmem:[#allocation23 + $0x64] ss:$8 sps:$4 sm:$0xff]  }
0x155f   : > { %v4633_v46 = vpop.f32.mrf.mxu1 }
0x1560   : > { %v4986_v46 = vld [vmem:[#allocation23 + $0x60] ss:$8 sps:$4 sm:$0xff]  }
0x1561   : > { %v3242_v50 = vpop.f32.mrf.mxu1 }
0x1562   : > { %v3248_v52 = vsel %vm2741_vm5, %v3242_v50, -inf }
0x1563   : > { %3249 = vmax.xlane.f32.xlu0 %v3248_v52  ;;  %v4646_v55 = vpop.f32.mrf.mxu1  ;;  %v4989_v52 = vld [vmem:[#allocation23 + $0x50] ss:$8 sps:$4 sm:$0xff]  }
0x1564   : > { %v4994_v55 = vld [vmem:[#allocation23 + $0x44] ss:$8 sps:$4 sm:$0xff]  }
0x1565   : > { %v3245_v57 = vpop.f32.mrf.mxu1 }
0x1566   : > { %v4992_v57 = vld [vmem:[#allocation23 + $0x40] ss:$8 sps:$4 sm:$0xff]  }
0x1567   : > { %v4647_v58 = vpop.f32.mrf.mxu1 }
0x1568   : > { %v4997_v58 = vld [vmem:[#allocation23 + $0x34] ss:$8 sps:$4 sm:$0xff]  }
0x1579   : > { %3260 = vrot.lane.b32.xlu0 %v6416_v12, %s5711_s22  ;;  %s3841_s22 = scalar_lea.sflag [#allocation4], %s6096_s26 }
0x15ec   : > { %v3250_v59 = vpop.xlane.xlu0 %3249 }
0x15ed   : > { %v3251_v62 = vsub.f32 %v3242_v50, %v3250_v59  ;;  %v4991_v50 = vld [vmem:[#allocation23 + $0x54] ss:$8 sps:$4 sm:$0xff]   ;;  %v4995_v59 = vld [vmem:[#allocation23 + $0x30] ss:$8 sps:$4 sm:$0xff]  }
0x15ef   : > { %v3252_v63 = vmul.f32 1.442695, %v3251_v62  ;;  %v5000_v62 = vld [vmem:[#allocation23 + $0x24] ss:$8 sps:$4 sm:$0xff]  }
0x15f0   : > { %v3261_v2 = vpop.permute.xlu0 %3260 }
0x15f1   : > { %5071 = vpow2.f32 %v3252_v63  ;;  %4649 = vmatpush3.bf16.msra.mxu0 %v3261_v2  ;;  %v4998_v63 = vld [vmem:[#allocation23 + $0x20] ss:$8 sps:$4 sm:$0xff]   ;;  %v5001_v2 = vld [vmem:[#allocation23 + $0x10] ss:$8 sps:$4 sm:$0xff]  }
0x15f2   : > { %3571 = vmatprep.subr.bf16.mxu0 %v4985_v43 }
0x15fe   : > { %v5072_v3 = vpop.eup %5071 }
0x15ff   : > { %v3254_v4 = vsel %vm2741_vm5, %v5072_v3, 0.0 }
0x1600   : > { %3255 = vadd.xlane.f32.xlu1 %v3254_v4  ;;  %v5006_v4 = vld [vmem:[#allocation23 + $0x4] ss:$8 sps:$4 sm:$0xff]  }
0x161c   : > { %v3191_v6 = vpop.f32.mrf.mxu0 }
0x161d   : > { %v3197_v9 = vadd.f32 %v3191_v6, %v3024_v5  ;;  %v5004_v5 = vld [vmem:[#allocation23] ss:$8 sps:$4 sm:$0xff]  }
0x161e   : > { %v4640_v23 = vpop.f32.mrf.mxu0  ;;  %v5007_v6 = vld [vmem:[#allocation26 + $0x78] sm:$0xff]  }
0x161f   : > { %4392 = vmatprep.subr.bf16.mxu1 %v5007_v6  ;;  %v5010_v23 = vld [vmem:[#allocation26 + $0x30] sm:$0xff]  }
0x1620   : > { %v3194_v12 = vpop.f32.mrf.mxu0 }
0x1621   : > { %v5011_v12 = vld [vmem:[#allocation26 + $0x68] sm:$0xff]  }
0x1622   : > { %v4641_v10 = vpop.f32.mrf.mxu0 }
0x1623   : > { %v5012_v10 = vld [vmem:[#allocation26 + $0x28] sm:$0xff]  }
0x1689   : > { %v3256_v47 = vpop.xlane.xlu1 %3255 }
0x168a   : > { %5073 = vrcp.f32 %v3256_v47  ;;  %v5013_v47 = vld [vmem:[#allocation26 + $0x60] sm:$0xff]  }
0x1697   : > { %v5074_v24 = vpop.eup %5073 }
0x1698   : > { %v3258_v51 = vmul.f32 %v5074_v24, %v5072_v3  ;;  %v5003_v3 = vld [vmem:[#allocation23 + $0x14] ss:$8 sps:$4 sm:$0xff]   ;;  %v5014_v24 = vld [vmem:[#allocation26 + $0x20] sm:$0xff]  }
0x169a   : > { %v3259_v13 = vpack.c.bf16 %v3258_v51, %v3258_v51  ;;  %v5015_v51 = vld [vmem:[#allocation26 + $0x58] sm:$0xff]  }
0x169c   : > { %4651 = vmatmul.mubr.msk.bf16.vlgmr.msra.gmra.mxu0 %vm2754_vm6, %v3259_v13  ;;  %v5016_v13 = vld [vmem:[#allocation26 + $0x18] sm:$0xff]  }
0x169d   : > { %3603 = vmatprep.mubr.bf16.mxu0 %v5706_v0  ;;  %3572 = vmatpush1.bf16.msra.mxu0 %v4983_v44 }
0x169e   : > { %3573 = vmatprep.subr.bf16.mxu0 %v4988_v45 }
0x16a1   : > { %3574 = vmatpush1.bf16.msra.mxu0 %v4986_v46 }
0x16a2   : > { %3575 = vmatprep.subr.bf16.mxu0 %v4991_v50 }
0x16a5   : > { %3576 = vmatpush1.bf16.msra.mxu0 %v4989_v52 }
0x16a6   : > { %3577 = vmatprep.subr.bf16.mxu0 %v4994_v55 }
0x16a9   : > { %3578 = vmatpush1.bf16.msra.mxu0 %v4992_v57 }
0x16aa   : > { %3579 = vmatprep.subr.bf16.mxu0 %v4997_v58 }
0x16ad   : > { %3580 = vmatpush1.bf16.msra.mxu0 %v4995_v59 }
0x16ae   : > { %3581 = vmatprep.subr.bf16.mxu0 %v5000_v62 }
0x16b1   : > { %3582 = vmatpush1.bf16.msra.mxu0 %v4998_v63  ;;  %v4276_v63 = vld [vmem:[#allocation28] ss:$0 sm:$0xff] }
0x16b2   : > { %3583 = vmatprep.subr.bf16.mxu0 %v5003_v3 }
0x16b5   : > { %3584 = vmatpush1.bf16.msra.mxu0 %v5001_v2 }
0x16b6   : > { %3585 = vmatprep.subr.bf16.mxu0 %v5006_v4 }
0x16b9   : > { %3586 = vmatpush1.bf16.msra.mxu0 %v5004_v5 }
0x175c   : > { %v3300_v15 = vpop.f32.mrf.mxu0 }
0x175d   : > { %v3306_v16 = vpack.c.bf16 %v3300_v15, %v3300_v15 }
0x175e   : > { %v4652_v17 = vpop.f32.mrf.mxu0 }
0x175f   : > { %4659 = vmatmul.mubr.msk.bf16.vlgmr.msra.gmra.mxu1 %vm1239_vm1, %v3306_v16 }
0x1760   : > { %v3303_v18 = vpop.f32.mrf.mxu0  ;;  %4393 = vmatpush3.bf16.msra.mxu1 %v5008_v7 }
0x1762   : > { %v4653_v1 = vpop.f32.mrf.mxu0 }
0x181f   : > { %v3360_v19 = vpop.f32.mrf.mxu1 }
0x1820   : > { %v3366_v53 = vadd.f32 %v3360_v19, %v3197_v9  ;;  %v5009_v9 = vld [vmem:[#allocation26 + $0x70] sm:$0xff]  }
0x1821   : > { %v4660_v20 = vpop.f32.mrf.mxu1  ;;  %4394 = vmatprep.subr.bf16.mxu1 %v5009_v9 }
0x1822   : > { %v3368_v21 = vrot.slane %v3366_v53, 1  ;;  %v3369_v56 = vrot.slane %v3366_v53, 2  ;;  %4395 = vmatpush3.bf16.msra.mxu1 %v5010_v23  ;;  %v4258_v20 = vld [vmem:[#allocation20] ss:$0 sm:$0xff] }
0x1823   : > { %v3363_v41 = vpop.f32.mrf.mxu1  ;;  %4396 = vmatprep.subr.bf16.mxu1 %v5011_v12 }
0x1824   : > { %v3373_v25 = vadd.f32 %v3369_v56, %v6406_v54  ;;  %v3372_v26 = vadd.f32 %v3368_v21, %v6402_v48  ;;  %v4259_v41 = vld [vmem:[#allocation22] ss:$0 sm:$0xff] }
0x1825   : > { %v4661_v61 = vpop.f32.mrf.mxu1 }
0x1826   : > { %v3382_v0 = vadd.f32 %v4257_v22, %v3373_v25  ;;  %v3381_v29 = vadd.f32 %v4257_v22, %v3372_v26  ;;  %4397 = vmatpush3.bf16.msra.mxu1 %v5012_v10  ;;  %v3453_v61 = vsub.s32 7, %v6171_v30  ;;  %v3479_v30 = vld [vmem:[#allocation25] sm:$0x3] }
0x1827   : > { %4398 = vmatprep.subr.bf16.mxu1 %v5013_v47 }
0x1828   : > { %v3387_v27 = vrot.slane %v3382_v0, 7  ;;  %v3391_v33 = vsel %vm3390_vm8, %v3381_v29, 0.0 }
0x182a   : > { %v3395_v28 = vsel %vm3394_vm7, %v3387_v27, 0.0  ;;  %4399 = vmatpush3.bf16.msra.mxu1 %v5014_v24 }
0x182b   : > { %3396 = vadd.xlane.f32.xlu1 %v3395_v28  ;;  %4400 = vmatprep.subr.bf16.mxu1 %v5015_v51 }
0x182e   : > { %4401 = vmatpush3.bf16.msra.mxu1 %v5016_v13 }
0x182f   : > { %3392 = vadd.xlane.f32.xlu1 %v3391_v33 }
0x18b4   : > { %v3397_v34 = vpop.xlane.xlu1 %3396 }
0x18b5   : > { %v3399_v60 = vmul.f32 0.0078125, %v3397_v34 }
0x18b7   : > { %v3402_v35 = vrot.slane %v3399_v60, 1 }
0x18b8   : > { %v3393_v11 = vpop.xlane.xlu1 %3392 }
0x18b9   : > { %v6509_v8 = vsub.f32 %v3382_v0, %v3402_v35  ;;  %v3398_v36 = vmul.f32 0.0078125, %v3393_v11  ;;  %v5017_v35 = vld [vmem:[#allocation26 + $0x50] sm:$0xff]  }
0x18ba   : > { %v5018_v11 = vld [vmem:[#allocation26 + $0x10] sm:$0xff]   ;;  %4402 = vmatprep.subr.bf16.mxu1 %v5017_v35 }
0x18bb   : > { %v6511_v37 = vsub.f32 %v3381_v29, %v3398_v36  ;;  %v3408_v38 = vmul.f32 %v6509_v8, %v6509_v8  ;;  %4403 = vmatpush3.bf16.msra.mxu1 %v5018_v11  ;;  %v5020_v36 = vld [vmem:[#allocation26 + $0x8] sm:$0xff]  }
0x18bd   : > { %v3411_v49 = vrot.slane %v3408_v38, 7  ;;  %v3407_v40 = vmul.f32 %v6511_v37, %v6511_v37  ;;  %v5022_v38 = vld [vmem:[#allocation26] sm:$0xff]  }
0x18bf   : > { %v3417_v39 = vsel %vm3394_vm7, %v3411_v49, 0.0  ;;  %v3414_v42 = vsel %vm3390_vm8, %v3407_v40, 0.0 }
0x18c0   : > { %3418 = vadd.xlane.f32.xlu1 %v3417_v39 }
0x18c4   : > { %3415 = vadd.xlane.f32.xlu1 %v3414_v42 }
0x1949   : > { %v3419_v14 = vpop.xlane.xlu1 %3418 }
0x194a   : > { %v3421_v15 = vmul.f32 0.0078125, %v3419_v14 }
0x194c   : > { %v3423_v16 = vadd.f32 1e-05, %v3421_v15 }
0x194d   : > { %v3416_v17 = vpop.xlane.xlu1 %3415 }
0x194e   : > { %5075 = vrsqrt.f32 %v3423_v16  ;;  %v3420_v18 = vmul.f32 0.0078125, %v3416_v17 }
0x1950   : > { %v3422_v1 = vadd.f32 1e-05, %v3420_v18 }
0x1952   : > { %5077 = vrsqrt.f32 %v3422_v1 }
0x195b   : > { %v5076_v19 = vpop.eup %5075 }
0x195c   : > { %v3428_v53 = vrot.slane %v5076_v19, 1 }
0x195e   : > { %v3432_v21 = vmul.f32 %v3428_v53, %v6509_v8  ;;  %v5019_v8 = vld [vmem:[#allocation26 + $0x48] sm:$0xff]  }
0x195f   : > { %v5078_v56 = vpop.eup %5077  ;;  %4404 = vmatprep.subr.bf16.mxu1 %v5019_v8 }
0x1960   : > { %v3440_v22 = vmul.f32 %v4258_v20, %v3432_v21  ;;  %v3431_v25 = vmul.f32 %v5078_v56, %v6511_v37  ;;  %4405 = vmatpush3.bf16.msra.mxu1 %v5020_v36  ;;  %v5021_v37 = vld [vmem:[#allocation26 + $0x40] sm:$0xff]  }
0x1961   : > { %4406 = vmatprep.subr.bf16.mxu1 %v5021_v37  ;;  %v4294_v56 = vld [vmem:[#allocation31] ss:$0 sm:$0xff] }
0x1962   : > { %v3448_v0 = vadd.f32 %v4259_v41, %v3440_v22  ;;  %v3439_v26 = vmul.f32 %v4258_v20, %v3431_v25  ;;  %v4293_v20 = vld [vmem:[#allocation29] ss:$0 sm:$0xff] }
0x1964   : > { %v3447_v27 = vadd.f32 %v4259_v41, %v3439_v26  ;;  %v3458_v28 = vrot.slane %v3448_v0, %v3453_v61  ;;  %4407 = vmatpush3.bf16.msra.mxu1 %v5022_v38 }
0x1966   : > { %v3454_v29 = vrot.slane %v3447_v27, %v3453_v61  ;;  %v3461_v34 = vsel %vm3459_vm9, %v3458_v28, %v6406_v54  ;;  %v3484_v54 = vrot.slane %v3479_v30, %v6177_v32 }
0x1968   : > { %v3460_v33 = vsel %vm3459_vm9, %v3454_v29, %v6402_v48  ;;  %v3488_v48 = vrot.slane %v3479_v30, %v6174_v31 }
0x1969   : > { %v3462_v60 = vpack.c.bf16 %v3461_v34, %v3460_v33 }
0x196b   : > { %3604 = vmatmul.mubr.bf16.vlgmr.msra.gmra.mxu0 %v3462_v60 }
0x1a2b   : > { %v3605_v49 = vpop.f32.mrf.mxu0 }
0x1a2c   : > { %v3606_v44 = vadd.f32 %v3605_v49, %v3484_v54 }
0x1a2d   : > { %v3607_v39 = vpop.f32.mrf.mxu0 }
0x1a2e   : > { %v3608_v42 = vadd.f32 %v3607_v39, %v3488_v48  ;;  %v3614_v57 = vmax.f32 %v3606_v44, 0.0 }
0x1a2f   : > { %v3609_v40 = vpop.f32.mrf.mxu0 }
0x1a30   : > { %v3610_v43 = vadd.f32 %v3609_v40, %v3484_v54  ;;  %v3615_v52 = vmax.f32 %v3608_v42, 0.0 }
0x1a31   : > { %v3611_v45 = vpop.f32.mrf.mxu0 }
0x1a32   : > { %v3612_v46 = vadd.f32 %v3611_v45, %v3488_v48  ;;  %v3616_v50 = vmax.f32 %v3610_v43, 0.0 }
0x1a34   : > { %v3617_v55 = vmax.f32 %v3612_v46, 0.0  ;;  %v3618_v59 = vpack.c.bf16 %v3616_v50, %v3614_v57 }
0x1a36   : > { %v3619_v58 = vpack.c.bf16 %v3617_v55, %v3615_v52 }
0x1a38   : > { %3787 = vmatprep.mubr.bf16.mxu1 %v3619_v58 }
0x1a39   : > { %3788 = vmatmul.mubr.bf16.vlgmr.msra.gmra.mxu1 %v3618_v59 }
0x1af9   : > { %v4408_v62 = vpop.f32.mrf.mxu1 }
0x1afb   : > { %v4409_v31 = vpop.f32.mrf.mxu1 }
0x1afc   : > { %v4410_v2 = vadd.f32 %v4409_v31, %v4408_v62 }
0x1afd   : > { %v4411_v32 = vpop.f32.mrf.mxu1 }
0x1afe   : > { %v3790_v3 = vadd.f32 %v4410_v2, %v4276_v63 }
0x1aff   : > { %v4412_v4 = vpop.f32.mrf.mxu1 }
0x1b00   : > { %v4413_v5 = vadd.f32 %v4412_v4, %v4411_v32  ;;  %v3796_v6 = vadd.f32 %v3790_v3, %v3460_v33 }
0x1b02   : > { %v3793_v7 = vadd.f32 %v4413_v5, %v4276_v63  ;;  %3800 = vadd.xlane.f32.xlu0 %v3796_v6 }
0x1b04   : > { %v3797_v9 = vadd.f32 %v3793_v7, %v3461_v34 }
0x1b06   : > { %3802 = vadd.xlane.f32.xlu1 %v3797_v9 }
0x1b8b   : > { %v3801_v23 = vpop.xlane.xlu0 %3800 }
0x1b8c   : > { %v3804_v12 = vmul.f32 0.0078125, %v3801_v23 }
0x1b8e   : > { %v3806_v10 = vsub.f32 %v3796_v6, %v3804_v12 }
0x1b8f   : > { %v3803_v47 = vpop.xlane.xlu1 %3802 }
0x1b90   : > { %v3805_v24 = vmul.f32 0.0078125, %v3803_v47  ;;  %v3808_v51 = vmul.f32 %v3806_v10, %v3806_v10 }
0x1b92   : > { %v3807_v13 = vsub.f32 %v3797_v9, %v3805_v24  ;;  %3810 = vadd.xlane.f32.xlu1 %v3808_v51 }
0x1b94   : > { %v3809_v14 = vmul.f32 %v3807_v13, %v3807_v13 }
0x1b96   : > { %3812 = vadd.xlane.f32.xlu1 %v3809_v14 }
0x1c1b   : > { %v3811_v15 = vpop.xlane.xlu1 %3810 }
0x1c1c   : > { %v3814_v16 = vmul.f32 0.0078125, %v3811_v15 }
0x1c1e   : > { %v3816_v17 = vadd.f32 1e-05, %v3814_v16 }
0x1c1f   : > { %v3813_v18 = vpop.xlane.xlu1 %3812 }
0x1c20   : > { %5079 = vrsqrt.f32 %v3816_v17  ;;  %v3815_v1 = vmul.f32 0.0078125, %v3813_v18 }
0x1c22   : > { %v3817_v19 = vadd.f32 1e-05, %v3815_v1 }
0x1c24   : > { %5081 = vrsqrt.f32 %v3817_v19 }
0x1c2d   : > { %v5080_v53 = vpop.eup %5079 }
0x1c2e   : > { %v3820_v21 = vmul.f32 %v5080_v53, %v3806_v10 }
0x1c30   : > { %v3828_v41 = vmul.f32 %v4293_v20, %v3820_v21 }
0x1c31   : > { %v5082_v22 = vpop.eup %5081 }
0x1c32   : > { %v3836_v25 = vadd.f32 %v4294_v56, %v3828_v41  ;;  %v3821_v61 = vmul.f32 %v5082_v22, %v3807_v13 }
0x1c34   : > { %v3829_v0 = vmul.f32 %v4293_v20, %v3821_v61  ;;  %3838 = vst [vmem:[%s956_s9] sm:$0xff] %v3836_v25 }
0x1c36   : > { %v3837_v26 = vadd.f32 %v4294_v56, %v3829_v0 }
0x1c38   : > { %3839 = vst [vmem:[%s956_s9 + $0x8] sm:$0xff] %v3837_v26 }
0x1c39   : > { %5592 = shalt.err (!%p5589_p7)
}
0x1c3a   : > { %s5593_s2 = scalar_lea.hbm %s6532_s8, 256  ;;  %s5597_s1 = scalar_lea.hbm %s6683_s27, 512 }
0x1c3b   : > { %p5594_p6 = scmp.ne.s32.totalorder %s6532_s8, %s5593_s2  ;;  %p5598_p12 = scmp.lt.s32.totalorder %s6532_s8, %s6683_s27 }
0x1c3c   : > { %p5599_p2 = scmp.lt.s32.totalorder %s5597_s1, %s5593_s2 }
0x1c3d   : > { %p5595_p11 = pnand %p5594_p6, %p6684_p1 }
0x1c3e   : > { %p5600_p5 = por %p5599_p2, %p5598_p12 }
0x1c3f   : > { %p5596_p10 = pneg %p5595_p11 }
0x1c41   : > { %p5601_p4 = pnand %p5600_p5, %p5596_p10 }
0x1c43   : > { %5604 = shalt.err (!%p5601_p4)
}
0x1c44   : > { %s5713_s4 = smov 128   ;;  %s5714_s7 = smov 8  }
0x1c45   : > { %4736 = dma.vmem_to_hbm [thread:$0]  (%p6684_p1), %s6534_s0, 256, %s6532_s8, %s3841_s22, %s5713_s4, %s5713_s4, %s5714_s7  }
0x1c46 PF: > { %s6685_s3 = sld [smem:[#allocation44_spill]]  ;;  %p6686_p3 = scmp.ne.s32.totalorder %s6652_s23, 0 }
0x1c47   : > { %p6687_p8 = scmp.ge.s32.totalorder %s5679_s30, 2 }
0x1c49   : > { %p4798_p9 = pnand %p6687_p8, %p6686_p3 }
0x1c4b   : > { %p4799_p13 = pneg %p4798_p9 }
0x1c4c   : > { %s3869_s28 = sand.u32 1, %s6685_s3  }
0x1c4d   : > { %s3870_s2 = scalar_lea.sflag [#allocation4], %s3869_s28 }
0x1c4e   : > { %5662 = dma.done.wait (%p4799_p13), %s3870_s2, 256  }
0x1c4f   : > { %5664 = vsyncadd (%p4799_p13), %s3870_s2, 4294967040  ;;  %s6688_s3 = sld [smem:[#allocation45_spill]]  ;;  %p44_p0 = scmp.ge.s32.totalorder %s6021_s6, 4  }
0x1c50   : > { %s6689_s28 = sld [smem:[#allocation46_spill]]  ;;  %s6690_s29 = smov %s6032_s24 }
0x1c51   : > { %s6691_s30 = smov %s6021_s6  ;;  %46 = sbr.rel (!%p44_p0) target bundleno = 27 (0x1b), region = 228 }
0x1c56   :  { %3875 = vsyncpa [#allocation3], 1 }
0x1c57   :  { %3877 = vsyncpa [#allocation3 + $0x1], 1 }
0x1c58   :  { %3878 = vsyncpa [#allocation6], 1 }
0x1c59   :  { %3879 = vsyncpa [#allocation9], 1 }
0x1c5a   :  { %3880 = vsyncpa [#allocation12], 1 }
0x1c5b   :  { %3881 = vsyncpa [#allocation15], 1 }
0x1c5c   :  { %3882 = vsyncpa [#allocation18], 1 }
0x1c5d   :  { %3883 = vsyncpa [#allocation21], 1 }
0x1c5e   :  { %3884 = vsyncpa [#allocation24], 1 }
0x1c5f   :  { %3885 = vsyncpa [#allocation27], 1 }
0x1c60   :  { %3886 = vsyncpa [#allocation30], 1 }
0x1c61   :  { %3887 = vsyncpa [#allocation4], 1 }
0x1c62   :  { %3889 = vsyncpa [#allocation4 + $0x1], 1 }

</bundles_post_ra>
